<compile_context>
chip_gen: v5e
topology: v5e:2x2
jax: 0.10.0
libtpu: 0.0.40
codegen_flags: <defaults>
</compile_context>

<pallas_src>
import jax
import jax.numpy as jnp
import numpy as np
from jax.experimental import pallas as pl
from jax.experimental.pallas import tpu as pltpu


def _round_up(x, m):
    return ((x + m - 1) // m) * m


def _log1p_stable(t):
    # log1p(t) for t in (0, 1] without relying on a Mosaic log1p lowering:
    # Goldberg's correction  log(1+t) * t / ((1+t) - 1), falling back to t
    # when 1+t rounds to 1.  Only uses log / mul / div / compare / select.
    u = 1.0 + t
    exact = u == 1.0
    denom = jnp.where(exact, 1.0, u - 1.0)
    return jnp.where(exact, t, jnp.log(u) * (t / denom))


def _make_kernel(context_size: int):
    C = context_size

    def kernel(idx_ref, hidden_ref, emb_ref, out_ref):
        # idx_ref    : VMEM (K, TB)   int32  (positives first; batch on lanes)
        # hidden_ref : VMEM (TB, D)   f32
        # emb_ref    : VMEM (V, D)    f32    (full table, resident)
        # out_ref    : VMEM (1,1,TB)  f32    (per-batch-row loss, lane dense)
        K, TB = idx_ref.shape
        V, D = emb_ref.shape

        idx_t = idx_ref[...]                                   # (K, TB) int32
        h = hidden_ref[...]                                    # (TB, D) f32
        table_bf = emb_ref[...].astype(jnp.bfloat16)           # (V, D)  bf16

        # --- selection folded onto the MXU -------------------------------
        # onehot[(k,b), v] = 1 iff v == idx_t[k, b]; only a compare + cast on
        # the VPU.  e_sel = onehot @ table gathers the sampled rows via the
        # MXU (exact: one nonzero per row, f32 accumulation).
        vocab_iota = jax.lax.broadcasted_iota(jnp.int32, (K, TB, V), 2)
        onehot = jnp.where(vocab_iota == idx_t[:, :, None], 1.0, 0.0)
        onehot = onehot.astype(jnp.bfloat16).reshape(K * TB, V)
        e_sel = jax.lax.dot_general(
            onehot, table_bf, (((1,), (0,)), ((), ())),
            preferred_element_type=jnp.float32).reshape(K, TB, D)

        # scores[k, b] = e_sel[k, b, :] . h[b, :]   (D is small; f32 VPU)
        scores = jnp.sum(e_sel * h[None, :, :], axis=-1)       # (K, TB) f32

        # Negatives (rows >= C) are negated before log-sigmoid (torch .neg()).
        row = jax.lax.broadcasted_iota(jnp.int32, (K, TB), 0)
        x = jnp.where(row < C, scores, -scores)

        # Stable log-sigmoid: min(x, 0) - log1p(exp(-|x|)), all in (K, TB)
        # layout (full 128-lane vregs, K on sublanes).
        logsig = jnp.minimum(x, 0.0) - _log1p_stable(jnp.exp(-jnp.abs(x)))

        # loss_b = -(mean_c logsig_pos + (1/C) * sum_{c,n} logsig_neg)
        #        = -(sum_k logsig[k, b]) / C        -> sublane reduce over K
        out_ref[0, 0, :] = -jnp.sum(logsig, axis=0) * (1.0 / C)

    return kernel


def sampled_softmax_loss(emb_table, hidden, positives, negatives, *,
                         batch_tile=512):
    emb_table = emb_table.astype(jnp.float32)
    hidden = hidden.astype(jnp.float32)
    B, D = hidden.shape
    V, _ = emb_table.shape
    C = positives.shape[1]
    K = C + negatives.shape[1]

    # (K, B) index matrix, positives first, batch on the (lane) minor axis.
    idx_t = jnp.concatenate(
        [positives.astype(jnp.int32), negatives.astype(jnp.int32)], axis=1).T

    # Batch tile: multiple of 128 (lane-dense stores / full vregs), as large
    # as batch_tile to amortize the ~0.35us per-grid-step overhead, but keep
    # at least two tiles when the batch allows so v7x's two TensorCores
    # (parallel batch axis) both get work.
    TB = min(batch_tile, _round_up(B, 128))
    if B > 128 and TB >= _round_up(B, 128):
        TB = max(128, _round_up(-(-B // 2), 128))
    G = -(-B // TB)
    B_pad = G * TB
    if B_pad != B:
        # Padded rows (idx=0, hidden=0) are computed but dropped by the [:B]
        # slice below; (G,1,TB) flattens row-major back into batch order.
        idx_t = jnp.pad(idx_t, ((0, 0), (0, B_pad - B)))
        hidden = jnp.pad(hidden, ((0, B_pad - B), (0, 0)))

    # Explicit VMEM budget: the constant-index-map table block is
    # double-buffered by the pipeline (2x), plus per-tile idx/hidden/out
    # double buffers and the in-kernel onehot / e_sel intermediates.
    table_bytes = V * D * 4
    tile_bytes = TB * (K * 4 + D * 4 + 4)
    interm_bytes = TB * K * (V * 6 + D * 8)
    need = 2 * table_bytes + 2 * tile_bytes + interm_bytes
    vmem_limit = int(min(64 << 20, max(32 << 20, need + (4 << 20))))

    per_row = pl.pallas_call(
        _make_kernel(C),
        out_shape=jax.ShapeDtypeStruct((G, 1, TB), jnp.float32),
        grid=(G,),
        in_specs=[
            pl.BlockSpec((K, TB), lambda g: (0, g)),   # sampled ids (K, TB)
            pl.BlockSpec((TB, D), lambda g: (g, 0)),   # hidden tile
            pl.BlockSpec((V, D), lambda g: (0, 0)),    # emb table (resident)
        ],
        out_specs=pl.BlockSpec((1, 1, TB), lambda g: (g, 0, 0)),
        compiler_params=pltpu.CompilerParams(
            dimension_semantics=("parallel",),
            vmem_limit_bytes=vmem_limit),
    )(idx_t, hidden, emb_table)

    # Final mean over the real batch rows (trivial glue).
    return jnp.mean(per_row.reshape(-1)[:B])


def reference_loss(emb_table, hidden, positives, negatives):
    # Pure-JAX transcription of the PyTorch forward pass (same negatives).
    B, C = positives.shape
    CN = negatives.shape[1]
    N = CN // C
    ep = emb_table[positives]                    # (B, C, D)
    en = -emb_table[negatives]                   # (B, C*N, D)
    h = hidden[:, :, None]                       # (B, D, 1)
    p = jnp.matmul(ep, h)[..., 0]                # (B, C)
    p_loss = jnp.mean(jax.nn.log_sigmoid(p), axis=1)
    n = jnp.matmul(en, h)[..., 0]                # (B, C*N)
    n_log = jax.nn.log_sigmoid(n).reshape(B, C, N)
    n_loss = jnp.mean(jnp.sum(n_log, axis=2), axis=1)
    return -jnp.mean(p_loss + n_loss)


if __name__ == "__main__":
    vocab_size, emb_dims = 64, 32
    batch, context, num_negatives = 4, 2, 5

    key = jax.random.PRNGKey(0)
    k_emb, k_hid, k_pos, k_neg = jax.random.split(key, 4)

    # nn.Embedding weight init: uniform(-0.5/emb_dims, 0.5/emb_dims)
    init_range = 0.5 / emb_dims
    emb_table = jax.random.uniform(
        k_emb, (vocab_size, emb_dims),
        minval=-init_range, maxval=init_range, dtype=jnp.float32)

    hidden = jax.random.normal(k_hid, (batch, emb_dims), dtype=jnp.float32)
    positives = jax.random.randint(
        k_pos, (batch, context), 1, vocab_size, dtype=jnp.int32)

    # torch: FloatTensor.uniform_(1, vocab-1).long()  (padding=True, no weights)
    neg_f = jax.random.uniform(
        k_neg, (batch, context * num_negatives),
        minval=1.0, maxval=float(vocab_size - 1), dtype=jnp.float32)
    negatives = neg_f.astype(jnp.int32)

    loss = sampled_softmax_loss(emb_table, hidden, positives, negatives)
    loss = jax.block_until_ready(loss)

    # Tight check against a reference that uses the same bf16-rounded table
    # (validates kernel logic), plus a looser check against the pure-f32
    # PyTorch-equivalent reference (tolerance accounts for the bf16 MXU
    # inputs; accumulation and log-sigmoid are f32 in both).
    emb_bf = emb_table.astype(jnp.bfloat16).astype(jnp.float32)
    ref_bf = reference_loss(emb_bf, hidden, positives, negatives)
    ref_f32 = reference_loss(emb_table, hidden, positives, negatives)
    np.testing.assert_allclose(np.asarray(loss), np.asarray(ref_bf),
                               rtol=1e-5, atol=1e-5)
    np.testing.assert_allclose(np.asarray(loss), np.asarray(ref_f32),
                               rtol=2e-3, atol=1e-3)
    print("KERNEL_OK")
</pallas_src>

<mosaic_0001>
module attributes {stable_mosaic.version = 11 : i64} {
  func.func @kernel(%arg0: i32, %arg1: memref<12x128xi32, #tpu.memory_space<vmem>>, %arg2: memref<128x32xf32, #tpu.memory_space<vmem>>, %arg3: memref<64x32xf32, #tpu.memory_space<vmem>>, %arg4: memref<1x1x128xf32, #tpu.memory_space<vmem>>) attributes {dimension_semantics = [#tpu.dimension_semantics<parallel>], iteration_bounds = array<i64: 1>, scalar_prefetch = 0 : i64, scratch_operands = 0 : i64, tpu.core_type = #tpu.core_type<tc>, window_params = [{transform_indices = @transform_0, window_bounds = array<i64: 12, 128>}, {transform_indices = @transform_1, window_bounds = array<i64: 128, 32>}, {pipeline_mode = #tpu.pipeline_mode<synchronous>, transform_indices = @transform_2, window_bounds = array<i64: 64, 32>}, {transform_indices = @transform_3, window_bounds = array<i64: 1, 1, 128>}]} {
    %c0 = arith.constant 0 : index
    %c0_0 = arith.constant 0 : index
    %0 = vector.load %arg1[%c0, %c0_0] : memref<12x128xi32, #tpu.memory_space<vmem>>, vector<12x128xi32>
    %c0_1 = arith.constant 0 : index
    %c0_2 = arith.constant 0 : index
    %1 = vector.load %arg2[%c0_1, %c0_2] : memref<128x32xf32, #tpu.memory_space<vmem>>, vector<128x32xf32>
    %c0_3 = arith.constant 0 : index
    %c0_4 = arith.constant 0 : index
    %2 = vector.load %arg3[%c0_3, %c0_4] : memref<64x32xf32, #tpu.memory_space<vmem>>, vector<64x32xf32>
    %3 = arith.truncf %2 : vector<64x32xf32> to vector<64x32xbf16>
    %4 = tpu.iota {dimensions = array<i32: 2>} : vector<12x128x64xi32>
    %5 = vector.shape_cast %0 : vector<12x128xi32> to vector<12x128x1xi32>
    %6 = vector.broadcast %5 : vector<12x128x1xi32> to vector<12x128x64xi32>
    %7 = arith.cmpi eq, %4, %6 : vector<12x128x64xi32>
    %cst = arith.constant 1.000000e+00 : f32
    %cst_5 = arith.constant 0.000000e+00 : f32
    %8 = vector.broadcast %cst : f32 to vector<12x128x64xf32>
    %9 = vector.broadcast %cst_5 : f32 to vector<12x128x64xf32>
    %10 = arith.select %7, %8, %9 : vector<12x128x64xi1>, vector<12x128x64xf32>
    %11 = arith.truncf %10 : vector<12x128x64xf32> to vector<12x128x64xbf16>
    %12 = vector.shape_cast %11 : vector<12x128x64xbf16> to vector<1536x64xbf16>
    %cst_6 = arith.constant dense<0.000000e+00> : vector<1536x32xf32>
    %13 = tpu.matmul %12, %3, %cst_6 {dimension_numbers = #tpu.dot_dimension_numbers<[1], [0], [0], [1], [0, 0, 1, 1], [], []>} : vector<1536x64xbf16>, vector<64x32xbf16>, vector<1536x32xf32> -> vector<1536x32xf32>
    %14 = vector.shape_cast %13 : vector<1536x32xf32> to vector<12x128x32xf32>
    %15 = vector.shape_cast %1 : vector<128x32xf32> to vector<1x128x32xf32>
    %16 = vector.broadcast %15 : vector<1x128x32xf32> to vector<12x128x32xf32>
    %17 = arith.mulf %14, %16 : vector<12x128x32xf32>
    %cst_7 = arith.constant dense<0.000000e+00> : vector<12x128xf32>
    %18 = vector.multi_reduction <add>, %17, %cst_7 [2] : vector<12x128x32xf32> to vector<12x128xf32>
    %19 = tpu.iota {dimensions = array<i32: 0>} : vector<12x128xi32>
    %c2_i32 = arith.constant 2 : i32
    %20 = vector.broadcast %c2_i32 : i32 to vector<12x128xi32>
    %21 = arith.cmpi slt, %19, %20 : vector<12x128xi32>
    %cst_8 = arith.constant 0.000000e+00 : f32
    %22 = vector.broadcast %cst_8 : f32 to vector<12x128xf32>
    %23 = arith.subf %22, %18 : vector<12x128xf32>
    %24 = arith.select %21, %18, %23 : vector<12x128xi1>, vector<12x128xf32>
    %cst_9 = arith.constant 0.000000e+00 : f32
    %25 = vector.broadcast %cst_9 : f32 to vector<12x128xf32>
    %26 = arith.minimumf %24, %25 : vector<12x128xf32>
    %27 = math.absf %24 : vector<12x128xf32>
    %cst_10 = arith.constant 0.000000e+00 : f32
    %28 = vector.broadcast %cst_10 : f32 to vector<12x128xf32>
    %29 = arith.subf %28, %27 : vector<12x128xf32>
    %30 = math.exp %29 : vector<12x128xf32>
    %cst_11 = arith.constant 1.000000e+00 : f32
    %31 = vector.broadcast %cst_11 : f32 to vector<12x128xf32>
    %32 = arith.addf %31, %30 : vector<12x128xf32>
    %cst_12 = arith.constant 1.000000e+00 : f32
    %33 = vector.broadcast %cst_12 : f32 to vector<12x128xf32>
    %34 = arith.cmpf oeq, %32, %33 : vector<12x128xf32>
    %cst_13 = arith.constant 1.000000e+00 : f32
    %35 = vector.broadcast %cst_13 : f32 to vector<12x128xf32>
    %36 = arith.subf %32, %35 : vector<12x128xf32>
    %cst_14 = arith.constant 1.000000e+00 : f32
    %37 = vector.broadcast %cst_14 : f32 to vector<12x128xf32>
    %38 = arith.select %34, %37, %36 : vector<12x128xi1>, vector<12x128xf32>
    %39 = math.log %32 : vector<12x128xf32>
    %40 = arith.divf %30, %38 : vector<12x128xf32>
    %41 = arith.mulf %39, %40 : vector<12x128xf32>
    %42 = arith.select %34, %30, %41 : vector<12x128xi1>, vector<12x128xf32>
    %43 = arith.subf %26, %42 : vector<12x128xf32>
    %cst_15 = arith.constant dense<0.000000e+00> : vector<128xf32>
    %44 = vector.multi_reduction <add>, %43, %cst_15 [0] : vector<12x128xf32> to vector<128xf32>
    %cst_16 = arith.constant 0.000000e+00 : f32
    %45 = vector.broadcast %cst_16 : f32 to vector<128xf32>
    %46 = arith.subf %45, %44 : vector<128xf32>
    %cst_17 = arith.constant 5.000000e-01 : f32
    %47 = vector.broadcast %cst_17 : f32 to vector<128xf32>
    %48 = arith.mulf %46, %47 : vector<128xf32>
    %c0_18 = arith.constant 0 : index
    %c0_19 = arith.constant 0 : index
    %c0_20 = arith.constant 0 : index
    %49 = vector.load %arg4[%c0_18, %c0_19, %c0_20] : memref<1x1x128xf32, #tpu.memory_space<vmem>>, vector<1x1x128xf32>
    %50 = vector.shape_cast %49 : vector<1x1x128xf32> to vector<128xf32>
    %51 = vector.shape_cast %48 : vector<128xf32> to vector<1x1x128xf32>
    tpu.vector_store %arg4[%c0_18, %c0_19, %c0_20], %51 {strides = array<i32>} : memref<1x1x128xf32, #tpu.memory_space<vmem>>, vector<1x1x128xf32>,
    return
  }
  func.func @transform_0(%arg0: i32) -> (i32, i32) {
    %c0_i32 = arith.constant 0 : i32
    %c0_i32_0 = arith.constant 0 : i32
    return %c0_i32, %arg0 : i32, i32
  }
  func.func @transform_1(%arg0: i32) -> (i32, i32) {
    %c0_i32 = arith.constant 0 : i32
    %c0_i32_0 = arith.constant 0 : i32
    return %arg0, %c0_i32 : i32, i32
  }
  func.func @transform_2(%arg0: i32) -> (i32, i32) {
    %c0_i32 = arith.constant 0 : i32
    %c0_i32_0 = arith.constant 0 : i32
    %c0_i32_1 = arith.constant 0 : i32
    return %c0_i32, %c0_i32_0 : i32, i32
  }
  func.func @transform_3(%arg0: i32) -> (i32, i32, i32) {
    %c0_i32 = arith.constant 0 : i32
    %c0_i32_0 = arith.constant 0 : i32
    %c0_i32_1 = arith.constant 0 : i32
    return %arg0, %c0_i32, %c0_i32_0 : i32, i32, i32
  }
}

</mosaic_0001>

<bundles_post_ra>
// kernel: tpu_custom_call.1
= control target key start
LH: loop header
LB: loop body
LE: loop exit
PB: predicated region body
PF: predicated region fallthrough
CT: control target
= control target key end

     0   :  { %v46_v0 = vlaneseq  ;;  %s9257_s0 = inlined_call_operand.vmem [shape: s32[12,128], index: 0, kind: input, shape index: {}]   ;;  %s9258_s1 = inlined_call_operand.vmem [shape: f32[128,32], index: 1, kind: input, shape index: {}]   ;;  %s9259_s2 = inlined_call_operand.vmem [shape: f32[64,32], index: 2, kind: input, shape index: {}]   ;;  %s9260_s3 = inlined_call_operand.hbm [shape: f32[1,1,128], index: 3, kind: output, shape index: {}]  }
   0x1   :  { %8 = vsyncpa [#allocation3], 0  ;;  %v5697_v5 = vld [vmem:[%s9257_s0] sm:$0xff]  ;;  %v5780_v20 = vld [vmem:[%s9257_s0 + $0x8] sm:$0xf]  ;;  %v9261_v47 = vmov 0.0  }
   0x2   :  { %v5680_v1 = vshrl.u32 %v46_v0, 7  ;;  %v5700_v6 = vperm.slane %v5697_v5, 0  ;;  %v5712_v9 = vperm.slane %v5697_v5, 2  ;;  %v5718_v10 = vperm.slane %v5697_v5, 7  ;;  %v40_v27 = vld [vmem:[%s9259_s2 + $0x30] sm:$0xff]  ;;  %v41_v28 = vld [vmem:[%s9259_s2 + $0x38] sm:$0xff] }
   0x3   :  { %v5772_v19 = vperm.slane %v5697_v5, 3  ;;  %v5783_v21 = vperm.slane %v5697_v5, 1  ;;  %v5786_v22 = vperm.slane %v5780_v20, 0  ;;  %v45_v30 = vpack.c.bf16 %v41_v28, %v40_v27  ;;  %v38_v31 = vld [vmem:[%s9259_s2 + $0x20] sm:$0xff]  ;;  %v39_v32 = vld [vmem:[%s9259_s2 + $0x28] sm:$0xff]  ;;  %v36_v34 = vld [vmem:[%s9259_s2 + $0x10] sm:$0xff] }
   0x4   :  { %9318 = vst [vmem:[#allocation5_spill] sm:$0xff] %v5680_v1  ;;  %v5683_v2 = vadd.s32 32, %v5680_v1  ;;  %v5686_v3 = vadd.s32 16, %v5680_v1  ;;  %v5689_v4 = vadd.s32 8, %v5680_v1  ;;  %v5706_v7 = vadd.s32 40, %v5680_v1  ;;  %v37_v35 = vld [vmem:[%s9259_s2 + $0x18] sm:$0xff] }
   0x5   :  { %v5709_v8 = vadd.s32 24, %v5680_v1  ;;  %9319 = vst [vmem:[#allocation6_spill] sm:$0xff] %v5718_v10  ;;  %v5724_v11 = vadd.s32 56, %v5680_v1  ;;  %v5727_v12 = vadd.s32 48, %v5680_v1  ;;  %v5736_v13 = vadd.s32 80, %v5680_v1  ;;  %2561 = vmatpush.bf16.msra.mxu0 %v45_v30  ;;  %5387 = vmatpush.bf16.msra.mxu1 %v45_v30  ;;  %v34_v39 = vld [vmem:[%s9259_s2] sm:$0xff] }
   0x6   :  { %5404 = vset.pattern.permute.xlu2 %v5683_v2  ;;  %5402 = vset.pattern.permute.xlu1 %v5686_v3  ;;  %v5739_v14 = vadd.s32 72, %v5680_v1  ;;  %v5745_v15 = vadd.s32 88, %v5680_v1  ;;  %v5751_v16 = vadd.s32 96, %v5680_v1  ;;  %v5760_v17 = vadd.s32 120, %v5680_v1  ;;  %9320 = vst [vmem:[#allocation7_spill] sm:$0xff] %v5786_v22  ;;  %v35_v40 = vld [vmem:[%s9259_s2 + $0x8] sm:$0xff] }
   0x7   :  { %5401 = vset.pattern.permute.xlu0 %v5689_v4  ;;  %v5763_v18 = vadd.s32 112, %v5680_v1  ;;  %v5806_v24 = vadd.s32 64, %v5680_v1  ;;  %5388 = vmatpush.bf16.msra.mxu2 %v45_v30  ;;  %v44_v33 = vpack.c.bf16 %v39_v32, %v38_v31  ;;  %v43_v36 = vpack.c.bf16 %v37_v35, %v36_v34  ;;  %s5280_s17 = sshll.u32 %s9260_s3, 4  ;;  %s5281_s17 = int_to_ptr.hbm [resolvable:$true] %s5280_s17 }
   0x8   :  { %5389 = vmatpush.bf16.msra.mxu3 %v45_v30  ;;  %v5845_v37 = vadd.s32 104, %v5680_v1  ;;  %v42_v41 = vpack.c.bf16 %v35_v40, %v34_v39  ;;  %v5864_v43 = vperm.slane %v5697_v5, 4  ;;  %v5872_v45 = vand.u32 127, %v46_v0 }
   0x9   :  { %2562 = vmatpush.bf16.msra.mxu0 %v44_v33  ;;  %5390 = vmatpush.bf16.msra.mxu1 %v44_v33  ;;  %v5877_v46 = vperm.slane %v5780_v20, 1  ;;  %vm2268_vm2 = vcmask 523264  }
   0xb   :  { %5391 = vmatpush.bf16.msra.mxu2 %v44_v33  ;;  %9325 = vst [vmem:[#allocation12_spill] sm:$0xff] %v5877_v46 }
   0xc   :  { %5392 = vmatpush.bf16.msra.mxu3 %v44_v33 }
   0xd   :  { %2563 = vmatpush.bf16.msra.mxu0 %v43_v36  ;;  %5393 = vmatpush.bf16.msra.mxu1 %v43_v36 }
   0xe   :  { %77 = vperm.xlu2 %5404, %v5700_v6   ;;  %65 = vperm.xlu1 %5402, %v5700_v6  }
   0xf   :  { %59 = vperm.xlu0 %5401, %v5700_v6   ;;  %5394 = vmatpush.bf16.msra.mxu2 %v43_v36 }
  0x10   :  { %5395 = vmatpush.bf16.msra.mxu3 %v43_v36 }
  0x11   :  { %2564 = vmatpush.bf16.msra.mxu0 %v42_v41  ;;  %5396 = vmatpush.bf16.msra.mxu1 %v42_v41 }
  0x13   :  { %5397 = vmatpush.bf16.msra.mxu2 %v42_v41 }
  0x14   :  { %5398 = vmatpush.bf16.msra.mxu3 %v42_v41 }
  0x16   :  { %5405 = vset.pattern.permute.xlu2 %v5706_v7  ;;  %5403 = vset.pattern.permute.xlu1 %v5709_v8 }
  0x17   :  { %253 = vperm.xlu0 %5401, %v5712_v9  }
  0x1e   :  { %83 = vperm.xlu2 %5405, %v5700_v6   ;;  %71 = vperm.xlu1 %5403, %v5700_v6  }
  0x1f   :  { %738 = vperm.xlu0 %5401, %v5718_v10  }
  0x26   :  { %5407 = vset.pattern.permute.xlu2 %v5724_v11  ;;  %5406 = vset.pattern.permute.xlu1 %v5727_v12 }
  0x27   :  { %5492 = vset.pattern.permute.xlu0 %v5727_v12 }
  0x2e   :  { %95 = vperm.xlu2 %5407, %v5700_v6   ;;  %89 = vperm.xlu1 %5406, %v5700_v6  }
  0x2f   :  { %283 = vperm.xlu0 %5492, %v5712_v9  }
  0x36   :  { %5409 = vset.pattern.permute.xlu2 %v5736_v13  ;;  %5408 = vset.pattern.permute.xlu1 %v5739_v14 }
  0x37   :  { %768 = vperm.xlu0 %5492, %v5718_v10  }
  0x3e   :  { %113 = vperm.xlu2 %5409, %v5700_v6   ;;  %107 = vperm.xlu1 %5408, %v5700_v6  }
  0x3f   :  { %5497 = vset.pattern.permute.xlu0 %v5745_v15 }
  0x46   :  { %5411 = vset.pattern.permute.xlu2 %v5751_v16  ;;  %5410 = vset.pattern.permute.xlu1 %v5745_v15 }
  0x47   :  { %313 = vperm.xlu0 %5497, %v5712_v9  }
  0x4e   :  { %125 = vperm.xlu2 %5411, %v5700_v6   ;;  %119 = vperm.xlu1 %5410, %v5700_v6  }
  0x4f   :  { %798 = vperm.xlu0 %5497, %v5718_v10  }
  0x56   :  { %5413 = vset.pattern.permute.xlu2 %v5760_v17  ;;  %5412 = vset.pattern.permute.xlu1 %v5763_v18 }
  0x57   :  { %5502 = vset.pattern.permute.xlu0 %v5680_v1 }
  0x5e   :  { %143 = vperm.xlu2 %5413, %v5700_v6   ;;  %137 = vperm.xlu1 %5412, %v5700_v6  }
  0x5f   :  { %53 = vperm.xlu0 %5502, %v5700_v6  }
  0x66   :  { %5415 = vset.pattern.permute.xlu2 %v5689_v4  ;;  %5414 = vset.pattern.permute.xlu1 %v5680_v1 }
  0x67   :  { %344 = vperm.xlu0 %5502, %v5772_v19  }
  0x68   :  { %v78_v59 = vpop.permute.xlu2 %77 }
  0x69   :  { %vm1216_vm6 = vcmp.eq.s32.totalorder %v5872_v45, %v78_v59 }
  0x6a   :  { %v1408_v30 = vsel %vm1216_vm6, 1.0, %v9261_v47 }
  0x6b   :  { %v1600_v32 = vpack.c.bf16 %v1408_v30, %v1408_v30 }
  0x6d   :  { %v1984_v34 = vunpack.c.l.b16 %v1600_v32 }
  0x6e   :  { %156 = vperm.xlu2 %5415, %v5783_v21   ;;  %150 = vperm.xlu1 %5414, %v5783_v21  }
  0x6f   :  { %829 = vperm.xlu0 %5502, %v5786_v22  }
  0x76   :  { %5417 = vset.pattern.permute.xlu2 %v5683_v2  ;;  %5416 = vset.pattern.permute.xlu1 %v5709_v8 }
  0x77   :  { %5507 = vset.pattern.permute.xlu0 %v5706_v7 }
  0x7e   :  { %174 = vperm.xlu2 %5417, %v5783_v21   ;;  %168 = vperm.xlu1 %5416, %v5783_v21  }
  0x7f   :  { %374 = vperm.xlu0 %5507, %v5772_v19  }
  0x80   :  { %v66_v49 = vpop.permute.xlu1 %65 }
  0x81   :  { %v5800_v23 = vpop.permute.xlu0 %59  ;;  %vm1214_vm4 = vcmp.eq.s32.totalorder %v5872_v45, %v66_v49 }
  0x82   :  { %vm1213_vm0 = vcmp.eq.s32.totalorder %v5872_v45, %v5800_v23  ;;  %v1406_v60 = vsel %vm1214_vm4, 1.0, %v9261_v47  ;;  %v84_v23 = vpop.permute.xlu2 %83 }
  0x83   :  { %v1405_v48 = vsel %vm1213_vm0, 1.0, %v9261_v47  ;;  %v1598_v62 = vpack.c.bf16 %v1406_v60, %v1406_v60  ;;  %vm1217_vm5 = vcmp.eq.s32.totalorder %v5872_v45, %v84_v23 }
  0x84   :  { %v1597_v50 = vpack.c.bf16 %v1405_v48, %v1405_v48  ;;  %v1409_v28 = vsel %vm1217_vm5, 1.0, %v9261_v47 }
  0x85   :  { %v1982_v0 = vunpack.c.l.b16 %v1598_v62  ;;  %v1601_v31 = vpack.c.bf16 %v1409_v28, %v1409_v28 }
  0x86   :  { %5419 = vset.pattern.permute.xlu2 %v5727_v12  ;;  %5418 = vset.pattern.permute.xlu1 %v5706_v7  ;;  %v1981_v53 = vunpack.c.l.b16 %v1597_v50 }
  0x87   :  { %859 = vperm.xlu0 %5507, %v5786_v22   ;;  %v1985_v33 = vunpack.c.l.b16 %v1601_v31 }
  0x89   :  { %v5808_v25 = vpop.permute.xlu0 %253  ;;  %v2174_v36 = vpack.c.b16 %v1985_v33, %v1984_v34 }
  0x8a   :  { %v96_v39 = vpop.permute.xlu2 %95 }
  0x8b   :  { %vm1219_vm8 = vcmp.eq.s32.totalorder %v5872_v45, %v96_v39 }
  0x8c   :  { %v1411_v48 = vsel %vm1219_vm8, 1.0, %v9261_v47 }
  0x8d   :  { %v1603_v50 = vpack.c.bf16 %v1411_v48, %v1411_v48 }
  0x8e   :  { %186 = vperm.xlu2 %5419, %v5783_v21   ;;  %180 = vperm.xlu1 %5418, %v5783_v21  }
  0x8f   :  { %5512 = vset.pattern.permute.xlu0 %v5736_v13 }
  0x90   :  { %v72_v56 = vpop.permute.xlu1 %71 }
  0x91   :  { %v5816_v26 = vpop.permute.xlu0 %738  ;;  %vm1215_vm3 = vcmp.eq.s32.totalorder %v5872_v45, %v72_v56 }
  0x92   :  { %9321 = vst [vmem:[#allocation8_spill] sm:$0xff] %v5816_v26  ;;  %v1407_v58 = vsel %vm1215_vm3, 1.0, %v9261_v47 }
  0x93   :  { %v1599_v61 = vpack.c.bf16 %v1407_v58, %v1407_v58 }
  0x95   :  { %v1983_v63 = vunpack.c.l.b16 %v1599_v61 }
  0x96   :  { %5421 = vset.pattern.permute.xlu2 %v5739_v14  ;;  %5420 = vset.pattern.permute.xlu1 %v5806_v24 }
  0x97   :  { %404 = vperm.xlu0 %5512, %v5772_v19   ;;  %v2173_v27 = vpack.c.b16 %v1983_v63, %v1982_v0 }
  0x98   :  { %v5962_v63 = vpop.permute.xlu2 %113 }
  0x99   :  { %vm1222_vm12 = vcmp.eq.s32.totalorder %v5872_v45, %v5962_v63 }
  0x9e   :  { %204 = vperm.xlu2 %5421, %v5783_v21   ;;  %198 = vperm.xlu1 %5420, %v5783_v21  }
  0x9f   :  { %889 = vperm.xlu0 %5512, %v5786_v22  }
  0xa0   :  { %v90_v35 = vpop.permute.xlu1 %89 }
  0xa1   :  { %v5827_v29 = vpop.permute.xlu0 %283  ;;  %vm1218_vm7 = vcmp.eq.s32.totalorder %v5872_v45, %v90_v35 }
  0xa2   :  { %v1410_v41 = vsel %vm1218_vm7, 1.0, %v9261_v47 }
  0xa3   :  { %v1602_v49 = vpack.c.bf16 %v1410_v41, %v1410_v41 }
  0xa6   :  { %5423 = vset.pattern.permute.xlu2 %v5745_v15  ;;  %5422 = vset.pattern.permute.xlu1 %v5736_v13 }
  0xa7   :  { %5517 = vset.pattern.permute.xlu0 %v5760_v17 }
  0xa8   :  { %v5971_v23 = vpop.permute.xlu2 %125 }
  0xa9   :  { %v5847_v38 = vpop.permute.xlu0 %768  ;;  %vm1224_vm15 = vcmp.eq.s32.totalorder %v5872_v45, %v5971_v23 }
  0xaa   :  { %9322 = vst [vmem:[#allocation9_spill] sm:$0xff] %v5847_v38  ;;  %v9338_v38 = vmov 0.0  }
  0xae   :  { %216 = vperm.xlu2 %5423, %v5783_v21   ;;  %210 = vperm.xlu1 %5422, %v5783_v21  }
  0xaf   :  { %434 = vperm.xlu0 %5517, %v5772_v19  }
  0xb0   :  { %v5955_v61 = vpop.permute.xlu1 %107 }
  0xb1   :  { %vm1221_vm9 = vcmp.eq.s32.totalorder %v5872_v45, %v5955_v61 }
  0xb2   :  { %v1413_v26 = vsel %vm1221_vm9, 1.0, %v9338_v38 }
  0xb3   :  { %v1605_v10 = vpack.c.bf16 %v1413_v26, %v1413_v26 }
  0xb5   :  { %v1989_v61 = vunpack.c.l.b16 %v1605_v10 }
  0xb6   :  { %5425 = vset.pattern.permute.xlu2 %v5763_v18  ;;  %5424 = vset.pattern.permute.xlu1 %v5845_v37 }
  0xb7   :  { %919 = vperm.xlu0 %5517, %v5786_v22  }
  0xb8   :  { %v5978_v28 = vpop.permute.xlu2 %143 }
  0xb9   :  { %v5858_v42 = vpop.permute.xlu0 %313  ;;  %vm1227_vm5 = vcmp.eq.s32.totalorder %v5872_v45, %v5978_v28 }
  0xba   :  { %9323 = vst [vmem:[#allocation10_spill] sm:$0xff] %v5858_v42 }
  0xbe   :  { %234 = vperm.xlu2 %5425, %v5783_v21   ;;  %228 = vperm.xlu1 %5424, %v5783_v21  }
  0xbf   :  { %5522 = vset.pattern.permute.xlu0 %v5683_v2 }
  0xc0   :  { %v5964_v0 = vpop.permute.xlu1 %119 }
  0xc1   :  { %v5869_v44 = vpop.permute.xlu0 %798  ;;  %vm1223_vm11 = vcmp.eq.s32.totalorder %v5872_v45, %v5964_v0 }
  0xc2   :  { %9324 = vst [vmem:[#allocation11_spill] sm:$0xff] %v5869_v44  ;;  %v1415_v10 = vsel %vm1223_vm11, 1.0, %v9338_v38 }
  0xc6   :  { %5427 = vset.pattern.permute.xlu2 %v5680_v1  ;;  %5426 = vset.pattern.permute.xlu1 %v5760_v17 }
  0xc7   :  { %465 = vperm.xlu0 %5522, %v5864_v43  }
  0xc8   :  { %v5987_v32 = vpop.permute.xlu2 %156 }
  0xc9   :  { %vm1229_vm9 = vcmp.eq.s32.totalorder %v5872_v45, %v5987_v32 }
  0xce   :  { %247 = vperm.xlu2 %5427, %v5712_v9   ;;  %240 = vperm.xlu1 %5426, %v5783_v21  }
  0xcf   :  { %950 = vperm.xlu0 %5522, %v5877_v46  }
  0xd1   :  { %v54_v51 = vpop.permute.xlu0 %53 }
  0xd2   :  { %vm1212_vm1 = vcmp.eq.s32.totalorder %v5872_v45, %v54_v51 }
  0xd3   :  { %v1404_v52 = vsel %vm1212_vm1, 1.0, %v9261_v47 }
  0xd4   :  { %v1596_v54 = vpack.c.bf16 %v1404_v52, %v1404_v52  ;;  %v1986_v52 = vunpack.c.l.b16 %v1602_v49 }
  0xd6   :  { %v1980_v55 = vunpack.c.l.b16 %v1596_v54  ;;  %5429 = vset.pattern.permute.xlu2 %v5709_v8  ;;  %5428 = vset.pattern.permute.xlu1 %v5686_v3 }
  0xd7   :  { %5527 = vset.pattern.permute.xlu0 %v5739_v14 }
  0xd8   :  { %v2172_v57 = vpack.c.b16 %v1981_v53, %v1980_v55  ;;  %v1987_v53 = vunpack.c.l.b16 %v1603_v50  ;;  %v5927_v55 = vperm.slane %v5697_v5, 5 }
  0xd9   :  { %v5910_v40 = vpop.permute.xlu0 %344 }
  0xda   :  { %5289 = vmatmul.msk.bf16.vlgmr.msra.gmra.mxu0 %vm2268_vm2, %v2172_v57  ;;  %v2175_v54 = vpack.c.b16 %v1987_v53, %v1986_v52  ;;  %v5935_v57 = vperm.slane %v5780_v20, 2  ;;  %v6019_v52 = vperm.slane %v5697_v5, 6  ;;  %vm1260_vm13 = vcmp.eq.s32.totalorder %v5872_v45, %v5910_v40 }
  0xdb   :  { %v1452_v0 = vsel %vm1260_vm13, 1.0, %v9338_v38 }
  0xdc   :  { %9327 = vst [vmem:[#allocation14_spill] sm:$0xff] %v5935_v57 }
  0xde   :  { %265 = vperm.xlu2 %5429, %v5712_v9   ;;  %259 = vperm.xlu1 %5428, %v5712_v9  }
  0xdf   :  { %495 = vperm.xlu0 %5527, %v5864_v43  }
  0xe1   :  { %v5920_v51 = vpop.permute.xlu0 %829 }
  0xe2   :  { %9326 = vst [vmem:[#allocation13_spill] sm:$0xff] %v5920_v51 }
  0xe6   :  { %5431 = vset.pattern.permute.xlu2 %v5706_v7  ;;  %5430 = vset.pattern.permute.xlu1 %v5683_v2 }
  0xe7   :  { %980 = vperm.xlu0 %5527, %v5877_v46  }
  0xea   :  { %5290 = vmatmul.msk.bf16.gmra.mxu0 %vm2268_vm2, %v2173_v27  ;;  %v5973_v27 = vpop.permute.xlu1 %137 }
  0xeb   :  { %vm1226_vm4 = vcmp.eq.s32.totalorder %v5872_v45, %v5973_v27  ;;  %v1419_v27 = vsel %vm1227_vm5, 1.0, %v9338_v38 }
  0xec   :  { %v1611_v28 = vpack.c.bf16 %v1419_v27, %v1419_v27 }
  0xee   :  { %277 = vperm.xlu2 %5431, %v5712_v9   ;;  %271 = vperm.xlu1 %5430, %v5712_v9  }
  0xef   :  { %5532 = vset.pattern.permute.xlu0 %v5763_v18 }
  0xf1   :  { %v5929_v56 = vpop.permute.xlu0 %374 }
  0xf2   :  { %v5980_v30 = vpop.permute.xlu1 %150  ;;  %vm1265_vm6 = vcmp.eq.s32.totalorder %v5872_v45, %v5929_v56 }
  0xf3   :  { %vm1228_vm8 = vcmp.eq.s32.totalorder %v5872_v45, %v5980_v30  ;;  %v6172_v30 = vld [vmem:[%s9258_s1 + $0x8] sm:$0xff] }
  0xf4   :  { %v1420_v27 = vsel %vm1228_vm8, 1.0, %v9338_v38 }
  0xf5   :  { %v1612_v32 = vpack.c.bf16 %v1420_v27, %v1420_v27 }
  0xf6   :  { %5433 = vset.pattern.permute.xlu2 %v5806_v24  ;;  %5432 = vset.pattern.permute.xlu1 %v5724_v11 }
  0xf7   :  { %525 = vperm.xlu0 %5532, %v5864_v43  }
  0xf9   :  { %v5940_v58 = vpop.permute.xlu0 %859 }
  0xfa   :  { %5291 = vmatmul.msk.bf16.gmra.mxu0 %vm2268_vm2, %v2174_v36  ;;  %9328 = vst [vmem:[#allocation15_spill] sm:$0xff] %v5940_v58  ;;  %v5989_v33 = vpop.permute.xlu1 %168 }
  0xfe   :  { %295 = vperm.xlu2 %5433, %v5712_v9   ;;  %289 = vperm.xlu1 %5432, %v5712_v9  }
  0xff   :  { %1010 = vperm.xlu0 %5532, %v5877_v46  }
 0x102   :  { %v5998_v35 = vpop.permute.xlu1 %180 }
 0x106   :  { %5435 = vset.pattern.permute.xlu2 %v5736_v13  ;;  %5434 = vset.pattern.permute.xlu1 %v5739_v14 }
 0x107   :  { %5537 = vset.pattern.permute.xlu0 %v5709_v8 }
 0x109   :  { %v5945_v59 = vpop.permute.xlu0 %404 }
 0x10a   :  { %5292 = vmatmul.msk.bf16.gmra.mxu0 %vm2268_vm2, %v2175_v54 }
 0x10e   :  { %307 = vperm.xlu2 %5435, %v5712_v9   ;;  %301 = vperm.xlu1 %5434, %v5712_v9  }
 0x10f   :  { %556 = vperm.xlu0 %5537, %v5927_v55  }
 0x110   :  { %v6007_v41 = vpop.permute.xlu1 %198 }
 0x111   :  { %v5950_v60 = vpop.permute.xlu0 %889 }
 0x112   :  { %9329 = vst [vmem:[#allocation16_spill] sm:$0xff] %v5950_v60 }
 0x116   :  { %5437 = vset.pattern.permute.xlu2 %v5845_v37  ;;  %5436 = vset.pattern.permute.xlu1 %v5751_v16 }
 0x117   :  { %1041 = vperm.xlu0 %5537, %v5935_v57  }
 0x11e   :  { %325 = vperm.xlu2 %5437, %v5712_v9   ;;  %319 = vperm.xlu1 %5436, %v5712_v9  }
 0x11f   :  { %5542 = vset.pattern.permute.xlu0 %v5806_v24 }
 0x120   :  { %v6016_v50 = vpop.permute.xlu1 %210 }
 0x121   :  { %v5957_v62 = vpop.permute.xlu0 %434 }
 0x126   :  { %5439 = vset.pattern.permute.xlu2 %v5760_v17  ;;  %5438 = vset.pattern.permute.xlu1 %v5763_v18 }
 0x127   :  { %101 = vperm.xlu0 %5542, %v5700_v6  }
 0x12e   :  { %337 = vperm.xlu2 %5439, %v5712_v9   ;;  %331 = vperm.xlu1 %5438, %v5712_v9   ;;  %v5969_v9 = vpop.permute.xlu0 %919 }
 0x12f   :  { %586 = vperm.xlu0 %5542, %v5927_v55   ;;  %9330 = vst [vmem:[#allocation17_spill] sm:$0xff] %v5969_v9 }
 0x130   :  { %v6026_v54 = vpop.permute.xlu1 %228 }
 0x136   :  { %5441 = vset.pattern.permute.xlu2 %v5686_v3  ;;  %5440 = vset.pattern.permute.xlu1 %v5689_v4 }
 0x137   :  { %1071 = vperm.xlu0 %5542, %v5935_v57  }
 0x139   :  { %v5982_v31 = vpop.permute.xlu0 %465 }
 0x13e   :  { %356 = vperm.xlu2 %5441, %v5772_v19   ;;  %350 = vperm.xlu1 %5440, %v5772_v19  }
 0x13f   :  { %5547 = vset.pattern.permute.xlu0 %v5845_v37 }
 0x140   :  { %v6038_v9 = vpop.permute.xlu1 %240 }
 0x141   :  { %v5991_v34 = vpop.permute.xlu0 %950 }
 0x142   :  { %9331 = vst [vmem:[#allocation18_spill] sm:$0xff] %v5991_v34 }
 0x146   :  { %5443 = vset.pattern.permute.xlu2 %v5683_v2  ;;  %5442 = vset.pattern.permute.xlu1 %v5709_v8 }
 0x147   :  { %131 = vperm.xlu0 %5547, %v5700_v6   ;;  %v5996_v6 = vpop.permute.xlu2 %174 }
 0x14e   :  { %368 = vperm.xlu2 %5443, %v5772_v19   ;;  %362 = vperm.xlu1 %5442, %v5772_v19  }
 0x14f   :  { %616 = vperm.xlu0 %5547, %v5927_v55   ;;  %v6005_v39 = vpop.permute.xlu2 %186 }
 0x150   :  { %v6047_v60 = vpop.permute.xlu1 %259 }
 0x151   :  { %v6000_v36 = vpop.permute.xlu0 %495 }
 0x156   :  { %5445 = vset.pattern.permute.xlu2 %v5724_v11  ;;  %5444 = vset.pattern.permute.xlu1 %v5727_v12 }
 0x157   :  { %1101 = vperm.xlu0 %5547, %v5935_v57   ;;  %v6014_v49 = vpop.permute.xlu2 %204 }
 0x159   :  { %v6012_v48 = vpop.permute.xlu0 %980 }
 0x15a   :  { %9332 = vst [vmem:[#allocation19_spill] sm:$0xff] %v6012_v48  ;;  %v6031_v48 = vperm.slane %v5780_v20, 3 }
 0x15e   :  { %386 = vperm.xlu2 %5445, %v5772_v19   ;;  %380 = vperm.xlu1 %5444, %v5772_v19  }
 0x15f   :  { %5552 = vset.pattern.permute.xlu0 %v5686_v3  ;;  %v6024_v53 = vpop.permute.xlu2 %216 }
 0x166   :  { %5447 = vset.pattern.permute.xlu2 %v5739_v14  ;;  %5446 = vset.pattern.permute.xlu1 %v5806_v24 }
 0x167   :  { %162 = vperm.xlu0 %5552, %v5783_v21   ;;  %v6036_v5 = vpop.permute.xlu2 %234 }
 0x169   :  { %v6028_v47 = vpop.permute.xlu0 %525 }
 0x16a   :  { %9333 = vst [vmem:[#allocation20_spill] sm:$0xff] %v6028_v47 }
 0x16e   :  { %398 = vperm.xlu2 %5447, %v5772_v19   ;;  %392 = vperm.xlu1 %5446, %v5772_v19  }
 0x16f   :  { %647 = vperm.xlu0 %5552, %v6019_v52   ;;  %v6045_v20 = vpop.permute.xlu2 %247 }
 0x171   :  { %v6040_v34 = vpop.permute.xlu0 %1010 }
 0x172   :  { %9334 = vst [vmem:[#allocation21_spill] sm:$0xff] %v6040_v34  ;;  %v6056_v34 = vpop.permute.xlu1 %271 }
 0x176   :  { %5449 = vset.pattern.permute.xlu2 %v5751_v16  ;;  %5448 = vset.pattern.permute.xlu1 %v5745_v15 }
 0x177   :  { %1132 = vperm.xlu0 %5552, %v6031_v48   ;;  %v6054_v58 = vpop.permute.xlu2 %265 }
 0x17a   :  { %v6065_v46 = vpop.permute.xlu1 %289 }
 0x17b   :  { %9337 = vst [vmem:[#allocation24_spill] sm:$0xff] %v6065_v46 }
 0x17e   :  { %416 = vperm.xlu2 %5449, %v5772_v19   ;;  %410 = vperm.xlu1 %5448, %v5772_v19  }
 0x17f   :  { %5557 = vset.pattern.permute.xlu0 %v5724_v11  ;;  %v6063_v44 = vpop.permute.xlu2 %277 }
 0x181   :  { %v6049_v57 = vpop.permute.xlu0 %556 }
 0x182   :  { %9335 = vst [vmem:[#allocation22_spill] sm:$0xff] %v6049_v57  ;;  %v6075_v22 = vpop.permute.xlu1 %301 }
 0x183   :  { %9340 = vst [vmem:[#allocation26_spill] sm:$0xff] %v6075_v22 }
 0x186   :  { %5451 = vset.pattern.permute.xlu2 %v5763_v18  ;;  %5450 = vset.pattern.permute.xlu1 %v5845_v37 }
 0x187   :  { %192 = vperm.xlu0 %5557, %v5783_v21  }
 0x189   :  { %v6061_v51 = vpop.permute.xlu0 %1041 }
 0x18a   :  { %9336 = vst [vmem:[#allocation23_spill] sm:$0xff] %v6061_v51 }
 0x18e   :  { %428 = vperm.xlu2 %5451, %v5772_v19   ;;  %422 = vperm.xlu1 %5450, %v5772_v19   ;;  %v6073_v19 = vpop.permute.xlu2 %295 }
 0x18f   :  { %677 = vperm.xlu0 %5557, %v6019_v52   ;;  %9339 = vst [vmem:[#allocation25_spill] sm:$0xff] %v6073_v19 }
 0x190   :  { %v6084_v19 = vpop.permute.xlu1 %319 }
 0x191   :  { %9341 = vst [vmem:[#allocation27_spill] sm:$0xff] %v6084_v19  ;;  %v6107_v19 = vpop.f32.mrf.mxu0 }
 0x192   :  { %9344 = vst [vmem:[#allocation30_spill] sm:$0xff] %v6107_v19  ;;  %v1416_v19 = vsel %vm1224_vm15, 1.0, %v9338_v38 }
 0x196   :  { %5453 = vset.pattern.permute.xlu2 %v5689_v4  ;;  %5452 = vset.pattern.permute.xlu1 %v5680_v1  ;;  %v6082_v46 = vpop.permute.xlu2 %307 }
 0x197   :  { %1162 = vperm.xlu0 %5557, %v6031_v48  }
 0x199   :  { %v102_v51 = vpop.permute.xlu0 %101 }
 0x19a   :  { %vm1220_vm10 = vcmp.eq.s32.totalorder %v5872_v45, %v102_v51 }
 0x19b   :  { %v1412_v57 = vsel %vm1220_vm10, 1.0, %v9338_v38 }
 0x19c   :  { %v1604_v42 = vpack.c.bf16 %v1412_v57, %v1412_v57 }
 0x19e   :  { %v1988_v47 = vunpack.c.l.b16 %v1604_v42  ;;  %447 = vperm.xlu2 %5453, %v5864_v43   ;;  %441 = vperm.xlu1 %5452, %v5864_v43   ;;  %v1414_v42 = vsel %vm1222_vm12, 1.0, %v9338_v38  ;;  %v6098_v51 = vpop.permute.xlu2 %325  ;;  %vm3238_vm12 = vcmask 261120  }
 0x19f   :  { %5562 = vset.pattern.permute.xlu0 %v5751_v16 }
 0x1a0   :  { %v2176_v22 = vpack.c.b16 %v1989_v61, %v1988_v47  ;;  %v1607_v47 = vpack.c.bf16 %v1415_v10, %v1415_v10  ;;  %v6100_v57 = vpop.permute.xlu1 %331 }
 0x1a1   :  { %v6092_v26 = vpop.permute.xlu0 %586  ;;  %9343 = vst [vmem:[#allocation29_spill] sm:$0xff] %v6100_v57 }
 0x1a2   :  { %5293 = vmatmul.msk.bf16.gmra.mxu0 %vm2268_vm2, %v2176_v22  ;;  %9342 = vst [vmem:[#allocation28_spill] sm:$0xff] %v6092_v26  ;;  %v1606_v22 = vpack.c.bf16 %v1414_v42, %v1414_v42  ;;  %v1991_v63 = vunpack.c.l.b16 %v1607_v47  ;;  %v1644_v26 = vpack.c.bf16 %v1452_v0, %v1452_v0 }
 0x1a4   :  { %v1990_v61 = vunpack.c.l.b16 %v1606_v22  ;;  %v2028_v47 = vunpack.c.l.b16 %v1644_v26  ;;  %v1608_v26 = vpack.c.bf16 %v1416_v19, %v1416_v19 }
 0x1a6   :  { %5455 = vset.pattern.permute.xlu2 %v5709_v8  ;;  %5454 = vset.pattern.permute.xlu1 %v5686_v3  ;;  %v6112_v10 = vpop.permute.xlu2 %337  ;;  %v2177_v40 = vpack.c.b16 %v1991_v63, %v1990_v61  ;;  %v6123_v61 = vpop.f32.mrf.mxu0 }
 0x1a7   :  { %222 = vperm.xlu0 %5562, %v5783_v21   ;;  %9346 = vst [vmem:[#allocation32_spill] sm:$0xff] %v6112_v10 }
 0x1a9   :  { %v6110_v21 = vpop.permute.xlu0 %1071 }
 0x1aa   :  { %9345 = vst [vmem:[#allocation31_spill] sm:$0xff] %v6110_v21 }
 0x1ae   :  { %459 = vperm.xlu2 %5455, %v5864_v43   ;;  %453 = vperm.xlu1 %5454, %v5864_v43  }
 0x1af   :  { %707 = vperm.xlu0 %5562, %v6019_v52  }
 0x1b0   :  { %v351_v57 = vpop.permute.xlu1 %350 }
 0x1b1   :  { %vm1261_vm14 = vcmp.eq.s32.totalorder %v5872_v45, %v351_v57  ;;  %v357_v57 = vpop.permute.xlu2 %356 }
 0x1b2   :  { %v1453_v42 = vsel %vm1261_vm14, 1.0, %v9338_v38  ;;  %5294 = vmatmul.msk.bf16.gmra.mxu0 %vm2268_vm2, %v2177_v40  ;;  %vm1262_vm1 = vcmp.eq.s32.totalorder %v5872_v45, %v357_v57  ;;  %vm1231_vm14 = vcmp.eq.s32.totalorder %v5872_v45, %v5989_v33 }
 0x1b3   :  { %v1645_v22 = vpack.c.bf16 %v1453_v42, %v1453_v42  ;;  %v1992_v42 = vunpack.c.l.b16 %v1608_v26  ;;  %v1418_v26 = vsel %vm1226_vm4, 1.0, %v9338_v38  ;;  %vm1270_vm4 = vcmp.eq.s32.totalorder %v5872_v45, %v5945_v59 }
 0x1b5   :  { %v2029_v0 = vunpack.c.l.b16 %v1645_v22  ;;  %v1454_v22 = vsel %vm1262_vm1, 1.0, %v9338_v38  ;;  %vm1233_vm1 = vcmp.eq.s32.totalorder %v5872_v45, %v5998_v35 }
 0x1b6   :  { %5457 = vset.pattern.permute.xlu2 %v5727_v12  ;;  %5456 = vset.pattern.permute.xlu1 %v5706_v7  ;;  %v1646_v19 = vpack.c.bf16 %v1454_v22, %v1454_v22  ;;  %v1610_v22 = vpack.c.bf16 %v1418_v26, %v1418_v26 }
 0x1b7   :  { %1192 = vperm.xlu0 %5562, %v6031_v48   ;;  %v2196_v63 = vpack.c.b16 %v2029_v0, %v2028_v47 }
 0x1b9   :  { %v132_v21 = vpop.permute.xlu0 %131  ;;  %5313 = vmatmul.msk.bf16.vlgmr.msra.gmra.mxu1 %vm2268_vm2, %v2196_v63  ;;  %v6138_v63 = vpop.f32.mrf.mxu0 }
 0x1ba   :  { %vm1225_vm0 = vcmp.eq.s32.totalorder %v5872_v45, %v132_v21  ;;  %9347 = vst [vmem:[#allocation33_spill] sm:$0xff] %v6138_v63  ;;  %v1995_v63 = vunpack.c.l.b16 %v1611_v28 }
 0x1bb   :  { %v1417_v23 = vsel %vm1225_vm0, 1.0, %v9338_v38 }
 0x1bc   :  { %v1609_v40 = vpack.c.bf16 %v1417_v23, %v1417_v23  ;;  %v2030_v23 = vunpack.c.l.b16 %v1646_v19  ;;  %v1457_v19 = vsel %vm1265_vm6, 1.0, %v9338_v38 }
 0x1bd   :  { %v1649_v56 = vpack.c.bf16 %v1457_v19, %v1457_v19 }
 0x1be   :  { %v1993_v10 = vunpack.c.l.b16 %v1609_v40  ;;  %477 = vperm.xlu2 %5457, %v5864_v43   ;;  %471 = vperm.xlu1 %5456, %v5864_v43   ;;  %v369_v40 = vpop.permute.xlu2 %368 }
 0x1bf   :  { %5570 = vset.pattern.permute.xlu0 %v5760_v17  ;;  %vm1264_vm7 = vcmp.eq.s32.totalorder %v5872_v45, %v369_v40 }
 0x1c0   :  { %v363_v47 = vpop.permute.xlu1 %362  ;;  %v2178_v0 = vpack.c.b16 %v1993_v10, %v1992_v42 }
 0x1c1   :  { %vm1263_vm3 = vcmp.eq.s32.totalorder %v5872_v45, %v363_v47  ;;  %v6150_v47 = vpop.permute.xlu0 %616 }
 0x1c2   :  { %v1455_v21 = vsel %vm1263_vm3, 1.0, %v9338_v38  ;;  %5295 = vmatmul.msk.bf16.gmra.mxu0 %vm2268_vm2, %v2178_v0  ;;  %v1994_v0 = vunpack.c.l.b16 %v1610_v22  ;;  %vm1232_vm3 = vcmp.eq.s32.totalorder %v5872_v45, %v5996_v6 }
 0x1c3   :  { %v1647_v57 = vpack.c.bf16 %v1455_v21, %v1455_v21  ;;  %v1456_v21 = vsel %vm1264_vm7, 1.0, %v9338_v38  ;;  %vm1234_vm7 = vcmp.eq.s32.totalorder %v5872_v45, %v6005_v39 }
 0x1c4   :  { %v1648_v26 = vpack.c.bf16 %v1456_v21, %v1456_v21 }
 0x1c5   :  { %v2031_v10 = vunpack.c.l.b16 %v1647_v57  ;;  %v6154_v57 = vpop.f32.mrf.mxu0 }
 0x1c6   :  { %5459 = vset.pattern.permute.xlu2 %v5806_v24  ;;  %5458 = vset.pattern.permute.xlu1 %v5724_v11  ;;  %v2032_v40 = vunpack.c.l.b16 %v1648_v26  ;;  %v387_v19 = vpop.permute.xlu2 %386  ;;  %v1996_v26 = vunpack.c.l.b16 %v1612_v32 }
 0x1c7   :  { %v2197_v42 = vpack.c.b16 %v2031_v10, %v2030_v23  ;;  %v2179_v23 = vpack.c.b16 %v1995_v63, %v1994_v0  ;;  %v2033_v10 = vunpack.c.l.b16 %v1649_v56  ;;  %v1421_v63 = vsel %vm1229_vm9, 1.0, %v9338_v38 }
 0x1c8   :  { %v1613_v21 = vpack.c.bf16 %v1421_v63, %v1421_v63  ;;  %v3047_v56 = vmul.f32 %v6123_v61, %v6172_v30  ;;  %vm1267_vm11 = vcmp.eq.s32.totalorder %v5872_v45, %v387_v19  ;;  %v23_v61 = vld [vmem:[%s9258_s1 + $0x28] sm:$0xff] }
 0x1c9   :  { %5314 = vmatmul.msk.bf16.gmra.mxu1 %vm2268_vm2, %v2197_v42  ;;  %v6164_v42 = vpop.permute.xlu0 %1101  ;;  %v2198_v0 = vpack.c.b16 %v2033_v10, %v2032_v40 }
 0x1ca   :  { %9348 = vst [vmem:[#allocation34_spill] sm:$0xff] %v6164_v42  ;;  %v1997_v42 = vunpack.c.l.b16 %v1613_v21  ;;  %v3242_v10 = vsel %vm3238_vm12, %v3047_v56, 0.0 }
 0x1cd   :  { %v6174_v28 = vpop.f32.mrf.mxu0 }
 0x1ce   :  { %489 = vperm.xlu2 %5459, %v5864_v43   ;;  %483 = vperm.xlu1 %5458, %v5864_v43   ;;  %9349 = vst [vmem:[#allocation35_spill] sm:$0xff] %v6174_v28  ;;  %v1459_v28 = vsel %vm1267_vm11, 1.0, %v9338_v38  ;;  %vm1237_vm11 = vcmp.eq.s32.totalorder %v5872_v45, %v6014_v49 }
 0x1d0   :  { %v381_v22 = vpop.permute.xlu1 %380 }
 0x1d1   :  { %vm1266_vm10 = vcmp.eq.s32.totalorder %v5872_v45, %v381_v22  ;;  %v2180_v22 = vpack.c.b16 %v1997_v42, %v1996_v26 }
 0x1d2   :  { %5296 = vmatmul.msk.bf16.gmra.mxu0 %vm2268_vm2, %v2179_v23  ;;  %v1458_v23 = vsel %vm1266_vm10, 1.0, %v9338_v38  ;;  %vm1236_vm10 = vcmp.eq.s32.totalorder %v5872_v45, %v6007_v41 }
 0x1d3   :  { %v1650_v40 = vpack.c.bf16 %v1458_v23, %v1458_v23  ;;  %v399_v23 = vpop.permute.xlu2 %398 }
 0x1d4   :  { %vm1269_vm0 = vcmp.eq.s32.totalorder %v5872_v45, %v399_v23 }
 0x1d5   :  { %v2578_v63 = vpop.f32.mrf.mxu0  ;;  %v2034_v32 = vunpack.c.l.b16 %v1650_v40 }
 0x1d6   :  { %5461 = vset.pattern.permute.xlu2 %v5745_v15  ;;  %5460 = vset.pattern.permute.xlu1 %v5736_v13  ;;  %v3051_v19 = vmul.f32 %v2578_v63, %v23_v61 }
 0x1d9   :  { %5315 = vmatmul.msk.bf16.gmra.mxu1 %vm2268_vm2, %v2198_v0  ;;  %v163_v27 = vpop.permute.xlu0 %162  ;;  %v1651_v0 = vpack.c.bf16 %v1459_v28, %v1459_v28  ;;  %v1423_v28 = vsel %vm1231_vm14, 1.0, %v9338_v38 }
 0x1da   :  { %vm1230_vm13 = vcmp.eq.s32.totalorder %v5872_v45, %v163_v27  ;;  %v3254_v27 = vsel %vm3238_vm12, %v3051_v19, 0.0  ;;  %v1615_v33 = vpack.c.bf16 %v1423_v28, %v1423_v28 }
 0x1db   :  { %v2035_v21 = vunpack.c.l.b16 %v1651_v0  ;;  %v1422_v56 = vsel %vm1230_vm13, 1.0, %v9338_v38  ;;  %v1461_v0 = vsel %vm1269_vm0, 1.0, %v9338_v38  ;;  %vm1275_vm13 = vcmp.eq.s32.totalorder %v5872_v45, %v5957_v62 }
 0x1dc   :  { %v1999_v63 = vunpack.c.l.b16 %v1615_v33  ;;  %vm1239_vm0 = vcmp.eq.s32.totalorder %v5872_v45, %v6024_v53 }
 0x1dd   :  { %v2199_v26 = vpack.c.b16 %v2035_v21, %v2034_v32  ;;  %v1653_v21 = vpack.c.bf16 %v1461_v0, %v1461_v0 }
 0x1de   :  { %507 = vperm.xlu2 %5461, %v5864_v43   ;;  %501 = vperm.xlu1 %5460, %v5864_v43  }
 0x1df   :  { %v2037_v28 = vunpack.c.l.b16 %v1653_v21 }
 0x1e0   :  { %v393_v42 = vpop.permute.xlu1 %392 }
 0x1e1   :  { %3243 = vadd.xlane.f32.xlu0 %v3242_v10  ;;  %v1614_v10 = vpack.c.bf16 %v1422_v56, %v1422_v56  ;;  %vm1268_vm15 = vcmp.eq.s32.totalorder %v5872_v45, %v393_v42  ;;  %v6201_v40 = vpop.permute.xlu0 %647  ;;  %v1425_v42 = vsel %vm1233_vm1, 1.0, %v9338_v38 }
 0x1e2   :  { %5297 = vmatmul.msk.bf16.gmra.mxu0 %vm2268_vm2, %v2180_v22  ;;  %v1460_v61 = vsel %vm1268_vm15, 1.0, %v9338_v38  ;;  %v1617_v35 = vpack.c.bf16 %v1425_v42, %v1425_v42  ;;  %vm1238_vm15 = vcmp.eq.s32.totalorder %v5872_v45, %v6016_v50  ;;  %v1431_v50 = vsel %vm1239_vm0, 1.0, %v9338_v38 }
 0x1e3   :  { %v1998_v22 = vunpack.c.l.b16 %v1614_v10  ;;  %v1652_v32 = vpack.c.bf16 %v1460_v61, %v1460_v61  ;;  %v1424_v10 = vsel %vm1232_vm3, 1.0, %v9338_v38  ;;  %v1623_v53 = vpack.c.bf16 %v1431_v50, %v1431_v50 }
 0x1e4   :  { %v1616_v6 = vpack.c.bf16 %v1424_v10, %v1424_v10  ;;  %v2001_v33 = vunpack.c.l.b16 %v1617_v35  ;;  %v417_v10 = vpop.permute.xlu2 %416 }
 0x1e5   :  { %v2181_v19 = vpack.c.b16 %v1999_v63, %v1998_v22  ;;  %v2036_v56 = vunpack.c.l.b16 %v1652_v32  ;;  %v1462_v22 = vsel %vm1270_vm4, 1.0, %v9338_v38  ;;  %vm1272_vm9 = vcmp.eq.s32.totalorder %v5872_v45, %v417_v10 }
 0x1e6   :  { %5463 = vset.pattern.permute.xlu2 %v5845_v37  ;;  %5462 = vset.pattern.permute.xlu1 %v5751_v16  ;;  %v2000_v63 = vunpack.c.l.b16 %v1616_v6  ;;  %v1654_v0 = vpack.c.bf16 %v1462_v22, %v1462_v22 }
 0x1e8   :  { %v2182_v21 = vpack.c.b16 %v2001_v33, %v2000_v63  ;;  %v2038_v59 = vunpack.c.l.b16 %v1654_v0  ;;  %v6238_v33 = vpop.f32.mrf.mxu0 }
 0x1e9   :  { %3255 = vadd.xlane.f32.xlu0 %v3254_v27  ;;  %5316 = vmatmul.msk.bf16.gmra.mxu1 %vm2268_vm2, %v2199_v26  ;;  %v6213_v26 = vpop.permute.xlu0 %1132  ;;  %v2200_v27 = vpack.c.b16 %v2037_v28, %v2036_v56 }
 0x1ea   :  { %9350 = vst [vmem:[#allocation36_spill] sm:$0xff] %v6213_v26 }
 0x1ee   :  { %519 = vperm.xlu2 %5463, %v5864_v43   ;;  %513 = vperm.xlu1 %5462, %v5864_v43  }
 0x1f0   :  { %v411_v23 = vpop.permute.xlu1 %410 }
 0x1f1   :  { %vm1271_vm5 = vcmp.eq.s32.totalorder %v5872_v45, %v411_v23 }
 0x1f2   :  { %5298 = vmatmul.msk.bf16.gmra.mxu0 %vm2268_vm2, %v2181_v19  ;;  %v1463_v61 = vsel %vm1271_vm5, 1.0, %v9338_v38  ;;  %vm1241_vm5 = vcmp.eq.s32.totalorder %v5872_v45, %v6026_v54 }
 0x1f3   :  { %v1655_v32 = vpack.c.bf16 %v1463_v61, %v1463_v61  ;;  %v1464_v61 = vsel %vm1272_vm9, 1.0, %v9338_v38  ;;  %vm1242_vm9 = vcmp.eq.s32.totalorder %v5872_v45, %v6036_v5 }
 0x1f5   :  { %v2039_v56 = vunpack.c.l.b16 %v1655_v32  ;;  %v1656_v32 = vpack.c.bf16 %v1464_v61, %v1464_v61 }
 0x1f6   :  { %5465 = vset.pattern.permute.xlu2 %v5680_v1  ;;  %5464 = vset.pattern.permute.xlu1 %v5760_v17 }
 0x1f7   :  { %v2201_v23 = vpack.c.b16 %v2039_v56, %v2038_v59  ;;  %v2040_v59 = vunpack.c.l.b16 %v1656_v32  ;;  %v429_v56 = vpop.permute.xlu2 %428 }
 0x1f8   :  { %vm1274_vm14 = vcmp.eq.s32.totalorder %v5872_v45, %v429_v56 }
 0x1f9   :  { %5317 = vmatmul.msk.bf16.gmra.mxu1 %vm2268_vm2, %v2200_v27  ;;  %v193_v19 = vpop.permute.xlu0 %192 }
 0x1fa   :  { %vm1235_vm6 = vcmp.eq.s32.totalorder %v5872_v45, %v193_v19 }
 0x1fb   :  { %v1427_v42 = vsel %vm1235_vm6, 1.0, %v9338_v38 }
 0x1fc   :  { %v1619_v27 = vpack.c.bf16 %v1427_v42, %v1427_v42  ;;  %v1429_v42 = vsel %vm1237_vm11, 1.0, %v9338_v38 }
 0x1fd   :  { %v1621_v49 = vpack.c.bf16 %v1429_v42, %v1429_v42 }
 0x1fe   :  { %538 = vperm.xlu2 %5465, %v5927_v55   ;;  %531 = vperm.xlu1 %5464, %v5864_v43   ;;  %v1426_v43 = vsel %vm1234_vm7, 1.0, %v9338_v38  ;;  %v2003_v39 = vunpack.c.l.b16 %v1619_v27  ;;  %v1467_v27 = vsel %vm1275_vm13, 1.0, %v9338_v38  ;;  %vm1245_vm13 = vcmp.eq.s32.totalorder %v5872_v45, %v5808_v25 }
 0x1ff   :  { %v1618_v35 = vpack.c.bf16 %v1426_v43, %v1426_v43  ;;  %v1659_v62 = vpack.c.bf16 %v1467_v27, %v1467_v27 }
 0x200   :  { %v423_v28 = vpop.permute.xlu1 %422 }
 0x201   :  { %vm1273_vm8 = vcmp.eq.s32.totalorder %v5872_v45, %v423_v28  ;;  %v2002_v22 = vunpack.c.l.b16 %v1618_v35  ;;  %v6252_v28 = vpop.f32.mrf.mxu0  ;;  %v1466_v35 = vsel %vm1274_vm14, 1.0, %v9338_v38  ;;  %vm1244_vm14 = vcmp.eq.s32.totalorder %v5872_v45, %v6045_v20 }
 0x202   :  { %5299 = vmatmul.msk.bf16.gmra.mxu0 %vm2268_vm2, %v2182_v21  ;;  %v1465_v6 = vsel %vm1273_vm8, 1.0, %v9338_v38  ;;  %v1428_v21 = vsel %vm1236_vm10, 1.0, %v9338_v38  ;;  %vm1243_vm8 = vcmp.eq.s32.totalorder %v5872_v45, %v6038_v9  ;;  %vm1280_vm10 = vcmp.eq.s32.totalorder %v5872_v45, %v5982_v31 }
 0x203   :  { %v1657_v63 = vpack.c.bf16 %v1465_v6, %v1465_v6  ;;  %v2183_v0 = vpack.c.b16 %v2003_v39, %v2002_v22  ;;  %v1620_v41 = vpack.c.bf16 %v1428_v21, %v1428_v21  ;;  %v26_v39 = vld [vmem:[%s9258_s1 + $0x40] sm:$0xff]  ;;  %v2005_v6 = vunpack.c.l.b16 %v1621_v49 }
 0x204   :  { %v1658_v22 = vpack.c.bf16 %v1466_v35, %v1466_v35 }
 0x205   :  { %v2041_v19 = vunpack.c.l.b16 %v1657_v63  ;;  %v2004_v10 = vunpack.c.l.b16 %v1620_v41 }
 0x206   :  { %5467 = vset.pattern.permute.xlu2 %v5686_v3  ;;  %5466 = vset.pattern.permute.xlu1 %v5689_v4  ;;  %v2042_v21 = vunpack.c.l.b16 %v1658_v22 }
 0x207   :  { %v2202_v43 = vpack.c.b16 %v2041_v19, %v2040_v59  ;;  %v2184_v63 = vpack.c.b16 %v2005_v6, %v2004_v10  ;;  %v2043_v19 = vunpack.c.l.b16 %v1659_v62  ;;  %v1430_v59 = vsel %vm1238_vm15, 1.0, %v9338_v38  ;;  %v448_v10 = vpop.permute.xlu2 %447 }
 0x208   :  { %v1622_v49 = vpack.c.bf16 %v1430_v59, %v1430_v59  ;;  %vm1277_vm3 = vcmp.eq.s32.totalorder %v5872_v45, %v448_v10  ;;  %v29_v59 = vld [vmem:[%s9258_s1 + $0x58] sm:$0xff] }
 0x209   :  { %5318 = vmatmul.msk.bf16.gmra.mxu1 %vm2268_vm2, %v2201_v23  ;;  %v6258_v23 = vpop.permute.xlu0 %677  ;;  %v2203_v41 = vpack.c.b16 %v2043_v19, %v2042_v21  ;;  %v1469_v6 = vsel %vm1277_vm3, 1.0, %v9338_v38  ;;  %vm1247_vm3 = vcmp.eq.s32.totalorder %v5872_v45, %v6054_v58 }
 0x20a   :  { %v2006_v27 = vunpack.c.l.b16 %v1622_v49 }
 0x20e   :  { %550 = vperm.xlu2 %5467, %v5927_v55   ;;  %544 = vperm.xlu1 %5466, %v5927_v55  }
 0x210   :  { %v442_v42 = vpop.permute.xlu1 %441 }
 0x211   :  { %v6274_v56 = vpop.permute.xlu0 %1162  ;;  %vm1276_vm1 = vcmp.eq.s32.totalorder %v5872_v45, %v442_v42 }
 0x212   :  { %5300 = vmatmul.msk.bf16.gmra.mxu0 %vm2268_vm2, %v2183_v0  ;;  %9351 = vst [vmem:[#allocation37_spill] sm:$0xff] %v6274_v56  ;;  %v1468_v35 = vsel %vm1276_vm1, 1.0, %v9338_v38  ;;  %vm1246_vm1 = vcmp.eq.s32.totalorder %v5872_v45, %v6047_v60 }
 0x213   :  { %v1660_v62 = vpack.c.bf16 %v1468_v35, %v1468_v35 }
 0x216   :  { %5469 = vset.pattern.permute.xlu2 %v5706_v7  ;;  %5468 = vset.pattern.permute.xlu1 %v5683_v2 }
 0x219   :  { %5319 = vmatmul.msk.bf16.gmra.mxu1 %vm2268_vm2, %v2202_v43  ;;  %v223_v22 = vpop.permute.xlu0 %222 }
 0x21a   :  { %vm1240_vm4 = vcmp.eq.s32.totalorder %v5872_v45, %v223_v22 }
 0x21b   :  { %v1432_v21 = vsel %vm1240_vm4, 1.0, %v9338_v38  ;;  %vm1285_vm4 = vcmp.eq.s32.totalorder %v5872_v45, %v6000_v36 }
 0x21c   :  { %v1624_v54 = vpack.c.bf16 %v1432_v21, %v1432_v21 }
 0x21e   :  { %568 = vperm.xlu2 %5469, %v5927_v55   ;;  %562 = vperm.xlu1 %5468, %v5927_v55  }
 0x21f   :  { %v2586_v61 = vpop.f32.mrf.mxu0 }
 0x220   :  { %v3054_v0 = vmul.f32 %v2586_v61, %v26_v39  ;;  %v2007_v39 = vunpack.c.l.b16 %v1623_v53  ;;  %v454_v42 = vpop.permute.xlu1 %453  ;;  %v460_v53 = vpop.permute.xlu2 %459 }
 0x221   :  { %vm1278_vm6 = vcmp.eq.s32.totalorder %v5872_v45, %v454_v42  ;;  %vm1279_vm7 = vcmp.eq.s32.totalorder %v5872_v45, %v460_v53 }
 0x222   :  { %5301 = vmatmul.msk.bf16.gmra.mxu0 %vm2268_vm2, %v2184_v63  ;;  %v3263_v32 = vsel %vm3238_vm12, %v3054_v0, 0.0  ;;  %v2185_v63 = vpack.c.b16 %v2007_v39, %v2006_v27  ;;  %v1661_v0 = vpack.c.bf16 %v1469_v6, %v1469_v6  ;;  %v2008_v6 = vunpack.c.l.b16 %v1624_v54 }
 0x223   :  { %3264 = vadd.xlane.f32.xlu0 %v3263_v32  ;;  %v2044_v32 = vunpack.c.l.b16 %v1660_v62  ;;  %v1470_v62 = vsel %vm1278_vm6, 1.0, %v9338_v38  ;;  %v1434_v54 = vsel %vm1242_vm9, 1.0, %v9338_v38  ;;  %vm1248_vm6 = vcmp.eq.s32.totalorder %v5872_v45, %v6056_v34 }
 0x224   :  { %v2045_v19 = vunpack.c.l.b16 %v1661_v0  ;;  %v1626_v5 = vpack.c.bf16 %v1434_v54, %v1434_v54 }
 0x226   :  { %5471 = vset.pattern.permute.xlu2 %v5724_v11  ;;  %5470 = vset.pattern.permute.xlu1 %v5727_v12  ;;  %v2204_v10 = vpack.c.b16 %v2045_v19, %v2044_v32  ;;  %v1662_v32 = vpack.c.bf16 %v1470_v62, %v1470_v62 }
 0x227   :  { %v6279_v43 = vpop.f32.mrf.mxu0 }
 0x228   :  { %v2046_v42 = vunpack.c.l.b16 %v1662_v32 }
 0x229   :  { %5320 = vmatmul.msk.bf16.gmra.mxu1 %vm2268_vm2, %v2203_v41  ;;  %v1433_v41 = vsel %vm1241_vm5, 1.0, %v9338_v38 }
 0x22a   :  { %v1625_v35 = vpack.c.bf16 %v1433_v41, %v1433_v41  ;;  %v1435_v41 = vsel %vm1243_vm8, 1.0, %v9338_v38 }
 0x22c   :  { %v2009_v22 = vunpack.c.l.b16 %v1625_v35  ;;  %v1627_v35 = vpack.c.bf16 %v1435_v41, %v1435_v41 }
 0x22e   :  { %580 = vperm.xlu2 %5471, %v5927_v55   ;;  %574 = vperm.xlu1 %5470, %v5927_v55   ;;  %v2186_v21 = vpack.c.b16 %v2009_v22, %v2008_v6  ;;  %v1472_v6 = vsel %vm1280_vm10, 1.0, %v9338_v38  ;;  %v32_v22 = vld [vmem:[%s9258_s1 + $0x70] sm:$0xff]  ;;  %vm1250_vm10 = vcmp.eq.s32.totalorder %v5872_v45, %v5827_v29 }
 0x22f   :  { %v6288_v61 = vpop.f32.mrf.mxu0  ;;  %v1664_v32 = vpack.c.bf16 %v1472_v6, %v1472_v6 }
 0x232   :  { %5302 = vmatmul.msk.bf16.gmra.mxu0 %vm2268_vm2, %v2185_v63  ;;  %v1471_v63 = vsel %vm1279_vm7, 1.0, %v9338_v38  ;;  %vm1249_vm7 = vcmp.eq.s32.totalorder %v5872_v45, %v6063_v44 }
 0x236   :  { %5473 = vset.pattern.permute.xlu2 %v5736_v13  ;;  %5472 = vset.pattern.permute.xlu1 %v5739_v14  ;;  %v6300_v50 = vpop.f32.mrf.mxu1 }
 0x237   :  { %9352 = vst [vmem:[#allocation38_spill] sm:$0xff] %v6300_v50  ;;  %v2593_v49 = vpop.f32.mrf.mxu0 }
 0x238   :  { %v3057_v27 = vmul.f32 %v2593_v49, %v29_v59  ;;  %v1663_v59 = vpack.c.bf16 %v1471_v63, %v1471_v63  ;;  %v2010_v63 = vunpack.c.l.b16 %v1626_v5 }
 0x239   :  { %5321 = vmatmul.msk.bf16.gmra.mxu1 %vm2268_vm2, %v2204_v10  ;;  %v472_v10 = vpop.permute.xlu1 %471 }
 0x23a   :  { %v3272_v39 = vsel %vm3238_vm12, %v3057_v27, 0.0  ;;  %v2047_v49 = vunpack.c.l.b16 %v1663_v59  ;;  %vm1281_vm11 = vcmp.eq.s32.totalorder %v5872_v45, %v472_v10  ;;  %v2048_v10 = vunpack.c.l.b16 %v1664_v32 }
 0x23b   :  { %3273 = vadd.xlane.f32.xlu0 %v3272_v39  ;;  %v2011_v39 = vunpack.c.l.b16 %v1627_v35  ;;  %v1473_v62 = vsel %vm1281_vm11, 1.0, %v9338_v38  ;;  %v1436_v35 = vsel %vm1244_vm14, 1.0, %v9338_v38 }
 0x23c   :  { %v2205_v9 = vpack.c.b16 %v2047_v49, %v2046_v42 }
 0x23d   :  { %v2187_v42 = vpack.c.b16 %v2011_v39, %v2010_v63 }
 0x23e   :  { %598 = vperm.xlu2 %5473, %v5927_v55   ;;  %592 = vperm.xlu1 %5472, %v5927_v55   ;;  %v6311_v0 = vpop.f32.mrf.mxu1 }
 0x23f   :  { %9353 = vst [vmem:[#allocation39_spill] sm:$0xff] %v6311_v0  ;;  %v6313_v19 = vpop.f32.mrf.mxu0 }
 0x241   :  { %v484_v5 = vpop.permute.xlu1 %483 }
 0x242   :  { %5303 = vmatmul.msk.bf16.gmra.mxu0 %vm2268_vm2, %v2186_v21  ;;  %v1665_v21 = vpack.c.bf16 %v1473_v62, %v1473_v62  ;;  %v1628_v62 = vpack.c.bf16 %v1436_v35, %v1436_v35  ;;  %vm1283_vm15 = vcmp.eq.s32.totalorder %v5872_v45, %v484_v5  ;;  %v1438_v35 = vsel %vm1246_vm1, 1.0, %v9338_v38 }
 0x244   :  { %v2049_v54 = vunpack.c.l.b16 %v1665_v21  ;;  %v2012_v32 = vunpack.c.l.b16 %v1628_v62  ;;  %v1475_v21 = vsel %vm1283_vm15, 1.0, %v9338_v38 }
 0x246   :  { %5475 = vset.pattern.permute.xlu2 %v5751_v16  ;;  %5474 = vset.pattern.permute.xlu1 %v5745_v15  ;;  %v6323_v53 = vpop.f32.mrf.mxu1  ;;  %v2206_v20 = vpack.c.b16 %v2049_v54, %v2048_v10 }
 0x247   :  { %v6326_v27 = vpop.f32.mrf.mxu0 }
 0x249   :  { %5322 = vmatmul.msk.bf16.gmra.mxu1 %vm2268_vm2, %v2205_v9  ;;  %v1437_v9 = vsel %vm1245_vm13, 1.0, %v9338_v38 }
 0x24a   :  { %v1629_v6 = vpack.c.bf16 %v1437_v9, %v1437_v9 }
 0x24c   :  { %v2013_v63 = vunpack.c.l.b16 %v1629_v6  ;;  %v1439_v6 = vsel %vm1247_vm3, 1.0, %v9338_v38 }
 0x24d   :  { %v1631_v58 = vpack.c.bf16 %v1439_v6, %v1439_v6  ;;  %v1440_v6 = vsel %vm1248_vm6, 1.0, %v9338_v38 }
 0x24e   :  { %610 = vperm.xlu2 %5475, %v5927_v55   ;;  %604 = vperm.xlu1 %5474, %v5927_v55   ;;  %v6339_v31 = vpop.f32.mrf.mxu1  ;;  %v2188_v10 = vpack.c.b16 %v2013_v63, %v2012_v32 }
 0x24f   :  { %9354 = vst [vmem:[#allocation40_spill] sm:$0xff] %v6339_v31  ;;  %v2601_v59 = vpop.f32.mrf.mxu0 }
 0x250   :  { %v3060_v41 = vmul.f32 %v2601_v59, %v32_v22  ;;  %v478_v22 = vpop.permute.xlu2 %477 }
 0x251   :  { %vm1282_vm0 = vcmp.eq.s32.totalorder %v5872_v45, %v478_v22  ;;  %v1630_v22 = vpack.c.bf16 %v1438_v35, %v1438_v35 }
 0x252   :  { %5304 = vmatmul.msk.bf16.gmra.mxu0 %vm2268_vm2, %v2187_v42  ;;  %v3281_v49 = vsel %vm3238_vm12, %v3060_v41, 0.0  ;;  %v1474_v59 = vsel %vm1282_vm0, 1.0, %v9338_v38  ;;  %v1667_v41 = vpack.c.bf16 %v1475_v21, %v1475_v21 }
 0x253   :  { %3282 = vadd.xlane.f32.xlu0 %v3281_v49  ;;  %v1666_v54 = vpack.c.bf16 %v1474_v59, %v1474_v59  ;;  %v2014_v21 = vunpack.c.l.b16 %v1630_v22  ;;  %v1477_v59 = vsel %vm1285_vm4, 1.0, %v9338_v38  ;;  %v1441_v22 = vsel %vm1249_vm7, 1.0, %v9338_v38 }
 0x254   :  { %v2051_v9 = vunpack.c.l.b16 %v1667_v41  ;;  %v1669_v36 = vpack.c.bf16 %v1477_v59, %v1477_v59  ;;  %v1633_v44 = vpack.c.bf16 %v1441_v22, %v1441_v22  ;;  %v9363_v22 = vld [vmem:[#allocation24_spill] sm:$0xff] }
 0x255   :  { %v2050_v5 = vunpack.c.l.b16 %v1666_v54  ;;  %vm1251_vm11 = vcmp.eq.s32.totalorder %v5872_v45, %v9363_v22 }
 0x256   :  { %5477 = vset.pattern.permute.xlu2 %v5760_v17  ;;  %5476 = vset.pattern.permute.xlu1 %v5763_v18  ;;  %v6351_v25 = vpop.f32.mrf.mxu1 }
 0x257   :  { %9355 = vst [vmem:[#allocation41_spill] sm:$0xff] %v6351_v25  ;;  %v6353_v39 = vpop.f32.mrf.mxu0  ;;  %v2207_v60 = vpack.c.b16 %v2051_v9, %v2050_v5  ;;  %v2053_v5 = vunpack.c.l.b16 %v1669_v36 }
 0x258   :  { %9356 = vst [vmem:[#allocation42_spill] sm:$0xff] %v6353_v39 }
 0x259   :  { %5323 = vmatmul.msk.bf16.gmra.mxu1 %vm2268_vm2, %v2206_v20 }
 0x25e   :  { %628 = vperm.xlu2 %5477, %v5927_v55   ;;  %622 = vperm.xlu1 %5476, %v5927_v55   ;;  %v6362_v42 = vpop.f32.mrf.mxu1  ;;  %v490_v55 = vpop.permute.xlu2 %489 }
 0x25f   :  { %v6364_v49 = vpop.f32.mrf.mxu0  ;;  %vm1284_vm5 = vcmp.eq.s32.totalorder %v5872_v45, %v490_v55 }
 0x260   :  { %9357 = vst [vmem:[#allocation43_spill] sm:$0xff] %v6364_v49  ;;  %v1476_v41 = vsel %vm1284_vm5, 1.0, %v9338_v38  ;;  %vm1254_vm5 = vcmp.eq.s32.totalorder %v5872_v45, %v6082_v46 }
 0x261   :  { %v1668_v54 = vpack.c.bf16 %v1476_v41, %v1476_v41  ;;  %v2017_v41 = vunpack.c.l.b16 %v1633_v44  ;;  %v1443_v44 = vsel %vm1251_vm11, 1.0, %v9338_v38 }
 0x262   :  { %5305 = vmatmul.msk.bf16.gmra.mxu0 %vm2268_vm2, %v2188_v10  ;;  %v2015_v10 = vunpack.c.l.b16 %v1631_v58  ;;  %v1632_v58 = vpack.c.bf16 %v1440_v6, %v1440_v6 }
 0x263   :  { %v2052_v55 = vunpack.c.l.b16 %v1668_v54  ;;  %v6416_v54 = vld [vmem:[%s9258_s1 + $0x20] sm:$0xff] }
 0x264   :  { %v2189_v35 = vpack.c.b16 %v2015_v10, %v2014_v21  ;;  %v2016_v21 = vunpack.c.l.b16 %v1632_v58 }
 0x266   :  { %5479 = vset.pattern.permute.xlu2 %v5689_v4  ;;  %5478 = vset.pattern.permute.xlu1 %v5680_v1  ;;  %v6374_v20 = vpop.f32.mrf.mxu1 }
 0x267   :  { %9358 = vst [vmem:[#allocation44_spill] sm:$0xff] %v6374_v20  ;;  %v2608_v62 = vpop.f32.mrf.mxu0 }
 0x268   :  { %v3063_v63 = vmul.f32 %v2608_v62, %v6172_v30  ;;  %v502_v62 = vpop.permute.xlu1 %501 }
 0x269   :  { %5324 = vmatmul.msk.bf16.gmra.mxu1 %vm2268_vm2, %v2207_v60  ;;  %vm1286_vm8 = vcmp.eq.s32.totalorder %v5872_v45, %v502_v62 }
 0x26a   :  { %v3290_v32 = vsel %vm3238_vm12, %v3063_v63, 0.0  ;;  %v2208_v63 = vpack.c.b16 %v2053_v5, %v2052_v55  ;;  %v1478_v59 = vsel %vm1286_vm8, 1.0, %v9338_v38  ;;  %v2190_v55 = vpack.c.b16 %v2017_v41, %v2016_v21 }
 0x26b   :  { %3291 = vadd.xlane.f32.xlu0 %v3290_v32  ;;  %v508_v32 = vpop.permute.xlu2 %507 }
 0x26c   :  { %vm1287_vm9 = vcmp.eq.s32.totalorder %v5872_v45, %v508_v32  ;;  %v1442_v32 = vsel %vm1250_vm10, 1.0, %v9338_v38 }
 0x26d   :  { %v1479_v10 = vsel %vm1287_vm9, 1.0, %v9338_v38  ;;  %vm1257_vm9 = vcmp.eq.s32.totalorder %v5872_v45, %v6098_v51 }
 0x26e   :  { %641 = vperm.xlu2 %5479, %v6019_v52   ;;  %635 = vperm.xlu1 %5478, %v6019_v52   ;;  %v6387_v30 = vpop.f32.mrf.mxu1  ;;  %v1671_v62 = vpack.c.bf16 %v1479_v10, %v1479_v10 }
 0x26f   :  { %9359 = vst [vmem:[#allocation45_spill] sm:$0xff] %v6387_v30  ;;  %v6389_v9 = vpop.f32.mrf.mxu0 }
 0x270   :  { %9360 = vst [vmem:[#allocation46_spill] sm:$0xff] %v6389_v9  ;;  %v2055_v21 = vunpack.c.l.b16 %v1671_v62 }
 0x272   :  { %5306 = vmatmul.msk.bf16.gmra.mxu0 %vm2268_vm2, %v2189_v35  ;;  %v1670_v35 = vpack.c.bf16 %v1478_v59, %v1478_v59  ;;  %v514_v59 = vpop.permute.xlu1 %513 }
 0x273   :  { %vm1288_vm13 = vcmp.eq.s32.totalorder %v5872_v45, %v514_v59 }
 0x274   :  { %v2054_v58 = vunpack.c.l.b16 %v1670_v35  ;;  %v1480_v22 = vsel %vm1288_vm13, 1.0, %v9338_v38 }
 0x276   :  { %5481 = vset.pattern.permute.xlu2 %v5683_v2  ;;  %5480 = vset.pattern.permute.xlu1 %v5709_v8  ;;  %v6399_v60 = vpop.f32.mrf.mxu1  ;;  %v2209_v41 = vpack.c.b16 %v2055_v21, %v2054_v58 }
 0x277   :  { %v6402_v34 = vpop.f32.mrf.mxu0 }
 0x278   :  { %9361 = vst [vmem:[#allocation47_spill] sm:$0xff] %v6402_v34 }
 0x279   :  { %5325 = vmatmul.msk.bf16.gmra.mxu1 %vm2268_vm2, %v2208_v63 }
 0x27e   :  { %659 = vperm.xlu2 %5481, %v6019_v52   ;;  %653 = vperm.xlu1 %5480, %v6019_v52   ;;  %v6411_v36 = vpop.f32.mrf.mxu1 }
 0x27f   :  { %9362 = vst [vmem:[#allocation48_spill] sm:$0xff] %v6411_v36  ;;  %v2616_v5 = vpop.f32.mrf.mxu0 }
 0x280   :  { %v3066_v6 = vmul.f32 %v2616_v5, %v6416_v54  ;;  %v1634_v5 = vpack.c.bf16 %v1442_v32, %v1442_v32  ;;  %v1672_v32 = vpack.c.bf16 %v1480_v22, %v1480_v22 }
 0x282   :  { %5307 = vmatmul.msk.bf16.gmra.mxu0 %vm2268_vm2, %v2190_v55  ;;  %v3299_v63 = vsel %vm3238_vm12, %v3066_v6, 0.0  ;;  %v1635_v55 = vpack.c.bf16 %v1443_v44, %v1443_v44  ;;  %v520_v6 = vpop.permute.xlu2 %519  ;;  %v2018_v35 = vunpack.c.l.b16 %v1634_v5  ;;  %v2056_v5 = vunpack.c.l.b16 %v1672_v32 }
 0x283   :  { %3300 = vadd.xlane.f32.xlu0 %v3299_v63  ;;  %vm1289_vm14 = vcmp.eq.s32.totalorder %v5872_v45, %v520_v6 }
 0x284   :  { %v2019_v62 = vunpack.c.l.b16 %v1635_v55  ;;  %v1481_v63 = vsel %vm1289_vm14, 1.0, %v9338_v38  ;;  %v9368_v55 = vld [vmem:[#allocation25_spill] sm:$0xff] }
 0x285   :  { %v1673_v59 = vpack.c.bf16 %v1481_v63, %v1481_v63  ;;  %vm1252_vm0 = vcmp.eq.s32.totalorder %v5872_v45, %v9368_v55 }
 0x286   :  { %5483 = vset.pattern.permute.xlu2 %v5727_v12  ;;  %5482 = vset.pattern.permute.xlu1 %v5706_v7  ;;  %v6429_v29 = vpop.f32.mrf.mxu1  ;;  %v2191_v21 = vpack.c.b16 %v2019_v62, %v2018_v35  ;;  %v1444_v35 = vsel %vm1252_vm0, 1.0, %v9338_v38  ;;  %v6458_v62 = vld [vmem:[%s9258_s1 + $0x38] sm:$0xff] }
 0x287   :  { %9364 = vst [vmem:[#allocation24_spill] sm:$0xff] %v6429_v29  ;;  %v6431_v10 = vpop.f32.mrf.mxu0  ;;  %v2057_v36 = vunpack.c.l.b16 %v1673_v59  ;;  %v532_v29 = vpop.permute.xlu1 %531  ;;  %v9370_v59 = vld [vmem:[#allocation20_spill] sm:$0xff]  ;;  %v1636_v55 = vpack.c.bf16 %v1444_v35, %v1444_v35 }
 0x288   :  { %9365 = vst [vmem:[#allocation49_spill] sm:$0xff] %v6431_v10  ;;  %vm1290_vm1 = vcmp.eq.s32.totalorder %v5872_v45, %v9370_v59  ;;  %vm1291_vm3 = vcmp.eq.s32.totalorder %v5872_v45, %v532_v29 }
 0x289   :  { %5326 = vmatmul.msk.bf16.gmra.mxu1 %vm2268_vm2, %v2209_v41  ;;  %v9367_v41 = vld [vmem:[#allocation26_spill] sm:$0xff]  ;;  %v2210_v63 = vpack.c.b16 %v2057_v36, %v2056_v5  ;;  %v1482_v20 = vsel %vm1290_vm1, 1.0, %v9338_v38  ;;  %v1483_v36 = vsel %vm1291_vm3, 1.0, %v9338_v38  ;;  %v2020_v5 = vunpack.c.l.b16 %v1636_v55 }
 0x28a   :  { %vm1253_vm15 = vcmp.eq.s32.totalorder %v5872_v45, %v9367_v41  ;;  %v1675_v29 = vpack.c.bf16 %v1483_v36, %v1483_v36 }
 0x28b   :  { %v1445_v6 = vsel %vm1253_vm15, 1.0, %v9338_v38 }
 0x28e   :  { %671 = vperm.xlu2 %5483, %v6019_v52   ;;  %665 = vperm.xlu1 %5482, %v6019_v52   ;;  %v6440_v58 = vpop.f32.mrf.mxu1 }
 0x28f   :  { %v6442_v44 = vpop.f32.mrf.mxu0 }
 0x290   :  { %9366 = vst [vmem:[#allocation50_spill] sm:$0xff] %v6442_v44  ;;  %v9384_v44 = vld [vmem:[#allocation6_spill] sm:$0xff] }
 0x292   :  { %5308 = vmatmul.msk.bf16.gmra.mxu0 %vm2268_vm2, %v2191_v21  ;;  %v1637_v21 = vpack.c.bf16 %v1445_v6, %v1445_v6 }
 0x294   :  { %v2021_v30 = vunpack.c.l.b16 %v1637_v21  ;;  %v2059_v21 = vunpack.c.l.b16 %v1675_v29 }
 0x296   :  { %5485 = vset.pattern.permute.xlu2 %v5739_v14  ;;  %5484 = vset.pattern.permute.xlu1 %v5806_v24  ;;  %v6452_v22 = vpop.f32.mrf.mxu1  ;;  %v2192_v35 = vpack.c.b16 %v2021_v30, %v2020_v5 }
 0x297   :  { %9369 = vst [vmem:[#allocation26_spill] sm:$0xff] %v6452_v22  ;;  %v2623_v32 = vpop.f32.mrf.mxu0 }
 0x298   :  { %v3069_v41 = vmul.f32 %v2623_v32, %v6458_v62  ;;  %v1674_v32 = vpack.c.bf16 %v1482_v20, %v1482_v20  ;;  %v545_v20 = vpop.permute.xlu1 %544 }
 0x299   :  { %5327 = vmatmul.msk.bf16.gmra.mxu1 %vm2268_vm2, %v2210_v63  ;;  %v539_v63 = vpop.permute.xlu2 %538  ;;  %vm1293_vm6 = vcmp.eq.s32.totalorder %v5872_v45, %v545_v20 }
 0x29a   :  { %v3308_v22 = vsel %vm3238_vm12, %v3069_v41, 0.0  ;;  %v9373_v41 = vld [vmem:[#allocation10_spill] sm:$0xff]  ;;  %vm1292_vm7 = vcmp.eq.s32.totalorder %v5872_v45, %v539_v63 }
 0x29b   :  { %3309 = vadd.xlane.f32.xlu0 %v3308_v22  ;;  %vm1255_vm4 = vcmp.eq.s32.totalorder %v5872_v45, %v9373_v41  ;;  %v2058_v22 = vunpack.c.l.b16 %v1674_v32  ;;  %v1484_v25 = vsel %vm1292_vm7, 1.0, %v9338_v38  ;;  %vm1310_vm7 = vcmp.eq.s32.totalorder %v5872_v45, %v6201_v40 }
 0x29c   :  { %v1447_v55 = vsel %vm1255_vm4, 1.0, %v9338_v38 }
 0x29d   :  { %v2211_v36 = vpack.c.b16 %v2059_v21, %v2058_v22  ;;  %v1639_v41 = vpack.c.bf16 %v1447_v55, %v1447_v55 }
 0x29e   :  { %689 = vperm.xlu2 %5485, %v6019_v52   ;;  %683 = vperm.xlu1 %5484, %v6019_v52   ;;  %v6470_v6 = vpop.f32.mrf.mxu1 }
 0x29f   :  { %9371 = vst [vmem:[#allocation25_spill] sm:$0xff] %v6470_v6  ;;  %v6472_v59 = vpop.f32.mrf.mxu0  ;;  %v1446_v6 = vsel %vm1254_vm5, 1.0, %v9338_v38  ;;  %v2023_v32 = vunpack.c.l.b16 %v1639_v41  ;;  %v1676_v41 = vpack.c.bf16 %v1484_v25, %v1484_v25 }
 0x2a0   :  { %9372 = vst [vmem:[#allocation20_spill] sm:$0xff] %v6472_v59  ;;  %v1638_v46 = vpack.c.bf16 %v1446_v6, %v1446_v6  ;;  %v6499_v6 = vld [vmem:[%s9258_s1 + $0x50] sm:$0xff]  ;;  %v9382_v59 = vld [vmem:[#allocation32_spill] sm:$0xff] }
 0x2a1   :  { %v551_v31 = vpop.permute.xlu2 %550  ;;  %vm1259_vm14 = vcmp.eq.s32.totalorder %v5872_v45, %v9382_v59 }
 0x2a2   :  { %5309 = vmatmul.msk.bf16.gmra.mxu0 %vm2268_vm2, %v2192_v35  ;;  %v2022_v29 = vunpack.c.l.b16 %v1638_v46  ;;  %v1485_v35 = vsel %vm1293_vm6, 1.0, %v9338_v38  ;;  %v9376_v46 = vld [vmem:[#allocation27_spill] sm:$0xff]  ;;  %vm1294_vm11 = vcmp.eq.s32.totalorder %v5872_v45, %v551_v31 }
 0x2a3   :  { %v1677_v21 = vpack.c.bf16 %v1485_v35, %v1485_v35  ;;  %vm1256_vm8 = vcmp.eq.s32.totalorder %v5872_v45, %v9376_v46  ;;  %v9379_v46 = vld [vmem:[#allocation22_spill] sm:$0xff]  ;;  %v1486_v0 = vsel %vm1294_vm11, 1.0, %v9338_v38 }
 0x2a4   :  { %v2193_v63 = vpack.c.b16 %v2023_v32, %v2022_v29  ;;  %v1448_v35 = vsel %vm1256_vm8, 1.0, %v9338_v38  ;;  %v2060_v32 = vunpack.c.l.b16 %v1676_v41  ;;  %v1449_v29 = vsel %vm1257_vm9, 1.0, %v9338_v38 }
 0x2a5   :  { %v2061_v50 = vunpack.c.l.b16 %v1677_v21  ;;  %vm1295_vm10 = vcmp.eq.s32.totalorder %v5872_v45, %v9379_v46  ;;  %v1641_v51 = vpack.c.bf16 %v1449_v29, %v1449_v29  ;;  %v1678_v56 = vpack.c.bf16 %v1486_v0, %v1486_v0 }
 0x2a6   :  { %5487 = vset.pattern.permute.xlu2 %v5745_v15  ;;  %5486 = vset.pattern.permute.xlu1 %v5736_v13  ;;  %v6483_v30 = vpop.f32.mrf.mxu1  ;;  %v1487_v41 = vsel %vm1295_vm10, 1.0, %v9338_v38 }
 0x2a7   :  { %v6485_v5 = vpop.f32.mrf.mxu0 }
 0x2a8   :  { %9374 = vst [vmem:[#allocation10_spill] sm:$0xff] %v6485_v5 }
 0x2a9   :  { %5328 = vmatmul.msk.bf16.gmra.mxu1 %vm2268_vm2, %v2211_v36  ;;  %v6501_v20 = vpop.permute.xlu2 %568 }
 0x2aa   :  { %vm1297_vm0 = vcmp.eq.s32.totalorder %v5872_v45, %v6501_v20 }
 0x2ab   :  { %v1489_v10 = vsel %vm1297_vm0, 1.0, %v9338_v38  ;;  %vm1315_vm0 = vcmp.eq.s32.totalorder %v5872_v45, %v6258_v23 }
 0x2ae   :  { %701 = vperm.xlu2 %5487, %v6019_v52   ;;  %695 = vperm.xlu1 %5486, %v6019_v52   ;;  %v6494_v22 = vpop.f32.mrf.mxu1 }
 0x2af   :  { %9375 = vst [vmem:[#allocation51_spill] sm:$0xff] %v6494_v22  ;;  %v2631_v55 = vpop.f32.mrf.mxu0 }
 0x2b0   :  { %v3072_v36 = vmul.f32 %v2631_v55, %v6499_v6  ;;  %v2212_v55 = vpack.c.b16 %v2061_v50, %v2060_v32  ;;  %v2025_v50 = vunpack.c.l.b16 %v1641_v51  ;;  %v1679_v32 = vpack.c.bf16 %v1487_v41, %v1487_v41  ;;  %v6548_v41 = vld [vmem:[%s9258_s1 + $0x68] sm:$0xff] }
 0x2b1   :  { %v6518_v21 = vpop.permute.xlu2 %580  ;;  %v2062_v51 = vunpack.c.l.b16 %v1678_v56 }
 0x2b2   :  { %5310 = vmatmul.msk.bf16.gmra.mxu0 %vm2268_vm2, %v2193_v63  ;;  %v3317_v22 = vsel %vm3238_vm12, %v3072_v36, 0.0  ;;  %v1640_v36 = vpack.c.bf16 %v1448_v35, %v1448_v35  ;;  %vm1299_vm3 = vcmp.eq.s32.totalorder %v5872_v45, %v6518_v21 }
 0x2b3   :  { %3318 = vadd.xlane.f32.xlu0 %v3317_v22  ;;  %v563_v22 = vpop.permute.xlu1 %562 }
 0x2b4   :  { %vm1296_vm15 = vcmp.eq.s32.totalorder %v5872_v45, %v563_v22 }
 0x2b6   :  { %5489 = vset.pattern.permute.xlu2 %v5763_v18  ;;  %5488 = vset.pattern.permute.xlu1 %v5845_v37  ;;  %v6513_v25 = vpop.f32.mrf.mxu1 }
 0x2b7   :  { %9377 = vst [vmem:[#allocation27_spill] sm:$0xff] %v6513_v25  ;;  %v6516_v63 = vpop.f32.mrf.mxu0  ;;  %v2024_v25 = vunpack.c.l.b16 %v1640_v36  ;;  %v2063_v36 = vunpack.c.l.b16 %v1679_v32 }
 0x2b8   :  { %9378 = vst [vmem:[#allocation52_spill] sm:$0xff] %v6516_v63 }
 0x2b9   :  { %5329 = vmatmul.msk.bf16.gmra.mxu1 %vm2268_vm2, %v2212_v55  ;;  %v2194_v31 = vpack.c.b16 %v2025_v50, %v2024_v25  ;;  %v6532_v63 = vpop.permute.xlu2 %598  ;;  %v9381_v55 = vld [vmem:[#allocation29_spill] sm:$0xff]  ;;  %v1451_v25 = vsel %vm1259_vm14, 1.0, %v9338_v38  ;;  %v2213_v50 = vpack.c.b16 %v2063_v36, %v2062_v51 }
 0x2ba   :  { %vm1258_vm13 = vcmp.eq.s32.totalorder %v5872_v45, %v9381_v55  ;;  %vm1302_vm11 = vcmp.eq.s32.totalorder %v5872_v45, %v6532_v63 }
 0x2bb   :  { %v575_v29 = vpop.permute.xlu1 %574  ;;  %v1450_v5 = vsel %vm1258_vm13, 1.0, %v9338_v38 }
 0x2bc   :  { %v1642_v32 = vpack.c.bf16 %v1450_v5, %v1450_v5  ;;  %v1488_v5 = vsel %vm1296_vm15, 1.0, %v9338_v38  ;;  %vm1298_vm1 = vcmp.eq.s32.totalorder %v5872_v45, %v575_v29  ;;  %v6596_v29 = vld [vmem:[%s9258_s1] sm:$0xff]  ;;  %vm1305_vm15 = vcmp.eq.s32.totalorder %v5872_v45, %v6150_v47 }
 0x2be   :  { %719 = vperm.xlu2 %5489, %v6019_v52   ;;  %713 = vperm.xlu1 %5488, %v6019_v52   ;;  %v6528_v35 = vpop.f32.mrf.mxu1  ;;  %v2026_v36 = vunpack.c.l.b16 %v1642_v32 }
 0x2bf   :  { %v6530_v46 = vpop.f32.mrf.mxu0 }
 0x2c0   :  { %9380 = vst [vmem:[#allocation22_spill] sm:$0xff] %v6530_v46 }
 0x2c2   :  { %5311 = vmatmul.msk.bf16.gmra.mxu0 %vm2268_vm2, %v2194_v31  ;;  %v6550_v31 = vpop.permute.xlu2 %610 }
 0x2c3   :  { %v6552_v59 = vpop.permute.xlu1 %592 }
 0x2c4   :  { %vm1301_vm8 = vcmp.eq.s32.totalorder %v5872_v45, %v6552_v59 }
 0x2c6   :  { %5491 = vset.pattern.permute.xlu2 %v5680_v1  ;;  %5490 = vset.pattern.permute.xlu1 %v5760_v17  ;;  %v6542_v0 = vpop.f32.mrf.mxu1 }
 0x2c7   :  { %9383 = vst [vmem:[#allocation29_spill] sm:$0xff] %v6542_v0  ;;  %v2638_v56 = vpop.f32.mrf.mxu0  ;;  %v1643_v0 = vpack.c.bf16 %v1451_v25, %v1451_v25 }
 0x2c8   :  { %v3075_v55 = vmul.f32 %v2638_v56, %v6548_v41 }
 0x2c9   :  { %5330 = vmatmul.msk.bf16.gmra.mxu1 %vm2268_vm2, %v2213_v50  ;;  %v2027_v51 = vunpack.c.l.b16 %v1643_v0  ;;  %v1680_v50 = vpack.c.bf16 %v1488_v5, %v1488_v5 }
 0x2ca   :  { %v3326_v46 = vsel %vm3238_vm12, %v3075_v55, 0.0  ;;  %v6568_v55 = vpop.permute.xlu2 %628 }
 0x2cb   :  { %3327 = vadd.xlane.f32.xlu0 %v3326_v46  ;;  %v2195_v56 = vpack.c.b16 %v2027_v51, %v2026_v36  ;;  %v6570_v20 = vpop.permute.xlu1 %604  ;;  %v1681_v46 = vpack.c.bf16 %v1489_v10, %v1489_v10  ;;  %v2064_v0 = vunpack.c.l.b16 %v1680_v50  ;;  %v1490_v10 = vsel %vm1298_vm1, 1.0, %v9338_v38 }
 0x2cc   :  { %v1491_v51 = vsel %vm1299_vm3, 1.0, %v9338_v38  ;;  %v1682_v21 = vpack.c.bf16 %v1490_v10, %v1490_v10  ;;  %vm1303_vm10 = vcmp.eq.s32.totalorder %v5872_v45, %v6570_v20  ;;  %vm1304_vm1 = vcmp.eq.s32.totalorder %v5872_v45, %v6550_v31  ;;  %v6682_v31 = vld [vmem:[%s9258_s1 + $0x30] sm:$0xff] }
 0x2cd   :  { %v2065_v32 = vunpack.c.l.b16 %v1681_v46 }
 0x2ce   :  { %732 = vperm.xlu2 %5491, %v9384_v44   ;;  %725 = vperm.xlu1 %5490, %v6019_v52   ;;  %v6564_v22 = vpop.f32.mrf.mxu1  ;;  %v2066_v26 = vunpack.c.l.b16 %v1682_v21 }
 0x2cf   :  { %9385 = vst [vmem:[#allocation32_spill] sm:$0xff] %v6564_v22  ;;  %v6566_v25 = vpop.f32.mrf.mxu0  ;;  %v2214_v22 = vpack.c.b16 %v2065_v32, %v2064_v0  ;;  %v1683_v0 = vpack.c.bf16 %v1491_v51, %v1491_v51 }
 0x2d0   :  { %9386 = vst [vmem:[#allocation6_spill] sm:$0xff] %v6566_v25 }
 0x2d1   :  { %v2067_v34 = vunpack.c.l.b16 %v1683_v0 }
 0x2d2   :  { %5312 = vmatmul.msk.bf16.gmra.mxu0 %vm2268_vm2, %v2195_v56  ;;  %v642_v25 = vpop.permute.xlu2 %641 }
 0x2d3   :  { %v6579_v36 = vpop.permute.xlu1 %622  ;;  %vm1309_vm4 = vcmp.eq.s32.totalorder %v5872_v45, %v642_v25  ;;  %v2215_v51 = vpack.c.b16 %v2067_v34, %v2066_v26  ;;  %v1502_v26 = vsel %vm1310_vm7, 1.0, %v9338_v38  ;;  %v1493_v34 = vsel %vm1301_vm8, 1.0, %v9338_v38 }
 0x2d4   :  { %v1501_v50 = vsel %vm1309_vm4, 1.0, %v9338_v38  ;;  %vm1306_vm4 = vcmp.eq.s32.totalorder %v5872_v45, %v6579_v36 }
 0x2d5   :  { %v1693_v32 = vpack.c.bf16 %v1501_v50, %v1501_v50 }
 0x2d6   :  { %5494 = vset.pattern.permute.xlu2 %v5709_v8  ;;  %5493 = vset.pattern.permute.xlu1 %v5686_v3  ;;  %v6575_v52 = vpop.f32.mrf.mxu1 }
 0x2d7   :  { %v6577_v5 = vpop.f32.mrf.mxu0  ;;  %v2077_v39 = vunpack.c.l.b16 %v1693_v32 }
 0x2d8   :  { %9387 = vst [vmem:[#allocation53_spill] sm:$0xff] %v6577_v5 }
 0x2d9   :  { %5331 = vmatmul.msk.bf16.gmra.mxu1 %vm2268_vm2, %v2214_v22 }
 0x2de   :  { %750 = vperm.xlu2 %5494, %v9384_v44   ;;  %744 = vperm.xlu1 %5493, %v9384_v44   ;;  %v6591_v56 = vpop.f32.mrf.mxu1 }
 0x2df   :  { %9388 = vst [vmem:[#allocation54_spill] sm:$0xff] %v6591_v56  ;;  %v2646_v22 = vpop.f32.mrf.mxu0 }
 0x2e0   :  { %v3078_v25 = vmul.f32 %v2646_v22, %v6596_v29  ;;  %v636_v46 = vpop.permute.xlu1 %635 }
 0x2e1   :  { %vm1308_vm5 = vcmp.eq.s32.totalorder %v5872_v45, %v636_v46  ;;  %v9391_v46 = vld [vmem:[#allocation28_spill] sm:$0xff] }
 0x2e2   :  { %v1500_v5 = vsel %vm1308_vm5, 1.0, %v9338_v38  ;;  %v3335_v9 = vsel %vm3238_vm12, %v3078_v25, 0.0  ;;  %vm1300_vm6 = vcmp.eq.s32.totalorder %v5872_v45, %v9391_v46 }
 0x2e3   :  { %v1692_v56 = vpack.c.bf16 %v1500_v5, %v1500_v5  ;;  %3336 = vadd.xlane.f32.xlu0 %v3335_v9  ;;  %v1492_v9 = vsel %vm1300_vm6, 1.0, %v9338_v38  ;;  %v1685_v5 = vpack.c.bf16 %v1493_v34, %v1493_v34  ;;  %vm1307_vm6 = vcmp.eq.s32.totalorder %v5872_v45, %v6568_v55 }
 0x2e4   :  { %v1684_v40 = vpack.c.bf16 %v1492_v9, %v1492_v9  ;;  %v6634_v9 = vld [vmem:[%s9258_s1 + $0x18] sm:$0xff] }
 0x2e5   :  { %v2076_v49 = vunpack.c.l.b16 %v1692_v56  ;;  %v2069_v32 = vunpack.c.l.b16 %v1685_v5  ;;  %v1495_v5 = vsel %vm1303_vm10, 1.0, %v9338_v38 }
 0x2e6   :  { %5496 = vset.pattern.permute.xlu2 %v5706_v7  ;;  %5495 = vset.pattern.permute.xlu1 %v5683_v2  ;;  %v6604_v10 = vpop.f32.mrf.mxu1  ;;  %v2068_v25 = vunpack.c.l.b16 %v1684_v40 }
 0x2e7   :  { %9389 = vst [vmem:[#allocation55_spill] sm:$0xff] %v6604_v10  ;;  %v6606_v50 = vpop.f32.mrf.mxu0  ;;  %v2220_v22 = vpack.c.b16 %v2077_v39, %v2076_v49  ;;  %v1694_v49 = vpack.c.bf16 %v1502_v26, %v1502_v26  ;;  %v660_v10 = vpop.permute.xlu2 %659 }
 0x2e8   :  { %9390 = vst [vmem:[#allocation56_spill] sm:$0xff] %v6606_v50  ;;  %v2216_v26 = vpack.c.b16 %v2069_v32, %v2068_v25  ;;  %vm1312_vm13 = vcmp.eq.s32.totalorder %v5872_v45, %v660_v10 }
 0x2e9   :  { %5332 = vmatmul.msk.bf16.gmra.mxu1 %vm2268_vm2, %v2215_v51  ;;  %5337 = vmatmul.msk.bf16.vlgmr.msra.gmra.mxu2 %vm2268_vm2, %v2220_v22  ;;  %v2078_v0 = vunpack.c.l.b16 %v1694_v49  ;;  %v1504_v25 = vsel %vm1312_vm13, 1.0, %v9338_v38 }
 0x2ee   :  { %762 = vperm.xlu2 %5496, %v9384_v44   ;;  %756 = vperm.xlu1 %5495, %v9384_v44   ;;  %v6621_v39 = vpop.f32.mrf.mxu1 }
 0x2ef   :  { %v6623_v59 = vpop.f32.mrf.mxu0 }
 0x2f0   :  { %9392 = vst [vmem:[#allocation28_spill] sm:$0xff] %v6623_v59  ;;  %v654_v56 = vpop.permute.xlu1 %653 }
 0x2f1   :  { %vm1311_vm9 = vcmp.eq.s32.totalorder %v5872_v45, %v654_v56 }
 0x2f2   :  { %v1503_v21 = vsel %vm1311_vm9, 1.0, %v9338_v38 }
 0x2f3   :  { %v1695_v51 = vpack.c.bf16 %v1503_v21, %v1503_v21  ;;  %v1494_v21 = vsel %vm1302_vm11, 1.0, %v9338_v38 }
 0x2f4   :  { %v1686_v63 = vpack.c.bf16 %v1494_v21, %v1494_v21 }
 0x2f5   :  { %v2079_v22 = vunpack.c.l.b16 %v1695_v51 }
 0x2f6   :  { %5499 = vset.pattern.permute.xlu2 %v5806_v24  ;;  %5498 = vset.pattern.permute.xlu1 %v5724_v11  ;;  %v6629_v46 = vpop.f32.mrf.mxu1 }
 0x2f7   :  { %9393 = vst [vmem:[#allocation57_spill] sm:$0xff] %v6629_v46  ;;  %v2653_v34 = vpop.f32.mrf.mxu0  ;;  %v2221_v56 = vpack.c.b16 %v2079_v22, %v2078_v0  ;;  %v1687_v0 = vpack.c.bf16 %v1495_v5, %v1495_v5  ;;  %v1696_v22 = vpack.c.bf16 %v1504_v25, %v1504_v25  ;;  %v672_v46 = vpop.permute.xlu2 %671  ;;  %v1497_v25 = vsel %vm1305_vm15, 1.0, %v9338_v38 }
 0x2f8   :  { %v3081_v40 = vmul.f32 %v2653_v34, %v6634_v9  ;;  %vm1314_vm3 = vcmp.eq.s32.totalorder %v5872_v45, %v672_v46  ;;  %v1689_v46 = vpack.c.bf16 %v1497_v25, %v1497_v25 }
 0x2f9   :  { %5333 = vmatmul.msk.bf16.gmra.mxu1 %vm2268_vm2, %v2216_v26  ;;  %5338 = vmatmul.msk.bf16.gmra.mxu2 %vm2268_vm2, %v2221_v56  ;;  %v2071_v26 = vunpack.c.l.b16 %v1687_v0  ;;  %v2070_v56 = vunpack.c.l.b16 %v1686_v63  ;;  %v1507_v0 = vsel %vm1315_vm0, 1.0, %v9338_v38  ;;  %v1506_v47 = vsel %vm1314_vm3, 1.0, %v9338_v38 }
 0x2fa   :  { %v3344_v49 = vsel %vm3238_vm12, %v3081_v40, 0.0  ;;  %v2080_v40 = vunpack.c.l.b16 %v1696_v22  ;;  %v1698_v22 = vpack.c.bf16 %v1506_v47, %v1506_v47 }
 0x2fb   :  { %3345 = vadd.xlane.f32.xlu0 %v3344_v49 }
 0x2fe   :  { %780 = vperm.xlu2 %5499, %v9384_v44   ;;  %774 = vperm.xlu1 %5498, %v9384_v44   ;;  %v6650_v20 = vpop.f32.mrf.mxu1 }
 0x2ff   :  { %9394 = vst [vmem:[#allocation58_spill] sm:$0xff] %v6650_v20  ;;  %v6652_v32 = vpop.f32.mrf.mxu0  ;;  %v2217_v20 = vpack.c.b16 %v2071_v26, %v2070_v56  ;;  %v2073_v56 = vunpack.c.l.b16 %v1689_v46  ;;  %v690_v47 = vpop.permute.xlu2 %689  ;;  %v1498_v46 = vsel %vm1306_vm4, 1.0, %v9338_v38 }
 0x300   :  { %9395 = vst [vmem:[#allocation59_spill] sm:$0xff] %v6652_v32  ;;  %v666_v51 = vpop.permute.xlu1 %665  ;;  %vm1317_vm7 = vcmp.eq.s32.totalorder %v5872_v45, %v690_v47  ;;  %v1690_v36 = vpack.c.bf16 %v1498_v46, %v1498_v46 }
 0x301   :  { %vm1313_vm14 = vcmp.eq.s32.totalorder %v5872_v45, %v666_v51  ;;  %v1496_v51 = vsel %vm1304_vm1, 1.0, %v9338_v38 }
 0x302   :  { %v1505_v10 = vsel %vm1313_vm14, 1.0, %v9338_v38  ;;  %v1688_v63 = vpack.c.bf16 %v1496_v51, %v1496_v51 }
 0x303   :  { %v1697_v34 = vpack.c.bf16 %v1505_v10, %v1505_v10 }
 0x305   :  { %v2081_v49 = vunpack.c.l.b16 %v1697_v34 }
 0x306   :  { %5501 = vset.pattern.permute.xlu2 %v5736_v13  ;;  %5500 = vset.pattern.permute.xlu1 %v5739_v14  ;;  %v6658_v5 = vpop.f32.mrf.mxu1 }
 0x307   :  { %v6660_v32 = vpop.f32.mrf.mxu0  ;;  %v2222_v21 = vpack.c.b16 %v2081_v49, %v2080_v40  ;;  %v2072_v49 = vunpack.c.l.b16 %v1688_v63  ;;  %v1499_v63 = vsel %vm1307_vm6, 1.0, %v9338_v38 }
 0x308   :  { %9396 = vst [vmem:[#allocation60_spill] sm:$0xff] %v6660_v32  ;;  %v1691_v55 = vpack.c.bf16 %v1499_v63, %v1499_v63 }
 0x309   :  { %5334 = vmatmul.msk.bf16.gmra.mxu1 %vm2268_vm2, %v2217_v20  ;;  %5339 = vmatmul.msk.bf16.gmra.mxu2 %vm2268_vm2, %v2222_v21  ;;  %v1699_v20 = vpack.c.bf16 %v1507_v0, %v1507_v0  ;;  %v2082_v21 = vunpack.c.l.b16 %v1698_v22  ;;  %v2218_v25 = vpack.c.b16 %v2073_v56, %v2072_v49  ;;  %v1509_v22 = vsel %vm1317_vm7, 1.0, %v9338_v38 }
 0x30a   :  { %v2074_v56 = vunpack.c.l.b16 %v1690_v36  ;;  %v2075_v49 = vunpack.c.l.b16 %v1691_v55 }
 0x30b   :  { %v2083_v40 = vunpack.c.l.b16 %v1699_v20 }
 0x30c   :  { %v2219_v47 = vpack.c.b16 %v2075_v49, %v2074_v56 }
 0x30d   :  { %v2223_v51 = vpack.c.b16 %v2083_v40, %v2082_v21 }
 0x30e   :  { %792 = vperm.xlu2 %5501, %v9384_v44   ;;  %786 = vperm.xlu1 %5500, %v9384_v44   ;;  %v6677_v23 = vpop.f32.mrf.mxu1 }
 0x30f   :  { %9397 = vst [vmem:[#allocation61_spill] sm:$0xff] %v6677_v23  ;;  %v2661_v10 = vpop.f32.mrf.mxu0 }
 0x310   :  { %v3084_v26 = vmul.f32 %v2661_v10, %v6682_v31  ;;  %v684_v23 = vpop.permute.xlu1 %683 }
 0x311   :  { %vm1316_vm5 = vcmp.eq.s32.totalorder %v5872_v45, %v684_v23 }
 0x312   :  { %v3353_v34 = vsel %vm3238_vm12, %v3084_v26, 0.0  ;;  %v1508_v20 = vsel %vm1316_vm5, 1.0, %v9338_v38 }
 0x313   :  { %3354 = vadd.xlane.f32.xlu0 %v3353_v34  ;;  %v1700_v23 = vpack.c.bf16 %v1508_v20, %v1508_v20  ;;  %v1701_v34 = vpack.c.bf16 %v1509_v22, %v1509_v22 }
 0x315   :  { %v2084_v40 = vunpack.c.l.b16 %v1700_v23  ;;  %v2085_v21 = vunpack.c.l.b16 %v1701_v34 }
 0x316   :  { %5504 = vset.pattern.permute.xlu2 %v5845_v37  ;;  %5503 = vset.pattern.permute.xlu1 %v5751_v16  ;;  %v6688_v32 = vpop.f32.mrf.mxu1 }
 0x317   :  { %9398 = vst [vmem:[#allocation62_spill] sm:$0xff] %v6688_v32  ;;  %v6690_v0 = vpop.f32.mrf.mxu0  ;;  %v2224_v20 = vpack.c.b16 %v2085_v21, %v2084_v40  ;;  %v702_v32 = vpop.permute.xlu2 %701 }
 0x318   :  { %9399 = vst [vmem:[#allocation63_spill] sm:$0xff] %v6690_v0  ;;  %vm1319_vm9 = vcmp.eq.s32.totalorder %v5872_v45, %v702_v32 }
 0x319   :  { %5335 = vmatmul.msk.bf16.gmra.mxu1 %vm2268_vm2, %v2218_v25  ;;  %5340 = vmatmul.msk.bf16.gmra.mxu2 %vm2268_vm2, %v2223_v51  ;;  %v6715_v51 = vld [vmem:[%s9258_s1 + $0x48] sm:$0xff]  ;;  %v1511_v55 = vsel %vm1319_vm9, 1.0, %v9338_v38 }
 0x31a   :  { %v1703_v40 = vpack.c.bf16 %v1511_v55, %v1511_v55  ;;  %v6749_v55 = vld [vmem:[%s9258_s1 + $0x60] sm:$0xff] }
 0x31e   :  { %810 = vperm.xlu2 %5504, %v9384_v44   ;;  %804 = vperm.xlu1 %5503, %v9384_v44   ;;  %v6708_v26 = vpop.f32.mrf.mxu1 }
 0x31f   :  { %v6706_v10 = vpop.f32.mrf.mxu0 }
 0x320   :  { %9400 = vst [vmem:[#allocation64_spill] sm:$0xff] %v6706_v10  ;;  %v696_v25 = vpop.permute.xlu1 %695 }
 0x321   :  { %vm1318_vm8 = vcmp.eq.s32.totalorder %v5872_v45, %v696_v25  ;;  %v2087_v25 = vunpack.c.l.b16 %v1703_v40 }
 0x322   :  { %v1510_v23 = vsel %vm1318_vm8, 1.0, %v9338_v38 }
 0x323   :  { %v1702_v34 = vpack.c.bf16 %v1510_v23, %v1510_v23  ;;  %v9405_v23 = vld [vmem:[#allocation7_spill] sm:$0xff] }
 0x325   :  { %v2086_v49 = vunpack.c.l.b16 %v1702_v34 }
 0x326   :  { %5506 = vset.pattern.permute.xlu2 %v5760_v17  ;;  %5505 = vset.pattern.permute.xlu1 %v5763_v18  ;;  %v6719_v22 = vpop.f32.mrf.mxu1 }
 0x327   :  { %v2668_v46 = vpop.f32.mrf.mxu0  ;;  %9401 = vst [vmem:[#allocation65_spill] sm:$0xff] %v6719_v22 }
 0x328   :  { %v3087_v63 = vmul.f32 %v2668_v46, %v6715_v51  ;;  %v2225_v46 = vpack.c.b16 %v2087_v25, %v2086_v49 }
 0x329   :  { %5336 = vmatmul.msk.bf16.gmra.mxu1 %vm2268_vm2, %v2219_v47  ;;  %5341 = vmatmul.msk.bf16.gmra.mxu2 %vm2268_vm2, %v2224_v20  ;;  %v708_v20 = vpop.permute.xlu0 %707 }
 0x32a   :  { %v3362_v36 = vsel %vm3238_vm12, %v3087_v63, 0.0  ;;  %vm1320_vm10 = vcmp.eq.s32.totalorder %v5872_v45, %v708_v20 }
 0x32b   :  { %3363 = vadd.xlane.f32.xlu0 %v3362_v36 }
 0x32e   :  { %822 = vperm.xlu2 %5506, %v9384_v44   ;;  %816 = vperm.xlu1 %5505, %v9384_v44   ;;  %v6731_v21 = vpop.f32.mrf.mxu1  ;;  %v1512_v44 = vsel %vm1320_vm10, 1.0, %v9338_v38 }
 0x32f   :  { %v6729_v56 = vpop.f32.mrf.mxu0  ;;  %9403 = vst [vmem:[#allocation67_spill] sm:$0xff] %v6731_v21  ;;  %v1704_v34 = vpack.c.bf16 %v1512_v44, %v1512_v44  ;;  %v720_v44 = vpop.permute.xlu2 %719 }
 0x330   :  { %9402 = vst [vmem:[#allocation66_spill] sm:$0xff] %v6729_v56  ;;  %v714_v47 = vpop.permute.xlu1 %713  ;;  %vm1322_vm14 = vcmp.eq.s32.totalorder %v5872_v45, %v720_v44 }
 0x331   :  { %vm1321_vm11 = vcmp.eq.s32.totalorder %v5872_v45, %v714_v47 }
 0x332   :  { %v1513_v63 = vsel %vm1321_vm11, 1.0, %v9338_v38 }
 0x333   :  { %v1705_v40 = vpack.c.bf16 %v1513_v63, %v1513_v63 }
 0x335   :  { %v2089_v20 = vunpack.c.l.b16 %v1705_v40 }
 0x336   :  { %5509 = vset.pattern.permute.xlu2 %v5686_v3  ;;  %5508 = vset.pattern.permute.xlu1 %v5689_v4  ;;  %v6742_v36 = vpop.f32.mrf.mxu1 }
 0x337   :  { %v6735_v32 = vpop.f32.mrf.mxu0 }
 0x338   :  { %9404 = vst [vmem:[#allocation68_spill] sm:$0xff] %v6735_v32 }
 0x339   :  { %5342 = vmatmul.msk.bf16.gmra.mxu2 %vm2268_vm2, %v2225_v46  ;;  %v2088_v46 = vunpack.c.l.b16 %v1704_v34  ;;  %v1514_v34 = vsel %vm1322_vm14, 1.0, %v9338_v38 }
 0x33b   :  { %v2226_v32 = vpack.c.b16 %v2089_v20, %v2088_v46  ;;  %v733_v20 = vpop.permute.xlu2 %732 }
 0x33c   :  { %vm1324_vm15 = vcmp.eq.s32.totalorder %v5872_v45, %v733_v20 }
 0x33e   :  { %841 = vperm.xlu2 %5509, %v9405_v23   ;;  %835 = vperm.xlu1 %5508, %v9405_v23   ;;  %v6755_v22 = vpop.f32.mrf.mxu1 }
 0x33f   :  { %v2676_v49 = vpop.f32.mrf.mxu0  ;;  %9406 = vst [vmem:[#allocation7_spill] sm:$0xff] %v6755_v22 }
 0x340   :  { %v3090_v25 = vmul.f32 %v2676_v49, %v6749_v55  ;;  %v726_v21 = vpop.permute.xlu1 %725 }
 0x341   :  { %vm1323_vm13 = vcmp.eq.s32.totalorder %v5872_v45, %v726_v21 }
 0x342   :  { %v3371_v47 = vsel %vm3238_vm12, %v3090_v25, 0.0  ;;  %v1515_v63 = vsel %vm1323_vm13, 1.0, %v9338_v38  ;;  %v1706_v25 = vpack.c.bf16 %v1514_v34, %v1514_v34 }
 0x343   :  { %3372 = vadd.xlane.f32.xlu0 %v3371_v47  ;;  %v1707_v40 = vpack.c.bf16 %v1515_v63, %v1515_v63 }
 0x344   :  { %v2090_v21 = vunpack.c.l.b16 %v1706_v25 }
 0x345   :  { %v2091_v46 = vunpack.c.l.b16 %v1707_v40  ;;  %v9410_v40 = vld [vmem:[#allocation8_spill] sm:$0xff] }
 0x346   :  { %5511 = vset.pattern.permute.xlu2 %v5683_v2  ;;  %5510 = vset.pattern.permute.xlu1 %v5709_v8  ;;  %v6768_v47 = vpop.f32.mrf.mxu1  ;;  %vm1325_vm0 = vcmp.eq.s32.totalorder %v5872_v45, %v9410_v40 }
 0x347   :  { %v6757_v56 = vpop.f32.mrf.mxu0  ;;  %9409 = vst [vmem:[#allocation71_spill] sm:$0xff] %v6768_v47  ;;  %v2227_v22 = vpack.c.b16 %v2091_v46, %v2090_v21  ;;  %v1516_v47 = vsel %vm1324_vm15, 1.0, %v9338_v38  ;;  %v6789_v46 = vld [vmem:[%s9258_s1 + $0x10] sm:$0xff]  ;;  %v1517_v21 = vsel %vm1325_vm0, 1.0, %v9338_v38 }
 0x348   :  { %9407 = vst [vmem:[#allocation69_spill] sm:$0xff] %v6757_v56  ;;  %v1708_v20 = vpack.c.bf16 %v1516_v47, %v1516_v47 }
 0x349   :  { %5343 = vmatmul.msk.bf16.gmra.mxu2 %vm2268_vm2, %v2226_v32  ;;  %v6775_v32 = vld [vmem:[%s9258_s1 + $0x78] sm:$0xff] }
 0x34e   :  { %853 = vperm.xlu2 %5511, %v9405_v23   ;;  %847 = vperm.xlu1 %5510, %v9405_v23   ;;  %v6783_v25 = vpop.f32.mrf.mxu1 }
 0x34f   :  { %v6766_v49 = vpop.f32.mrf.mxu0 }
 0x350   :  { %9408 = vst [vmem:[#allocation70_spill] sm:$0xff] %v6766_v49  ;;  %v6802_v49 = vld [vmem:[%s9258_s1 + $0x28] sm:$0xff]  ;;  %v745_v0 = vpop.permute.xlu1 %744 }
 0x351   :  { %vm1326_vm1 = vcmp.eq.s32.totalorder %v5872_v45, %v745_v0 }
 0x356   :  { %5514 = vset.pattern.permute.xlu2 %v5724_v11  ;;  %5513 = vset.pattern.permute.xlu1 %v5727_v12  ;;  %v6797_v56 = vpop.f32.mrf.mxu1 }
 0x357   :  { %v2683_v44 = vpop.f32.mrf.mxu0  ;;  %9411 = vst [vmem:[#allocation8_spill] sm:$0xff] %v6797_v56 }
 0x358   :  { %v3093_v63 = vmul.f32 %v2683_v44, %v6775_v32  ;;  %v1709_v44 = vpack.c.bf16 %v1517_v21, %v1517_v21  ;;  %v751_v21 = vpop.permute.xlu2 %750 }
 0x359   :  { %5344 = vmatmul.msk.bf16.gmra.mxu2 %vm2268_vm2, %v2227_v22  ;;  %v3096_v22 = vmul.f32 %v6323_v53, %v6789_v46  ;;  %v3099_v53 = vmul.f32 %v6802_v49, %v6362_v42  ;;  %vm1327_vm3 = vcmp.eq.s32.totalorder %v5872_v45, %v751_v21  ;;  %v6818_v42 = vld [vmem:[%s9258_s1 + $0x40] sm:$0xff] }
 0x35a   :  { %v3380_v34 = vsel %vm3238_vm12, %v3093_v63, 0.0  ;;  %v2093_v40 = vunpack.c.l.b16 %v1709_v44  ;;  %v1519_v0 = vsel %vm1327_vm3, 1.0, %v9338_v38 }
 0x35b   :  { %3381 = vadd.xlane.f32.xlu0 %v3380_v34  ;;  %v3389_v63 = vsel %vm3238_vm12, %v3096_v22, 0.0  ;;  %v2092_v34 = vunpack.c.l.b16 %v1708_v20  ;;  %v3398_v22 = vsel %vm3238_vm12, %v3099_v53, 0.0  ;;  %v1518_v20 = vsel %vm1326_vm1, 1.0, %v9338_v38 }
 0x35c   :  { %v1711_v53 = vpack.c.bf16 %v1519_v0, %v1519_v0 }
 0x35d   :  { %v2228_v47 = vpack.c.b16 %v2093_v40, %v2092_v34  ;;  %v1710_v34 = vpack.c.bf16 %v1518_v20, %v1518_v20 }
 0x35e   :  { %871 = vperm.xlu2 %5514, %v9405_v23   ;;  %865 = vperm.xlu1 %5513, %v9405_v23   ;;  %v6825_v40 = vpop.f32.mrf.mxu1 }
 0x35f   :  { %9413 = vst [vmem:[#allocation73_spill] sm:$0xff] %v6825_v40  ;;  %v2094_v21 = vunpack.c.l.b16 %v1710_v34 }
 0x360   :  { %v757_v10 = vpop.permute.xlu1 %756 }
 0x361   :  { %vm1328_vm4 = vcmp.eq.s32.totalorder %v5872_v45, %v757_v10 }
 0x363   :  { %3390 = vadd.xlane.f32.xlu0 %v3389_v63  ;;  %v3102_v63 = vmul.f32 %v6818_v42, %v6399_v60  ;;  %v6833_v60 = vld [vmem:[%s9258_s1 + $0x58] sm:$0xff] }
 0x364   :  { %v3105_v56 = vmul.f32 %v6833_v60, %v6440_v58  ;;  %v1520_v58 = vsel %vm1328_vm4, 1.0, %v9338_v38 }
 0x366   :  { %5516 = vset.pattern.permute.xlu2 %v5739_v14  ;;  %5515 = vset.pattern.permute.xlu1 %v5806_v24  ;;  %v6840_v0 = vpop.f32.mrf.mxu1  ;;  %v3416_v34 = vsel %vm3238_vm12, %v3105_v56, 0.0  ;;  %v1712_v56 = vpack.c.bf16 %v1520_v58, %v1520_v58 }
 0x369   :  { %5345 = vmatmul.msk.bf16.gmra.mxu2 %vm2268_vm2, %v2228_v47  ;;  %v3407_v47 = vsel %vm3238_vm12, %v3102_v63, 0.0  ;;  %v763_v63 = vpop.permute.xlu2 %762 }
 0x36a   :  { %vm1329_vm5 = vcmp.eq.s32.totalorder %v5872_v45, %v763_v63  ;;  %v2096_v63 = vunpack.c.l.b16 %v1712_v56 }
 0x36b   :  { %3399 = vadd.xlane.f32.xlu0 %v3398_v22 }
 0x36c   :  { %v6813_v44 = vpop.f32.mrf.mxu2 }
 0x36d   :  { %9412 = vst [vmem:[#allocation72_spill] sm:$0xff] %v6813_v44  ;;  %v2095_v44 = vunpack.c.l.b16 %v1711_v53 }
 0x36e   :  { %883 = vperm.xlu2 %5516, %v9405_v23   ;;  %877 = vperm.xlu1 %5515, %v9405_v23  }
 0x36f   :  { %v2229_v20 = vpack.c.b16 %v2095_v44, %v2094_v21  ;;  %v6851_v44 = vld [vmem:[%s9258_s1 + $0x70] sm:$0xff] }
 0x370   :  { %v3108_v10 = vmul.f32 %v6851_v44, %v6483_v30  ;;  %v6866_v30 = vld [vmem:[%s9258_s1 + $0x8] sm:$0xff]  ;;  %v775_v59 = vpop.permute.xlu1 %774 }
 0x371   :  { %v3111_v50 = vmul.f32 %v6866_v30, %v6528_v35  ;;  %vm1331_vm6 = vcmp.eq.s32.totalorder %v5872_v45, %v775_v59 }
 0x372   :  { %v1523_v56 = vsel %vm1331_vm6, 1.0, %v9338_v38 }
 0x373   :  { %3408 = vadd.xlane.f32.xlu0 %v3407_v47  ;;  %v1521_v47 = vsel %vm1329_vm5, 1.0, %v9338_v38 }
 0x374   :  { %v6828_v22 = vpop.f32.mrf.mxu2  ;;  %v1713_v21 = vpack.c.bf16 %v1521_v47, %v1521_v47  ;;  %v9416_v47 = vld [vmem:[#allocation9_spill] sm:$0xff] }
 0x375   :  { %9414 = vst [vmem:[#allocation74_spill] sm:$0xff] %v6828_v22  ;;  %vm1330_vm7 = vcmp.eq.s32.totalorder %v5872_v45, %v9416_v47 }
 0x376   :  { %5519 = vset.pattern.permute.xlu2 %v5751_v16  ;;  %5518 = vset.pattern.permute.xlu1 %v5745_v15  ;;  %v2097_v40 = vunpack.c.l.b16 %v1713_v21 }
 0x378   :  { %v2230_v58 = vpack.c.b16 %v2097_v40, %v2096_v63  ;;  %v3114_v40 = vmul.f32 %v6575_v52, %v6416_v54 }
 0x379   :  { %5346 = vmatmul.msk.bf16.gmra.mxu2 %vm2268_vm2, %v2229_v20  ;;  %v3425_v20 = vsel %vm3238_vm12, %v3108_v10, 0.0  ;;  %v3434_v10 = vsel %vm3238_vm12, %v3111_v50, 0.0  ;;  %v1715_v50 = vpack.c.bf16 %v1523_v56, %v1523_v56 }
 0x37a   :  { %v3443_v63 = vsel %vm3238_vm12, %v3114_v40, 0.0 }
 0x37b   :  { %3417 = vadd.xlane.f32.xlu0 %v3416_v34  ;;  %v6859_v34 = vpop.f32.mrf.mxu1 }
 0x37c   :  { %v6846_v53 = vpop.f32.mrf.mxu2 }
 0x37e   :  { %901 = vperm.xlu2 %5519, %v9405_v23   ;;  %895 = vperm.xlu1 %5518, %v9405_v23  }
 0x383   :  { %3426 = vadd.xlane.f32.xlu0 %v3425_v20  ;;  %v6880_v35 = vpop.f32.mrf.mxu1  ;;  %v1522_v20 = vsel %vm1330_vm7, 1.0, %v9338_v38 }
 0x384   :  { %v6861_v22 = vpop.f32.mrf.mxu2  ;;  %v1714_v59 = vpack.c.bf16 %v1522_v20, %v1522_v20  ;;  %v3120_v20 = vmul.f32 %v6658_v5, %v6499_v6  ;;  %v3123_v6 = vmul.f32 %v6708_v26, %v6548_v41 }
 0x385   :  { %9415 = vst [vmem:[#allocation75_spill] sm:$0xff] %v6861_v22  ;;  %v787_v22 = vpop.permute.xlu1 %786 }
 0x386   :  { %5521 = vset.pattern.permute.xlu2 %v5763_v18  ;;  %5520 = vset.pattern.permute.xlu1 %v5845_v37  ;;  %v2098_v47 = vunpack.c.l.b16 %v1714_v59  ;;  %vm1333_vm8 = vcmp.eq.s32.totalorder %v5872_v45, %v787_v22 }
 0x389   :  { %5347 = vmatmul.msk.bf16.gmra.mxu2 %vm2268_vm2, %v2230_v58  ;;  %v2099_v58 = vunpack.c.l.b16 %v1715_v50  ;;  %v9418_v50 = vld [vmem:[#allocation12_spill] sm:$0xff] }
 0x38b   :  { %3435 = vadd.xlane.f32.xlu0 %v3434_v10  ;;  %v6894_v54 = vpop.f32.mrf.mxu1  ;;  %v2231_v52 = vpack.c.b16 %v2099_v58, %v2098_v47 }
 0x38c   :  { %v6878_v21 = vpop.f32.mrf.mxu2 }
 0x38d   :  { %9417 = vst [vmem:[#allocation9_spill] sm:$0xff] %v6878_v21  ;;  %v3117_v21 = vmul.f32 %v6621_v39, %v6458_v62  ;;  %v1525_v62 = vsel %vm1333_vm8, 1.0, %v9338_v38 }
 0x38e   :  { %913 = vperm.xlu2 %5521, %v9405_v23   ;;  %907 = vperm.xlu1 %5520, %v9405_v23   ;;  %v781_v23 = vpop.permute.xlu2 %780  ;;  %v1717_v22 = vpack.c.bf16 %v1525_v62, %v1525_v62  ;;  %v9419_v62 = vld [vmem:[#allocation11_spill] sm:$0xff] }
 0x38f   :  { %v3452_v56 = vsel %vm3238_vm12, %v3117_v21, 0.0  ;;  %vm1332_vm9 = vcmp.eq.s32.totalorder %v5872_v45, %v781_v23  ;;  %v3461_v21 = vsel %vm3238_vm12, %v3120_v20, 0.0  ;;  %vm1335_vm11 = vcmp.eq.s32.totalorder %v5872_v45, %v9419_v62 }
 0x390   :  { %v1524_v40 = vsel %vm1332_vm9, 1.0, %v9338_v38  ;;  %v2101_v58 = vunpack.c.l.b16 %v1717_v22  ;;  %v3126_v22 = vmul.f32 %v6742_v36, %v6596_v29  ;;  %v805_v62 = vpop.permute.xlu1 %804 }
 0x391   :  { %v1716_v59 = vpack.c.bf16 %v1524_v40, %v1524_v40  ;;  %v1527_v40 = vsel %vm1335_vm11, 1.0, %v9338_v38  ;;  %vm1336_vm13 = vcmp.eq.s32.totalorder %v5872_v45, %v805_v62 }
 0x393   :  { %3444 = vadd.xlane.f32.xlu0 %v3443_v63  ;;  %v6908_v63 = vpop.f32.mrf.mxu1 }
 0x394   :  { %v6888_v10 = vpop.f32.mrf.mxu2 }
 0x396   :  { %5524 = vset.pattern.permute.xlu2 %v5689_v4  ;;  %5523 = vset.pattern.permute.xlu1 %v5680_v1  ;;  %v793_v5 = vpop.permute.xlu2 %792 }
 0x397   :  { %vm1334_vm10 = vcmp.eq.s32.totalorder %v5872_v45, %v793_v5 }
 0x398   :  { %v1526_v41 = vsel %vm1334_vm10, 1.0, %v9338_v38 }
 0x399   :  { %5348 = vmatmul.msk.bf16.gmra.mxu2 %vm2268_vm2, %v2231_v52  ;;  %v2100_v52 = vunpack.c.l.b16 %v1716_v59  ;;  %v1718_v59 = vpack.c.bf16 %v1526_v41, %v1526_v41 }
 0x39b   :  { %3453 = vadd.xlane.f32.xlu0 %v3452_v56  ;;  %v2232_v23 = vpack.c.b16 %v2101_v58, %v2100_v52  ;;  %v3470_v56 = vsel %vm3238_vm12, %v3123_v6, 0.0  ;;  %v6922_v20 = vpop.f32.mrf.mxu1  ;;  %v3479_v58 = vsel %vm3238_vm12, %v3126_v22, 0.0  ;;  %v2102_v52 = vunpack.c.l.b16 %v1718_v59 }
 0x39c   :  { %v6901_v39 = vpop.f32.mrf.mxu2 }
 0x39e   :  { %932 = vperm.xlu2 %5524, %v9418_v50   ;;  %926 = vperm.xlu1 %5523, %v9418_v50   ;;  %v811_v36 = vpop.permute.xlu2 %810 }
 0x39f   :  { %vm1337_vm14 = vcmp.eq.s32.totalorder %v5872_v45, %v811_v36 }
 0x3a3   :  { %3462 = vadd.xlane.f32.xlu0 %v3461_v21  ;;  %v1719_v21 = vpack.c.bf16 %v1527_v40, %v1527_v40  ;;  %v1528_v40 = vsel %vm1336_vm13, 1.0, %v9338_v38 }
 0x3a4   :  { %v6911_v47 = vpop.f32.mrf.mxu2  ;;  %v1720_v59 = vpack.c.bf16 %v1528_v40, %v1528_v40 }
 0x3a5   :  { %v2103_v5 = vunpack.c.l.b16 %v1719_v21 }
 0x3a6   :  { %5526 = vset.pattern.permute.xlu2 %v5709_v8  ;;  %5525 = vset.pattern.permute.xlu1 %v5686_v3  ;;  %v823_v36 = vpop.permute.xlu2 %822 }
 0x3a7   :  { %v2233_v29 = vpack.c.b16 %v2103_v5, %v2102_v52  ;;  %v2104_v5 = vunpack.c.l.b16 %v1720_v59  ;;  %vm1339_vm0 = vcmp.eq.s32.totalorder %v5872_v45, %v823_v36 }
 0x3a9   :  { %5349 = vmatmul.msk.bf16.gmra.mxu2 %vm2268_vm2, %v2232_v23  ;;  %v2796_v23 = vpop.f32.mrf.mxu1 }
 0x3ab   :  { %3471 = vadd.xlane.f32.xlu0 %v3470_v56  ;;  %v3129_v56 = vmul.f32 %v6783_v25, %v6634_v9  ;;  %v3132_v9 = vmul.f32 %v6840_v0, %v6682_v31  ;;  %v1529_v25 = vsel %vm1337_vm14, 1.0, %v9338_v38  ;;  %v3135_v31 = vmul.f32 %v6894_v54, %v6715_v51  ;;  %v817_v0 = vpop.permute.xlu1 %816 }
 0x3ac   :  { %v6925_v26 = vpop.f32.mrf.mxu2  ;;  %vm1338_vm15 = vcmp.eq.s32.totalorder %v5872_v45, %v817_v0 }
 0x3ad   :  { %v3488_v41 = vsel %vm3238_vm12, %v3129_v56, 0.0  ;;  %v3497_v52 = vsel %vm3238_vm12, %v3132_v9, 0.0  ;;  %v3506_v40 = vsel %vm3238_vm12, %v3135_v31, 0.0  ;;  %v1530_v51 = vsel %vm1338_vm15, 1.0, %v9338_v38 }
 0x3ae   :  { %944 = vperm.xlu2 %5526, %v9418_v50   ;;  %938 = vperm.xlu1 %5525, %v9418_v50   ;;  %v1531_v9 = vsel %vm1339_vm0, 1.0, %v9338_v38  ;;  %v1722_v59 = vpack.c.bf16 %v1530_v51, %v1530_v51  ;;  %v9420_v51 = vld [vmem:[#allocation13_spill] sm:$0xff] }
 0x3af   :  { %vm1340_vm3 = vcmp.eq.s32.totalorder %v5872_v45, %v9420_v51 }
 0x3b1   :  { %v6951_v21 = vpop.f32.mrf.mxu1 }
 0x3b3   :  { %3480 = vadd.xlane.f32.xlu0 %v3479_v58  ;;  %v1721_v58 = vpack.c.bf16 %v1529_v25, %v1529_v25  ;;  %v3138_v25 = vmul.f32 %v2796_v23, %v6749_v55  ;;  %v836_v36 = vpop.permute.xlu1 %835  ;;  %v842_v23 = vpop.permute.xlu2 %841 }
 0x3b4   :  { %v6933_v6 = vpop.f32.mrf.mxu2  ;;  %vm1341_vm1 = vcmp.eq.s32.totalorder %v5872_v45, %v836_v36  ;;  %vm1342_vm5 = vcmp.eq.s32.totalorder %v5872_v45, %v842_v23 }
 0x3b5   :  { %v2105_v62 = vunpack.c.l.b16 %v1721_v58  ;;  %v1723_v58 = vpack.c.bf16 %v1531_v9, %v1531_v9  ;;  %v1533_v9 = vsel %vm1341_vm1, 1.0, %v9338_v38 }
 0x3b6   :  { %5529 = vset.pattern.permute.xlu2 %v5727_v12  ;;  %5528 = vset.pattern.permute.xlu1 %v5706_v7 }
 0x3b7   :  { %v2107_v0 = vunpack.c.l.b16 %v1723_v58  ;;  %v1725_v58 = vpack.c.bf16 %v1533_v9, %v1533_v9 }
 0x3b9   :  { %5350 = vmatmul.msk.bf16.gmra.mxu2 %vm2268_vm2, %v2233_v29  ;;  %v2234_v29 = vpack.c.b16 %v2105_v62, %v2104_v5  ;;  %v2106_v5 = vunpack.c.l.b16 %v1722_v59  ;;  %v3144_v59 = vmul.f32 %v6846_v53, %v6789_v46 }
 0x3bb   :  { %3489 = vadd.xlane.f32.xlu0 %v3488_v41  ;;  %v6961_v41 = vpop.f32.mrf.mxu1  ;;  %v2235_v55 = vpack.c.b16 %v2107_v0, %v2106_v5  ;;  %v2109_v0 = vunpack.c.l.b16 %v1725_v58 }
 0x3bc   :  { %v6944_v22 = vpop.f32.mrf.mxu2 }
 0x3be   :  { %962 = vperm.xlu2 %5529, %v9418_v50   ;;  %956 = vperm.xlu1 %5528, %v9418_v50  }
 0x3c3   :  { %3498 = vadd.xlane.f32.xlu0 %v3497_v52  ;;  %v3515_v52 = vsel %vm3238_vm12, %v3138_v25, 0.0  ;;  %v2803_v62 = vpop.f32.mrf.mxu1  ;;  %v1532_v25 = vsel %vm1340_vm3, 1.0, %v9338_v38 }
 0x3c4   :  { %v6954_v56 = vpop.f32.mrf.mxu2  ;;  %v1724_v5 = vpack.c.bf16 %v1532_v25, %v1532_v25 }
 0x3c6   :  { %5531 = vset.pattern.permute.xlu2 %v5806_v24  ;;  %5530 = vset.pattern.permute.xlu1 %v5724_v11  ;;  %v2108_v36 = vunpack.c.l.b16 %v1724_v5 }
 0x3c8   :  { %v2236_v46 = vpack.c.b16 %v2109_v0, %v2108_v36 }
 0x3c9   :  { %5351 = vmatmul.msk.bf16.gmra.mxu2 %vm2268_vm2, %v2234_v29  ;;  %v3141_v29 = vmul.f32 %v2803_v62, %v6775_v32  ;;  %v3533_v62 = vsel %vm3238_vm12, %v3144_v59, 0.0 }
 0x3cb   :  { %3507 = vadd.xlane.f32.xlu0 %v3506_v40  ;;  %v3524_v40 = vsel %vm3238_vm12, %v3141_v29, 0.0 }
 0x3cc   :  { %v6967_v54 = vpop.f32.mrf.mxu2 }
 0x3ce   :  { %974 = vperm.xlu2 %5531, %v9418_v50   ;;  %968 = vperm.xlu1 %5530, %v9418_v50  }
 0x3d3   :  { %3516 = vadd.xlane.f32.xlu0 %v3515_v52  ;;  %v854_v52 = vpop.permute.xlu2 %853 }
 0x3d4   :  { %v6974_v31 = vpop.f32.mrf.mxu2  ;;  %vm1344_vm6 = vcmp.eq.s32.totalorder %v5872_v45, %v854_v52 }
 0x3d6   :  { %5534 = vset.pattern.permute.xlu2 %v5745_v15  ;;  %5533 = vset.pattern.permute.xlu1 %v5736_v13 }
 0x3d9   :  { %5352 = vmatmul.msk.bf16.gmra.mxu2 %vm2268_vm2, %v2235_v55  ;;  %v3147_v55 = vmul.f32 %v6802_v49, %v6888_v10  ;;  %v1534_v49 = vsel %vm1342_vm5, 1.0, %v9338_v38  ;;  %v3150_v10 = vmul.f32 %v6818_v42, %v6925_v26 }
 0x3db   :  { %3525 = vadd.xlane.f32.xlu0 %v3524_v40  ;;  %v848_v40 = vpop.permute.xlu1 %847  ;;  %v872_v53 = vpop.permute.xlu2 %871  ;;  %v3542_v51 = vsel %vm3238_vm12, %v3147_v55, 0.0  ;;  %v3551_v23 = vsel %vm3238_vm12, %v3150_v10, 0.0 }
 0x3dc   :  { %v2841_v32 = vpop.f32.mrf.mxu2  ;;  %vm1343_vm4 = vcmp.eq.s32.totalorder %v5872_v45, %v848_v40  ;;  %v3153_v40 = vmul.f32 %v6833_v60, %v6954_v56  ;;  %v1536_v60 = vsel %vm1344_vm6, 1.0, %v9338_v38  ;;  %vm1347_vm9 = vcmp.eq.s32.totalorder %v5872_v45, %v872_v53 }
 0x3dd   :  { %v1535_v9 = vsel %vm1343_vm4, 1.0, %v9338_v38  ;;  %v3156_v10 = vmul.f32 %v6851_v44, %v2841_v32  ;;  %v1728_v52 = vpack.c.bf16 %v1536_v60, %v1536_v60 }
 0x3de   :  { %992 = vperm.xlu2 %5534, %v9418_v50   ;;  %986 = vperm.xlu1 %5533, %v9418_v50   ;;  %v1727_v59 = vpack.c.bf16 %v1535_v9, %v1535_v9  ;;  %v9423_v9 = vld [vmem:[#allocation15_spill] sm:$0xff] }
 0x3df   :  { %vm1345_vm7 = vcmp.eq.s32.totalorder %v5872_v45, %v9423_v9 }
 0x3e0   :  { %v2111_v0 = vunpack.c.l.b16 %v1727_v59  ;;  %v9425_v59 = vld [vmem:[#allocation14_spill] sm:$0xff] }
 0x3e3   :  { %3534 = vadd.xlane.f32.xlu0 %v3533_v62  ;;  %v7009_v58 = vpop.permute.xlu2 %883  ;;  %v866_v5 = vpop.permute.xlu1 %865  ;;  %v1726_v62 = vpack.c.bf16 %v1534_v49, %v1534_v49  ;;  %v1537_v49 = vsel %vm1345_vm7, 1.0, %v9338_v38 }
 0x3e4   :  { %v6991_v29 = vpop.f32.mrf.mxu2  ;;  %vm1346_vm8 = vcmp.eq.s32.totalorder %v5872_v45, %v866_v5  ;;  %v7055_v5 = vld [vmem:[%s9258_s1 + $0x20] sm:$0xff]  ;;  %vm1349_vm14 = vcmp.eq.s32.totalorder %v5872_v45, %v7009_v58 }
 0x3e5   :  { %9421 = vst [vmem:[#allocation12_spill] sm:$0xff] %v6991_v29  ;;  %v2110_v55 = vunpack.c.l.b16 %v1726_v62 }
 0x3e6   :  { %5536 = vset.pattern.permute.xlu2 %v5845_v37  ;;  %5535 = vset.pattern.permute.xlu1 %v5751_v16 }
 0x3e7   :  { %v2237_v42 = vpack.c.b16 %v2111_v0, %v2110_v55  ;;  %v1729_v0 = vpack.c.bf16 %v1537_v49, %v1537_v49  ;;  %v3569_v55 = vsel %vm3238_vm12, %v3156_v10, 0.0 }
 0x3e9   :  { %5353 = vmatmul.msk.bf16.gmra.mxu2 %vm2268_vm2, %v2236_v46 }
 0x3eb   :  { %3543 = vadd.xlane.f32.xlu0 %v3542_v51  ;;  %v7016_v26 = vpop.permute.xlu2 %901  ;;  %v7018_v46 = vpop.permute.xlu1 %877  ;;  %v3560_v51 = vsel %vm3238_vm12, %v3153_v40, 0.0  ;;  %v2112_v40 = vunpack.c.l.b16 %v1728_v52 }
 0x3ec   :  { %v7002_v25 = vpop.f32.mrf.mxu2  ;;  %vm1348_vm13 = vcmp.eq.s32.totalorder %v5872_v45, %v7018_v46  ;;  %vm1352_vm7 = vcmp.eq.s32.totalorder %v5872_v45, %v7016_v26 }
 0x3ed   :  { %9422 = vst [vmem:[#allocation11_spill] sm:$0xff] %v7002_v25  ;;  %v9529_v25 = vld [vmem:[#allocation24_spill] sm:$0xff] }
 0x3ee   :  { %1004 = vperm.xlu2 %5536, %v9418_v50   ;;  %998 = vperm.xlu1 %5535, %v9418_v50  }
 0x3f3   :  { %3552 = vadd.xlane.f32.xlu0 %v3551_v23  ;;  %v7032_v62 = vpop.permute.xlu2 %913  ;;  %v7034_v23 = vpop.permute.xlu1 %895 }
 0x3f4   :  { %v2848_v36 = vpop.f32.mrf.mxu2  ;;  %vm1351_vm1 = vcmp.eq.s32.totalorder %v5872_v45, %v7034_v23 }
 0x3f5   :  { %v3159_v9 = vmul.f32 %v6866_v30, %v2848_v36  ;;  %v1538_v30 = vsel %vm1346_vm8, 1.0, %v9338_v38  ;;  %v1539_v36 = vsel %vm1347_vm9, 1.0, %v9338_v38 }
 0x3f6   :  { %5539 = vset.pattern.permute.xlu2 %v5680_v1  ;;  %5538 = vset.pattern.permute.xlu1 %v5760_v17  ;;  %v1730_v53 = vpack.c.bf16 %v1538_v30, %v1538_v30 }
 0x3f7   :  { %v3578_v60 = vsel %vm3238_vm12, %v3159_v9, 0.0 }
 0x3f8   :  { %v2114_v9 = vunpack.c.l.b16 %v1730_v53 }
 0x3f9   :  { %5354 = vmatmul.msk.bf16.gmra.mxu2 %vm2268_vm2, %v2237_v42 }
 0x3fb   :  { %3561 = vadd.xlane.f32.xlu0 %v3560_v51  ;;  %v2113_v51 = vunpack.c.l.b16 %v1729_v0  ;;  %v1731_v0 = vpack.c.bf16 %v1539_v36, %v1539_v36 }
 0x3fc   :  { %v7026_v56 = vpop.f32.mrf.mxu2 }
 0x3fd   :  { %9424 = vst [vmem:[#allocation13_spill] sm:$0xff] %v7026_v56  ;;  %v2238_v44 = vpack.c.b16 %v2113_v51, %v2112_v40 }
 0x3fe   :  { %1023 = vperm.xlu2 %5539, %v9425_v59   ;;  %1016 = vperm.xlu1 %5538, %v9418_v50   ;;  %v933_v50 = vpop.permute.xlu2 %932 }
 0x3ff   :  { %vm1357_vm10 = vcmp.eq.s32.totalorder %v5872_v45, %v933_v50 }
 0x400   :  { %v7042_v32 = vpop.permute.xlu1 %907  ;;  %v1549_v49 = vsel %vm1357_vm10, 1.0, %v9338_v38  ;;  %vm1354_vm10 = vcmp.eq.s32.totalorder %v5872_v45, %v7032_v62 }
 0x401   :  { %vm1353_vm6 = vcmp.eq.s32.totalorder %v5872_v45, %v7042_v32  ;;  %v1544_v32 = vsel %vm1352_vm7, 1.0, %v9338_v38 }
 0x403   :  { %3570 = vadd.xlane.f32.xlu0 %v3569_v55  ;;  %v1741_v55 = vpack.c.bf16 %v1549_v49, %v1549_v49 }
 0x404   :  { %v7037_v42 = vpop.f32.mrf.mxu2 }
 0x405   :  { %9426 = vst [vmem:[#allocation15_spill] sm:$0xff] %v7037_v42 }
 0x406   :  { %5541 = vset.pattern.permute.xlu2 %v5686_v3  ;;  %5540 = vset.pattern.permute.xlu1 %v5689_v4 }
 0x408   :  { %v945_v49 = vpop.permute.xlu2 %944 }
 0x409   :  { %5355 = vmatmul.msk.bf16.gmra.mxu2 %vm2268_vm2, %v2238_v44  ;;  %vm1359_vm15 = vcmp.eq.s32.totalorder %v5872_v45, %v945_v49 }
 0x40b   :  { %3579 = vadd.xlane.f32.xlu0 %v3578_v60  ;;  %v2115_v60 = vunpack.c.l.b16 %v1731_v0 }
 0x40c   :  { %v2856_v3 = vpop.f32.mrf.mxu2 }
 0x40d   :  { %v3162_v10 = vmul.f32 %v7055_v5, %v2856_v3  ;;  %v2125_v3 = vunpack.c.l.b16 %v1741_v55  ;;  %v2239_v30 = vpack.c.b16 %v2115_v60, %v2114_v9 }
 0x40e   :  { %1035 = vperm.xlu2 %5541, %v9425_v59   ;;  %1029 = vperm.xlu1 %5540, %v9425_v59  }
 0x40f   :  { %v3587_v51 = vsel %vm3238_vm12, %v3162_v10, 0.0  ;;  %v1540_v10 = vsel %vm1348_vm13, 1.0, %v9338_v38 }
 0x410   :  { %v927_v52 = vpop.permute.xlu1 %926  ;;  %v1732_v46 = vpack.c.bf16 %v1540_v10, %v1540_v10 }
 0x411   :  { %vm1356_vm11 = vcmp.eq.s32.totalorder %v5872_v45, %v927_v52  ;;  %v1541_v52 = vsel %vm1349_vm14, 1.0, %v9338_v38 }
 0x412   :  { %v1548_v40 = vsel %vm1356_vm11, 1.0, %v9338_v38  ;;  %v1733_v55 = vpack.c.bf16 %v1541_v52, %v1541_v52 }
 0x413   :  { %v1740_v44 = vpack.c.bf16 %v1548_v40, %v1548_v40  ;;  %3588 = vadd.xlane.f32.xlu0 %v3587_v51  ;;  %v2116_v51 = vunpack.c.l.b16 %v1732_v46  ;;  %v9429_v46 = vld [vmem:[#allocation16_spill] sm:$0xff] }
 0x414   :  { %v7063_v50 = vpop.f32.mrf.mxu2  ;;  %v2117_v60 = vunpack.c.l.b16 %v1733_v55  ;;  %vm1350_vm3 = vcmp.eq.s32.totalorder %v5872_v45, %v9429_v46 }
 0x415   :  { %9427 = vst [vmem:[#allocation14_spill] sm:$0xff] %v7063_v50  ;;  %v2124_v56 = vunpack.c.l.b16 %v1740_v44  ;;  %v9521_v50 = vld [vmem:[#allocation40_spill] sm:$0xff] }
 0x416   :  { %5544 = vset.pattern.permute.xlu2 %v5706_v7  ;;  %5543 = vset.pattern.permute.xlu1 %v5683_v2  ;;  %v2240_v10 = vpack.c.b16 %v2117_v60, %v2116_v51 }
 0x417   :  { %v2244_v36 = vpack.c.b16 %v2125_v3, %v2124_v56  ;;  %v1551_v56 = vsel %vm1359_vm15, 1.0, %v9338_v38 }
 0x418   :  { %v1743_v40 = vpack.c.bf16 %v1551_v56, %v1551_v56 }
 0x419   :  { %5356 = vmatmul.msk.bf16.gmra.mxu2 %vm2268_vm2, %v2239_v30  ;;  %5361 = vmatmul.msk.bf16.vlgmr.msra.gmra.mxu3 %vm2268_vm2, %v2244_v36  ;;  %v7086_v36 = vld [vmem:[%s9258_s1 + $0x38] sm:$0xff] }
 0x41a   :  { %v2127_v3 = vunpack.c.l.b16 %v1743_v40  ;;  %v1542_v40 = vsel %vm1350_vm3, 1.0, %v9338_v38 }
 0x41c   :  { %v7075_v53 = vpop.f32.mrf.mxu2 }
 0x41d   :  { %9428 = vst [vmem:[#allocation76_spill] sm:$0xff] %v7075_v53 }
 0x41e   :  { %1053 = vperm.xlu2 %5544, %v9425_v59   ;;  %1047 = vperm.xlu1 %5543, %v9425_v59  }
 0x420   :  { %v939_v0 = vpop.permute.xlu1 %938 }
 0x421   :  { %vm1358_vm0 = vcmp.eq.s32.totalorder %v5872_v45, %v939_v0  ;;  %v9430_v0 = vld [vmem:[#allocation18_spill] sm:$0xff] }
 0x422   :  { %v1550_v58 = vsel %vm1358_vm0, 1.0, %v9338_v38  ;;  %vm1360_vm4 = vcmp.eq.s32.totalorder %v5872_v45, %v9430_v0 }
 0x423   :  { %v1742_v9 = vpack.c.bf16 %v1550_v58, %v1550_v58  ;;  %v1552_v58 = vsel %vm1360_vm4, 1.0, %v9338_v38 }
 0x424   :  { %v2863_v44 = vpop.f32.mrf.mxu2 }
 0x425   :  { %v2126_v30 = vunpack.c.l.b16 %v1742_v9  ;;  %v3165_v49 = vmul.f32 %v7086_v36, %v2863_v44  ;;  %v1734_v9 = vpack.c.bf16 %v1542_v40, %v1542_v40  ;;  %v1744_v44 = vpack.c.bf16 %v1552_v58, %v1552_v58 }
 0x426   :  { %5546 = vset.pattern.permute.xlu2 %v5724_v11  ;;  %5545 = vset.pattern.permute.xlu1 %v5727_v12  ;;  %v1543_v11 = vsel %vm1351_vm1, 1.0, %v9338_v38  ;;  %v1545_v40 = vsel %vm1353_vm6, 1.0, %v9338_v38 }
 0x427   :  { %v3596_v52 = vsel %vm3238_vm12, %v3165_v49, 0.0  ;;  %v2245_v56 = vpack.c.b16 %v2127_v3, %v2126_v30  ;;  %v1735_v23 = vpack.c.bf16 %v1543_v11, %v1543_v11  ;;  %v963_v11 = vpop.permute.xlu2 %962  ;;  %v1737_v26 = vpack.c.bf16 %v1545_v40, %v1545_v40 }
 0x428   :  { %3597 = vadd.xlane.f32.xlu0 %v3596_v52  ;;  %v2128_v52 = vunpack.c.l.b16 %v1744_v44  ;;  %vm1362_vm8 = vcmp.eq.s32.totalorder %v5872_v45, %v963_v11 }
 0x429   :  { %5357 = vmatmul.msk.bf16.gmra.mxu2 %vm2268_vm2, %v2240_v10  ;;  %5362 = vmatmul.msk.bf16.gmra.mxu3 %vm2268_vm2, %v2245_v56  ;;  %v2119_v3 = vunpack.c.l.b16 %v1735_v23  ;;  %v2118_v10 = vunpack.c.l.b16 %v1734_v9  ;;  %v7124_v23 = vld [vmem:[%s9258_s1 + $0x50] sm:$0xff]  ;;  %v1554_v9 = vsel %vm1362_vm8, 1.0, %v9338_v38 }
 0x42b   :  { %v2241_v46 = vpack.c.b16 %v2119_v3, %v2118_v10  ;;  %v1736_v3 = vpack.c.bf16 %v1544_v32, %v1544_v32  ;;  %v9434_v32 = vld [vmem:[#allocation17_spill] sm:$0xff] }
 0x42c   :  { %v7101_v55 = vpop.f32.mrf.mxu2  ;;  %vm1355_vm13 = vcmp.eq.s32.totalorder %v5872_v45, %v9434_v32 }
 0x42d   :  { %9431 = vst [vmem:[#allocation16_spill] sm:$0xff] %v7101_v55  ;;  %v1547_v62 = vsel %vm1355_vm13, 1.0, %v9338_v38 }
 0x42e   :  { %1065 = vperm.xlu2 %5546, %v9425_v59   ;;  %1059 = vperm.xlu1 %5545, %v9425_v59  }
 0x42f   :  { %v975_v55 = vpop.permute.xlu2 %974 }
 0x430   :  { %v957_v51 = vpop.permute.xlu1 %956  ;;  %vm1364_vm11 = vcmp.eq.s32.totalorder %v5872_v45, %v975_v55 }
 0x431   :  { %vm1361_vm5 = vcmp.eq.s32.totalorder %v5872_v45, %v957_v51 }
 0x432   :  { %v1553_v60 = vsel %vm1361_vm5, 1.0, %v9338_v38 }
 0x433   :  { %v1745_v30 = vpack.c.bf16 %v1553_v60, %v1553_v60 }
 0x434   :  { %v7109_v49 = vpop.f32.mrf.mxu2 }
 0x435   :  { %9432 = vst [vmem:[#allocation18_spill] sm:$0xff] %v7109_v49  ;;  %v2129_v56 = vunpack.c.l.b16 %v1745_v30  ;;  %v1746_v30 = vpack.c.bf16 %v1554_v9, %v1554_v9  ;;  %v9435_v9 = vld [vmem:[#allocation19_spill] sm:$0xff] }
 0x436   :  { %5549 = vset.pattern.permute.xlu2 %v5736_v13  ;;  %5548 = vset.pattern.permute.xlu1 %v5739_v14  ;;  %vm1365_vm14 = vcmp.eq.s32.totalorder %v5872_v45, %v9435_v9 }
 0x437   :  { %v2246_v0 = vpack.c.b16 %v2129_v56, %v2128_v52  ;;  %v2121_v52 = vunpack.c.l.b16 %v1737_v26  ;;  %v2130_v11 = vunpack.c.l.b16 %v1746_v30  ;;  %v1556_v26 = vsel %vm1364_vm11, 1.0, %v9338_v38 }
 0x438   :  { %v1557_v55 = vsel %vm1365_vm14, 1.0, %v9338_v38  ;;  %v1739_v30 = vpack.c.bf16 %v1547_v62, %v1547_v62  ;;  %v993_v62 = vpop.permute.xlu2 %992 }
 0x439   :  { %5358 = vmatmul.msk.bf16.gmra.mxu2 %vm2268_vm2, %v2241_v46  ;;  %5363 = vmatmul.msk.bf16.gmra.mxu3 %vm2268_vm2, %v2246_v0  ;;  %v2120_v0 = vunpack.c.l.b16 %v1736_v3  ;;  %v1748_v3 = vpack.c.bf16 %v1556_v26, %v1556_v26  ;;  %vm1367_vm0 = vcmp.eq.s32.totalorder %v5872_v45, %v993_v62 }
 0x43b   :  { %v2242_v40 = vpack.c.b16 %v2121_v52, %v2120_v0 }
 0x43c   :  { %v2871_v58 = vpop.f32.mrf.mxu2 }
 0x43d   :  { %v3168_v51 = vmul.f32 %v7124_v23, %v2871_v58 }
 0x43e   :  { %1083 = vperm.xlu2 %5549, %v9425_v59   ;;  %1077 = vperm.xlu1 %5548, %v9425_v59  }
 0x43f   :  { %v3605_v44 = vsel %vm3238_vm12, %v3168_v51, 0.0 }
 0x440   :  { %v969_v60 = vpop.permute.xlu1 %968  ;;  %3606 = vadd.xlane.f32.xlu0 %v3605_v44 }
 0x441   :  { %vm1363_vm9 = vcmp.eq.s32.totalorder %v5872_v45, %v969_v60 }
 0x442   :  { %v1555_v10 = vsel %vm1363_vm9, 1.0, %v9338_v38 }
 0x443   :  { %v1747_v56 = vpack.c.bf16 %v1555_v10, %v1555_v10  ;;  %v1749_v10 = vpack.c.bf16 %v1557_v55, %v1557_v55 }
 0x444   :  { %v7134_v46 = vpop.f32.mrf.mxu2 }
 0x445   :  { %9433 = vst [vmem:[#allocation77_spill] sm:$0xff] %v7134_v46  ;;  %v2131_v58 = vunpack.c.l.b16 %v1747_v56  ;;  %v2132_v56 = vunpack.c.l.b16 %v1748_v3  ;;  %v1559_v3 = vsel %vm1367_vm0, 1.0, %v9338_v38 }
 0x446   :  { %5551 = vset.pattern.permute.xlu2 %v5751_v16  ;;  %5550 = vset.pattern.permute.xlu1 %v5745_v15  ;;  %v1546_v16 = vsel %vm1354_vm10, 1.0, %v9338_v38 }
 0x447   :  { %v2247_v51 = vpack.c.b16 %v2131_v58, %v2130_v11  ;;  %v1738_v60 = vpack.c.bf16 %v1546_v16, %v1546_v16  ;;  %v2123_v11 = vunpack.c.l.b16 %v1739_v30  ;;  %v2133_v58 = vunpack.c.l.b16 %v1749_v10 }
 0x448   :  { %v1751_v10 = vpack.c.bf16 %v1559_v3, %v1559_v3 }
 0x449   :  { %5359 = vmatmul.msk.bf16.gmra.mxu2 %vm2268_vm2, %v2242_v40  ;;  %5364 = vmatmul.msk.bf16.gmra.mxu3 %vm2268_vm2, %v2247_v51  ;;  %v2122_v52 = vunpack.c.l.b16 %v1738_v60  ;;  %v7158_v40 = vld [vmem:[%s9258_s1 + $0x68] sm:$0xff]  ;;  %v2248_v26 = vpack.c.b16 %v2133_v58, %v2132_v56 }
 0x44b   :  { %v2243_v9 = vpack.c.b16 %v2123_v11, %v2122_v52 }
 0x44c   :  { %v7149_v44 = vpop.f32.mrf.mxu2 }
 0x44d   :  { %9436 = vst [vmem:[#allocation17_spill] sm:$0xff] %v7149_v44 }
 0x44e   :  { %1095 = vperm.xlu2 %5551, %v9425_v59   ;;  %1089 = vperm.xlu1 %5550, %v9425_v59  }
 0x450   :  { %v987_v32 = vpop.permute.xlu1 %986 }
 0x451   :  { %vm1366_vm15 = vcmp.eq.s32.totalorder %v5872_v45, %v987_v32 }
 0x452   :  { %v1558_v55 = vsel %vm1366_vm15, 1.0, %v9338_v38 }
 0x453   :  { %v1750_v30 = vpack.c.bf16 %v1558_v55, %v1558_v55 }
 0x454   :  { %v2878_v0 = vpop.f32.mrf.mxu2 }
 0x455   :  { %v3171_v51 = vmul.f32 %v7158_v40, %v2878_v0  ;;  %v2134_v52 = vunpack.c.l.b16 %v1750_v30  ;;  %v2135_v0 = vunpack.c.l.b16 %v1751_v10 }
 0x456   :  { %5554 = vset.pattern.permute.xlu2 %v5760_v17  ;;  %5553 = vset.pattern.permute.xlu1 %v5763_v18 }
 0x457   :  { %v3614_v16 = vsel %vm3238_vm12, %v3171_v51, 0.0  ;;  %v2249_v58 = vpack.c.b16 %v2135_v0, %v2134_v52  ;;  %v1005_v51 = vpop.permute.xlu2 %1004 }
 0x458   :  { %3615 = vadd.xlane.f32.xlu0 %v3614_v16  ;;  %vm1369_vm3 = vcmp.eq.s32.totalorder %v5872_v45, %v1005_v51 }
 0x459   :  { %5360 = vmatmul.msk.bf16.gmra.mxu2 %vm2268_vm2, %v2243_v9  ;;  %5365 = vmatmul.msk.bf16.gmra.mxu3 %vm2268_vm2, %v2248_v26  ;;  %v7185_v9 = vld [vmem:[%s9258_s1] sm:$0xff]  ;;  %v1561_v16 = vsel %vm1369_vm3, 1.0, %v9338_v38 }
 0x45a   :  { %v1753_v55 = vpack.c.bf16 %v1561_v16, %v1561_v16 }
 0x45c   :  { %v7169_v60 = vpop.f32.mrf.mxu2  ;;  %v2137_v10 = vunpack.c.l.b16 %v1753_v55 }
 0x45d   :  { %9437 = vst [vmem:[#allocation19_spill] sm:$0xff] %v7169_v60 }
 0x45e   :  { %1113 = vperm.xlu2 %5554, %v9425_v59   ;;  %1107 = vperm.xlu1 %5553, %v9425_v59  }
 0x460   :  { %v999_v11 = vpop.permute.xlu1 %998 }
 0x461   :  { %vm1368_vm1 = vcmp.eq.s32.totalorder %v5872_v45, %v999_v11  ;;  %v9440_v11 = vld [vmem:[#allocation21_spill] sm:$0xff] }
 0x462   :  { %v1560_v59 = vsel %vm1368_vm1, 1.0, %v9338_v38  ;;  %vm1370_vm5 = vcmp.eq.s32.totalorder %v5872_v45, %v9440_v11 }
 0x463   :  { %v1752_v26 = vpack.c.bf16 %v1560_v59, %v1560_v59  ;;  %v1562_v59 = vsel %vm1370_vm5, 1.0, %v9338_v38 }
 0x464   :  { %v7174_v56 = vpop.f32.mrf.mxu2 }
 0x465   :  { %9438 = vst [vmem:[#allocation78_spill] sm:$0xff] %v7174_v56  ;;  %v2136_v3 = vunpack.c.l.b16 %v1752_v26  ;;  %v7209_v26 = vld [vmem:[%s9258_s1 + $0x18] sm:$0xff] }
 0x466   :  { %5556 = vset.pattern.permute.xlu2 %v5689_v4  ;;  %5555 = vset.pattern.permute.xlu1 %v5680_v1  ;;  %v9453_v1 = vld [vmem:[#allocation31_spill] sm:$0xff] }
 0x467   :  { %v2250_v0 = vpack.c.b16 %v2137_v10, %v2136_v3  ;;  %vm1380_vm0 = vcmp.eq.s32.totalorder %v5872_v45, %v9453_v1 }
 0x469   :  { %5366 = vmatmul.msk.bf16.gmra.mxu3 %vm2268_vm2, %v2249_v58 }
 0x46c   :  { %v2886_v32 = vpop.f32.mrf.mxu2 }
 0x46d   :  { %v3174_v4 = vmul.f32 %v7185_v9, %v2886_v32 }
 0x46e   :  { %1126 = vperm.xlu2 %5556, %v6031_v48   ;;  %1120 = vperm.xlu1 %5555, %v6031_v48  }
 0x46f   :  { %v3623_v62 = vsel %vm3238_vm12, %v3174_v4, 0.0 }
 0x470   :  { %3624 = vadd.xlane.f32.xlu0 %v3623_v62  ;;  %v1017_v52 = vpop.permute.xlu1 %1016 }
 0x471   :  { %vm1371_vm4 = vcmp.eq.s32.totalorder %v5872_v45, %v1017_v52  ;;  %v1024_v52 = vpop.permute.xlu2 %1023 }
 0x472   :  { %v1563_v58 = vsel %vm1371_vm4, 1.0, %v9338_v38  ;;  %vm1372_vm7 = vcmp.eq.s32.totalorder %v5872_v45, %v1024_v52 }
 0x474   :  { %v7192_v30 = vpop.f32.mrf.mxu2 }
 0x475   :  { %9439 = vst [vmem:[#allocation79_spill] sm:$0xff] %v7192_v30 }
 0x476   :  { %5559 = vset.pattern.permute.xlu2 %v5683_v2  ;;  %5558 = vset.pattern.permute.xlu1 %v5709_v8  ;;  %v1755_v2 = vpack.c.bf16 %v1563_v58, %v1563_v58  ;;  %v1754_v8 = vpack.c.bf16 %v1562_v59, %v1562_v59  ;;  %v1564_v58 = vsel %vm1372_vm7, 1.0, %v9338_v38 }
 0x478   :  { %v2139_v32 = vunpack.c.l.b16 %v1755_v2  ;;  %v2138_v16 = vunpack.c.l.b16 %v1754_v8 }
 0x479   :  { %5367 = vmatmul.msk.bf16.gmra.mxu3 %vm2268_vm2, %v2250_v0 }
 0x47a   :  { %v2251_v10 = vpack.c.b16 %v2139_v32, %v2138_v16  ;;  %v1036_v32 = vpop.permute.xlu2 %1035  ;;  %v9444_v16 = vld [vmem:[#allocation23_spill] sm:$0xff] }
 0x47b   :  { %vm1374_vm8 = vcmp.eq.s32.totalorder %v5872_v45, %v1036_v32  ;;  %vm1375_vm9 = vcmp.eq.s32.totalorder %v5872_v45, %v9444_v16 }
 0x47c   :  { %v7201_v51 = vpop.f32.mrf.mxu2 }
 0x47d   :  { %9441 = vst [vmem:[#allocation21_spill] sm:$0xff] %v7201_v51 }
 0x47e   :  { %1144 = vperm.xlu2 %5559, %v6031_v48   ;;  %1138 = vperm.xlu1 %5558, %v6031_v48  }
 0x480   :  { %v1030_v55 = vpop.permute.xlu1 %1029 }
 0x481   :  { %vm1373_vm6 = vcmp.eq.s32.totalorder %v5872_v45, %v1030_v55 }
 0x482   :  { %v1565_v0 = vsel %vm1373_vm6, 1.0, %v9338_v38  ;;  %v1054_v16 = vpop.permute.xlu2 %1053 }
 0x483   :  { %vm1377_vm11 = vcmp.eq.s32.totalorder %v5872_v45, %v1054_v16 }
 0x484   :  { %v2893_v4 = vpop.f32.mrf.mxu2 }
 0x485   :  { %v3177_v62 = vmul.f32 %v7209_v26, %v2893_v4 }
 0x486   :  { %5561 = vset.pattern.permute.xlu2 %v5727_v12  ;;  %5560 = vset.pattern.permute.xlu1 %v5706_v7  ;;  %v1757_v7 = vpack.c.bf16 %v1565_v0, %v1565_v0  ;;  %v1756_v12 = vpack.c.bf16 %v1564_v58, %v1564_v58 }
 0x487   :  { %v3632_v3 = vsel %vm3238_vm12, %v3177_v62, 0.0  ;;  %v1566_v62 = vsel %vm1374_vm8, 1.0, %v9338_v38 }
 0x488   :  { %3633 = vadd.xlane.f32.xlu0 %v3632_v3  ;;  %v2141_v59 = vunpack.c.l.b16 %v1757_v7  ;;  %v2140_v8 = vunpack.c.l.b16 %v1756_v12  ;;  %v1758_v52 = vpack.c.bf16 %v1566_v62, %v1566_v62 }
 0x489   :  { %5368 = vmatmul.msk.bf16.gmra.mxu3 %vm2268_vm2, %v2251_v10  ;;  %v7238_v10 = vld [vmem:[%s9258_s1 + $0x30] sm:$0xff] }
 0x48a   :  { %v2252_v4 = vpack.c.b16 %v2141_v59, %v2140_v8  ;;  %v2142_v7 = vunpack.c.l.b16 %v1758_v52 }
 0x48c   :  { %v7219_v11 = vpop.f32.mrf.mxu2 }
 0x48d   :  { %9442 = vst [vmem:[#allocation80_spill] sm:$0xff] %v7219_v11 }
 0x48e   :  { %1156 = vperm.xlu2 %5561, %v6031_v48   ;;  %1150 = vperm.xlu1 %5560, %v6031_v48  }
 0x490   :  { %v1048_v32 = vpop.permute.xlu1 %1047 }
 0x491   :  { %vm1376_vm10 = vcmp.eq.s32.totalorder %v5872_v45, %v1048_v32 }
 0x492   :  { %v1568_v62 = vsel %vm1376_vm10, 1.0, %v9338_v38 }
 0x494   :  { %v7224_v2 = vpop.f32.mrf.mxu2 }
 0x495   :  { %9443 = vst [vmem:[#allocation81_spill] sm:$0xff] %v7224_v2 }
 0x496   :  { %5564 = vset.pattern.permute.xlu2 %v5739_v14  ;;  %5563 = vset.pattern.permute.xlu1 %v5806_v24  ;;  %v1567_v24 = vsel %vm1375_vm9, 1.0, %v9338_v38 }
 0x497   :  { %v1759_v58 = vpack.c.bf16 %v1567_v24, %v1567_v24  ;;  %v1569_v24 = vsel %vm1377_vm11, 1.0, %v9338_v38 }
 0x499   :  { %5369 = vmatmul.msk.bf16.gmra.mxu3 %vm2268_vm2, %v2252_v4  ;;  %v2143_v8 = vunpack.c.l.b16 %v1759_v58 }
 0x49b   :  { %v2253_v4 = vpack.c.b16 %v2143_v8, %v2142_v7  ;;  %v7267_v8 = vld [vmem:[%s9258_s1 + $0x48] sm:$0xff] }
 0x49c   :  { %v2901_v55 = vpop.f32.mrf.mxu2  ;;  %v7233_v3 = vpop.f32.mrf.mxu3 }
 0x49d   :  { %9445 = vst [vmem:[#allocation23_spill] sm:$0xff] %v7233_v3  ;;  %v3180_v14 = vmul.f32 %v7238_v10, %v2901_v55 }
 0x49e   :  { %1174 = vperm.xlu2 %5564, %v6031_v48   ;;  %1168 = vperm.xlu1 %5563, %v6031_v48  }
 0x49f   :  { %v3641_v0 = vsel %vm3238_vm12, %v3180_v14, 0.0 }
 0x4a0   :  { %3642 = vadd.xlane.f32.xlu0 %v3641_v0 }
 0x4a4   :  { %v7245_v12 = vpop.f32.mrf.mxu2  ;;  %v7247_v59 = vpop.f32.mrf.mxu3 }
 0x4a5   :  { %9446 = vst [vmem:[#allocation82_spill] sm:$0xff] %v7245_v12 }
 0x4a6   :  { %9447 = vst [vmem:[#allocation83_spill] sm:$0xff] %v7247_v59  ;;  %5566 = vset.pattern.permute.xlu2 %v5745_v15  ;;  %5565 = vset.pattern.permute.xlu1 %v5736_v13  ;;  %v1760_v13 = vpack.c.bf16 %v1568_v62, %v1568_v62  ;;  %v1761_v15 = vpack.c.bf16 %v1569_v24, %v1569_v24  ;;  %v1066_v24 = vpop.permute.xlu2 %1065 }
 0x4a7   :  { %vm1379_vm14 = vcmp.eq.s32.totalorder %v5872_v45, %v1066_v24 }
 0x4a8   :  { %v2144_v52 = vunpack.c.l.b16 %v1760_v13  ;;  %v2145_v7 = vunpack.c.l.b16 %v1761_v15 }
 0x4a9   :  { %5370 = vmatmul.msk.bf16.gmra.mxu3 %vm2268_vm2, %v2253_v4  ;;  %v1060_v4 = vpop.permute.xlu1 %1059 }
 0x4aa   :  { %v2254_v62 = vpack.c.b16 %v2145_v7, %v2144_v52  ;;  %vm1378_vm13 = vcmp.eq.s32.totalorder %v5872_v45, %v1060_v4 }
 0x4ab   :  { %v1570_v13 = vsel %vm1378_vm13, 1.0, %v9338_v38 }
 0x4ac   :  { %v7255_v55 = vpop.f32.mrf.mxu2  ;;  %v7257_v14 = vpop.f32.mrf.mxu3 }
 0x4ad   :  { %9448 = vst [vmem:[#allocation84_spill] sm:$0xff] %v7255_v55  ;;  %v9495_v55 = vld [vmem:[#allocation56_spill] sm:$0xff] }
 0x4ae   :  { %1186 = vperm.xlu2 %5566, %v6031_v48   ;;  %1180 = vperm.xlu1 %5565, %v6031_v48  }
 0x4b4   :  { %v2908_v0 = vpop.f32.mrf.mxu2  ;;  %v7262_v58 = vpop.f32.mrf.mxu3 }
 0x4b5   :  { %9449 = vst [vmem:[#allocation85_spill] sm:$0xff] %v7262_v58  ;;  %v3183_v32 = vmul.f32 %v7267_v8, %v2908_v0 }
 0x4b6   :  { %5568 = vset.pattern.permute.xlu2 %v5763_v18  ;;  %5567 = vset.pattern.permute.xlu1 %v5845_v37  ;;  %v1571_v18 = vsel %vm1379_vm14, 1.0, %v9338_v38  ;;  %v1762_v37 = vpack.c.bf16 %v1570_v13, %v1570_v13 }
 0x4b7   :  { %v3650_v16 = vsel %vm3238_vm12, %v3183_v32, 0.0  ;;  %v1763_v52 = vpack.c.bf16 %v1571_v18, %v1571_v18 }
 0x4b8   :  { %3651 = vadd.xlane.f32.xlu0 %v3650_v16  ;;  %v2146_v7 = vunpack.c.l.b16 %v1762_v37 }
 0x4b9   :  { %5371 = vmatmul.msk.bf16.gmra.mxu3 %vm2268_vm2, %v2254_v62  ;;  %v2147_v16 = vunpack.c.l.b16 %v1763_v52  ;;  %v1078_v62 = vpop.permute.xlu1 %1077  ;;  %v7299_v52 = vld [vmem:[%s9258_s1 + $0x60] sm:$0xff] }
 0x4ba   :  { %vm1381_vm15 = vcmp.eq.s32.totalorder %v5872_v45, %v1078_v62 }
 0x4bb   :  { %v2255_v24 = vpack.c.b16 %v2147_v16, %v2146_v7  ;;  %v1573_v13 = vsel %vm1381_vm15, 1.0, %v9338_v38  ;;  %v1572_v7 = vsel %vm1380_vm0, 1.0, %v9338_v38 }
 0x4bc   :  { %v7277_v15 = vpop.f32.mrf.mxu2  ;;  %v7279_v0 = vpop.f32.mrf.mxu3  ;;  %v1765_v16 = vpack.c.bf16 %v1573_v13, %v1573_v13  ;;  %v1764_v1 = vpack.c.bf16 %v1572_v7, %v1572_v7 }
 0x4bd   :  { %9450 = vst [vmem:[#allocation86_spill] sm:$0xff] %v7277_v15  ;;  %v1084_v15 = vpop.permute.xlu2 %1083 }
 0x4be   :  { %9451 = vst [vmem:[#allocation87_spill] sm:$0xff] %v7279_v0  ;;  %1204 = vperm.xlu2 %5568, %v6031_v48   ;;  %1198 = vperm.xlu1 %5567, %v6031_v48   ;;  %v2148_v0 = vunpack.c.l.b16 %v1764_v1  ;;  %vm1382_vm3 = vcmp.eq.s32.totalorder %v5872_v45, %v1084_v15  ;;  %v7325_v15 = vld [vmem:[%s9258_s1 + $0x78] sm:$0xff] }
 0x4c1   :  { %v1090_v3 = vpop.permute.xlu1 %1089 }
 0x4c2   :  { %vm1383_vm1 = vcmp.eq.s32.totalorder %v5872_v45, %v1090_v3 }
 0x4c4   :  { %v7284_v32 = vpop.f32.mrf.mxu2  ;;  %v7286_v4 = vpop.f32.mrf.mxu3 }
 0x4c5   :  { %9452 = vst [vmem:[#allocation88_spill] sm:$0xff] %v7284_v32 }
 0x4c6   :  { %5569 = vset.pattern.permute.xlu1 %v5760_v17 }
 0x4c9   :  { %5372 = vmatmul.msk.bf16.gmra.mxu3 %vm2268_vm2, %v2255_v24  ;;  %v2149_v24 = vunpack.c.l.b16 %v1765_v16 }
 0x4cb   :  { %v2256_v59 = vpack.c.b16 %v2149_v24, %v2148_v0 }
 0x4cc   :  { %v2916_v18 = vpop.f32.mrf.mxu2  ;;  %v7294_v37 = vpop.f32.mrf.mxu3 }
 0x4cd   :  { %9454 = vst [vmem:[#allocation31_spill] sm:$0xff] %v7294_v37  ;;  %v3186_v17 = vmul.f32 %v7299_v52, %v2916_v18 }
 0x4ce   :  { %1210 = vperm.xlu1 %5569, %v6031_v48   ;;  %v1575_v48 = vsel %vm1383_vm1, 1.0, %v9338_v38 }
 0x4cf   :  { %v3659_v62 = vsel %vm3238_vm12, %v3186_v17, 0.0  ;;  %v1574_v17 = vsel %vm1382_vm3, 1.0, %v9338_v38  ;;  %v1767_v7 = vpack.c.bf16 %v1575_v48, %v1575_v48 }
 0x4d0   :  { %3660 = vadd.xlane.f32.xlu0 %v3659_v62  ;;  %v1766_v16 = vpack.c.bf16 %v1574_v17, %v1574_v17  ;;  %v9459_v62 = vld [vmem:[#allocation30_spill] sm:$0xff] }
 0x4d1   :  { %v3046_v0 = vmul.f32 %v7185_v9, %v9459_v62  ;;  %v2151_v1 = vunpack.c.l.b16 %v1767_v7  ;;  %v3049_v7 = vmul.f32 %v7209_v26, %v6154_v57  ;;  %v7339_v62 = vld [vmem:[%s9258_s1 + $0x10] sm:$0xff] }
 0x4d3   :  { %v3248_v57 = vsel %vm3238_vm12, %v3049_v7, 0.0 }
 0x4d4   :  { %v7305_v58 = vpop.f32.mrf.mxu2  ;;  %v7307_v37 = vpop.f32.mrf.mxu3 }
 0x4d5   :  { %9455 = vst [vmem:[#allocation89_spill] sm:$0xff] %v7305_v58  ;;  %v3239_v58 = vsel %vm3238_vm12, %v3046_v0, 0.0 }
 0x4d6   :  { %9456 = vst [vmem:[#allocation90_spill] sm:$0xff] %v7307_v37 }
 0x4d9   :  { %5373 = vmatmul.msk.bf16.gmra.mxu3 %vm2268_vm2, %v2256_v59  ;;  %v2150_v59 = vunpack.c.l.b16 %v1766_v16  ;;  %v9461_v16 = vld [vmem:[#allocation34_spill] sm:$0xff] }
 0x4da   :  { %vm1385_vm5 = vcmp.eq.s32.totalorder %v5872_v45, %v9461_v16 }
 0x4db   :  { %v2257_v48 = vpack.c.b16 %v2151_v1, %v2150_v59  ;;  %v7347_v1 = vpop.permute.xlu0 %1192 }
 0x4dc   :  { %v7313_v13 = vpop.f32.mrf.mxu2  ;;  %v7315_v18 = vpop.f32.mrf.mxu3 }
 0x4dd   :  { %9457 = vst [vmem:[#allocation91_spill] sm:$0xff] %v7313_v13 }
 0x4de   :  { %9458 = vst [vmem:[#allocation92_spill] sm:$0xff] %v7315_v18  ;;  %v1096_v18 = vpop.permute.xlu2 %1095 }
 0x4df   :  { %vm1384_vm4 = vcmp.eq.s32.totalorder %v5872_v45, %v1096_v18  ;;  %v1577_v18 = vsel %vm1385_vm5, 1.0, %v9338_v38 }
 0x4e4   :  { %v2923_v24 = vpop.f32.mrf.mxu2  ;;  %v7320_v3 = vpop.f32.mrf.mxu3 }
 0x4e5   :  { %9460 = vst [vmem:[#allocation30_spill] sm:$0xff] %v7320_v3  ;;  %v3189_v37 = vmul.f32 %v7325_v15, %v2923_v24 }
 0x4e6   :  { %v1114_v32 = vpop.permute.xlu2 %1113 }
 0x4e7   :  { %3240 = vadd.xlane.f32.xlu2 %v3239_v58  ;;  %v3668_v17 = vsel %vm3238_vm12, %v3189_v37, 0.0  ;;  %v3192_v58 = vmul.f32 %v7339_v62, %v7257_v14  ;;  %v1576_v37 = vsel %vm1384_vm4, 1.0, %v9338_v38  ;;  %v9464_v14 = vld [vmem:[#allocation33_spill] sm:$0xff]  ;;  %vm1387_vm7 = vcmp.eq.s32.totalorder %v5872_v45, %v1114_v32 }
 0x4e8   :  { %3669 = vadd.xlane.f32.xlu0 %v3668_v17  ;;  %v1768_v24 = vpack.c.bf16 %v1576_v37, %v1576_v37  ;;  %v9463_v17 = vld [vmem:[#allocation35_spill] sm:$0xff]  ;;  %v3048_v3 = vmul.f32 %v7339_v62, %v9464_v14  ;;  %v7367_v14 = vpop.xlane.xlu0 %3243 }
 0x4e9   :  { %5374 = vmatmul.msk.bf16.gmra.mxu3 %vm2268_vm2, %v2257_v48  ;;  %v3677_v59 = vsel %vm3238_vm12, %v3192_v58, 0.0  ;;  %v1769_v48 = vpack.c.bf16 %v1577_v18, %v1577_v18  ;;  %v3050_v16 = vmul.f32 %v7055_v5, %v9463_v17  ;;  %9466 = vst [vmem:[#allocation33_spill] sm:$0xff] %v7367_v14 }
 0x4ea   :  { %v2152_v13 = vunpack.c.l.b16 %v1768_v24  ;;  %v3245_v17 = vsel %vm3238_vm12, %v3048_v3, 0.0 }
 0x4eb   :  { %v2153_v58 = vunpack.c.l.b16 %v1769_v48  ;;  %v3251_v18 = vsel %vm3238_vm12, %v3050_v16, 0.0  ;;  %v1579_v16 = vsel %vm1387_vm7, 1.0, %v9338_v38  ;;  %vm1400_vm7 = vcmp.eq.s32.totalorder %v5872_v45, %v7347_v1  ;;  %v7587_v1 = vld [vmem:[%s9258_s1 + $0x20] sm:$0xff] }
 0x4ec   :  { %v7344_v0 = vpop.f32.mrf.mxu3 }
 0x4ed   :  { %9462 = vst [vmem:[#allocation34_spill] sm:$0xff] %v7344_v0  ;;  %v7358_v0 = vld [vmem:[%s9258_s1 + $0x28] sm:$0xff] }
 0x4ee   :  { %v3195_v7 = vmul.f32 %v7358_v0, %v7286_v4  ;;  %v3053_v4 = vmul.f32 %v7086_v36, %v6252_v28  ;;  %v3056_v28 = vmul.f32 %v7124_v23, %v6288_v61  ;;  %v3058_v61 = vmul.f32 %v7299_v52, %v6313_v19  ;;  %v9471_v19 = vld [vmem:[#allocation42_spill] sm:$0xff] }
 0x4ef   :  { %3249 = vadd.xlane.f32.xlu2 %v3248_v57  ;;  %v1108_v57 = vpop.permute.xlu1 %1107 }
 0x4f0   :  { %3678 = vadd.xlane.f32.xlu0 %v3677_v59  ;;  %v2258_v59 = vpack.c.b16 %v2153_v58, %v2152_v13  ;;  %v3686_v24 = vsel %vm3238_vm12, %v3195_v7, 0.0  ;;  %vm1386_vm6 = vcmp.eq.s32.totalorder %v5872_v45, %v1108_v57  ;;  %v3052_v13 = vmul.f32 %v7238_v10, %v6238_v33 }
 0x4f1   :  { %v1578_v3 = vsel %vm1386_vm6, 1.0, %v9338_v38  ;;  %v3260_v7 = vsel %vm3238_vm12, %v3053_v4, 0.0  ;;  %v3055_v33 = vmul.f32 %v7267_v8, %v6279_v43  ;;  %v3059_v43 = vmul.f32 %v7158_v40, %v6326_v27  ;;  %v9470_v27 = vld [vmem:[#allocation43_spill] sm:$0xff] }
 0x4f2   :  { %v1770_v58 = vpack.c.bf16 %v1578_v3, %v1578_v3  ;;  %v3257_v57 = vsel %vm3238_vm12, %v3052_v13, 0.0  ;;  %v1127_v13 = vpop.permute.xlu2 %1126 }
 0x4f3   :  { %v3266_v3 = vsel %vm3238_vm12, %v3055_v33, 0.0  ;;  %vm1389_vm9 = vcmp.eq.s32.totalorder %v5872_v45, %v1127_v13  ;;  %v3062_v33 = vmul.f32 %v7185_v9, %v9470_v27 }
 0x4f4   :  { %v7362_v37 = vpop.f32.mrf.mxu3  ;;  %v2154_v32 = vunpack.c.l.b16 %v1770_v58  ;;  %v3278_v58 = vsel %vm3238_vm12, %v3059_v43, 0.0 }
 0x4f5   :  { %9465 = vst [vmem:[#allocation35_spill] sm:$0xff] %v7362_v37  ;;  %v3287_v13 = vsel %vm3238_vm12, %v3062_v33, 0.0 }
 0x4f7   :  { %3252 = vadd.xlane.f32.xlu2 %v3251_v18  ;;  %v1771_v18 = vpack.c.bf16 %v1579_v16, %v1579_v16 }
 0x4f8   :  { %3246 = vadd.xlane.f32.xlu1 %v3245_v17  ;;  %3687 = vadd.xlane.f32.xlu0 %v3686_v24  ;;  %v1121_v24 = vpop.permute.xlu1 %1120 }
 0x4f9   :  { %5375 = vmatmul.msk.bf16.gmra.mxu3 %vm2268_vm2, %v2258_v59  ;;  %v2155_v17 = vunpack.c.l.b16 %v1771_v18  ;;  %vm1388_vm8 = vcmp.eq.s32.totalorder %v5872_v45, %v1121_v24  ;;  %v3275_v18 = vsel %vm3238_vm12, %v3058_v61, 0.0  ;;  %v9473_v61 = vld [vmem:[#allocation47_spill] sm:$0xff] }
 0x4fa   :  { %v1580_v16 = vsel %vm1388_vm8, 1.0, %v9338_v38 }
 0x4fb   :  { %v2259_v4 = vpack.c.b16 %v2155_v17, %v2154_v32  ;;  %v3061_v32 = vmul.f32 %v7325_v15, %v9471_v19 }
 0x4fc   :  { %v7377_v48 = vpop.f32.mrf.mxu3 }
 0x4fd   :  { %9467 = vst [vmem:[#allocation93_spill] sm:$0xff] %v7377_v48  ;;  %v3269_v48 = vsel %vm3238_vm12, %v3056_v28, 0.0 }
 0x4ff   :  { %3261 = vadd.xlane.f32.xlu2 %v3260_v7 }
 0x500   :  { %3258 = vadd.xlane.f32.xlu1 %v3257_v57  ;;  %v1772_v57 = vpack.c.bf16 %v1580_v16, %v1580_v16  ;;  %v3284_v16 = vsel %vm3238_vm12, %v3061_v32, 0.0  ;;  %v7424_v32 = vpop.xlane.xlu0 %3255 }
 0x501   :  { %9477 = vst [vmem:[#allocation47_spill] sm:$0xff] %v7424_v32 }
 0x502   :  { %v2156_v17 = vunpack.c.l.b16 %v1772_v57  ;;  %v9475_v57 = vld [vmem:[#allocation46_spill] sm:$0xff] }
 0x504   :  { %v7386_v59 = vpop.f32.mrf.mxu3 }
 0x505   :  { %9468 = vst [vmem:[#allocation94_spill] sm:$0xff] %v7386_v59  ;;  %v9487_v59 = vld [vmem:[#allocation52_spill] sm:$0xff] }
 0x507   :  { %3270 = vadd.xlane.f32.xlu2 %v3269_v48  ;;  %v1581_v48 = vsel %vm1389_vm9, 1.0, %v9338_v38 }
 0x508   :  { %3267 = vadd.xlane.f32.xlu1 %v3266_v3  ;;  %v1773_v28 = vpack.c.bf16 %v1581_v48, %v1581_v48  ;;  %v1139_v3 = vpop.permute.xlu1 %1138  ;;  %v3065_v48 = vmul.f32 %v7209_v26, %v9473_v61 }
 0x509   :  { %5376 = vmatmul.msk.bf16.gmra.mxu3 %vm2268_vm2, %v2259_v4  ;;  %vm1391_vm10 = vcmp.eq.s32.totalorder %v5872_v45, %v1139_v3 }
 0x50a   :  { %v2157_v4 = vunpack.c.l.b16 %v1773_v28  ;;  %v1583_v28 = vsel %vm1391_vm10, 1.0, %v9338_v38  ;;  %v3296_v19 = vsel %vm3238_vm12, %v3065_v48, 0.0  ;;  %v7434_v48 = vld [vmem:[%s9258_s1 + $0x8] sm:$0xff]  ;;  %vm4211_vm10 = vcmask 195712  }
 0x50b   :  { %v3079_v11 = vmul.f32 %v7434_v48, %v9495_v55 }
 0x50c   :  { %v7398_v7 = vpop.f32.mrf.mxu3  ;;  %v2260_v43 = vpack.c.b16 %v2157_v4, %v2156_v17  ;;  %v1775_v17 = vpack.c.bf16 %v1583_v28, %v1583_v28 }
 0x50d   :  { %9469 = vst [vmem:[#allocation95_spill] sm:$0xff] %v7398_v7  ;;  %v9486_v7 = vld [vmem:[#allocation22_spill] sm:$0xff] }
 0x50f   :  { %3279 = vadd.xlane.f32.xlu2 %v3278_v58  ;;  %v9474_v58 = vld [vmem:[#allocation36_spill] sm:$0xff] }
 0x510   :  { %3276 = vadd.xlane.f32.xlu1 %v3275_v18  ;;  %vm1390_vm11 = vcmp.eq.s32.totalorder %v5872_v45, %v9474_v58  ;;  %v3064_v18 = vmul.f32 %v7339_v62, %v9475_v57  ;;  %v2159_v58 = vunpack.c.l.b16 %v1775_v17 }
 0x511   :  { %v1582_v33 = vsel %vm1390_vm11, 1.0, %v9338_v38  ;;  %vm4215_vm11 = vcmask 261312  }
 0x512   :  { %v3293_v4 = vsel %vm3238_vm12, %v3064_v18, 0.0  ;;  %v1774_v3 = vpack.c.bf16 %v1582_v33, %v1582_v33  ;;  %v7438_v33 = vpop.xlane.xlu0 %3264 }
 0x513   :  { %9480 = vst [vmem:[#allocation36_spill] sm:$0xff] %v7438_v33 }
 0x514   :  { %v7407_v24 = vpop.f32.mrf.mxu3 }
 0x515   :  { %9472 = vst [vmem:[#allocation43_spill] sm:$0xff] %v7407_v24  ;;  %v2158_v24 = vunpack.c.l.b16 %v1774_v3  ;;  %v9481_v3 = vld [vmem:[#allocation10_spill] sm:$0xff] }
 0x517   :  { %3288 = vadd.xlane.f32.xlu2 %v3287_v13  ;;  %v9478_v13 = vld [vmem:[#allocation50_spill] sm:$0xff] }
 0x518   :  { %3285 = vadd.xlane.f32.xlu1 %v3284_v16  ;;  %v9479_v16 = vld [vmem:[#allocation49_spill] sm:$0xff] }
 0x519   :  { %5377 = vmatmul.msk.bf16.gmra.mxu3 %vm2268_vm2, %v2260_v43  ;;  %v3068_v43 = vmul.f32 %v7238_v10, %v9478_v13  ;;  %v3067_v61 = vmul.f32 %v7358_v0, %v9479_v16  ;;  %v1145_v16 = vpop.permute.xlu2 %1144 }
 0x51a   :  { %vm1392_vm14 = vcmp.eq.s32.totalorder %v5872_v45, %v1145_v16  ;;  %v7467_v16 = vld [vmem:[%s9258_s1 + $0x58] sm:$0xff] }
 0x51b   :  { %v3305_v18 = vsel %vm3238_vm12, %v3068_v43, 0.0  ;;  %v3302_v13 = vsel %vm3238_vm12, %v3067_v61, 0.0  ;;  %v7449_v43 = vld [vmem:[%s9258_s1 + $0x40] sm:$0xff]  ;;  %v3073_v37 = vmul.f32 %v7467_v16, %v9487_v59 }
 0x51c   :  { %v7420_v27 = vpop.f32.mrf.mxu3  ;;  %9482 = vst [vmem:[#allocation46_spill] sm:$0xff] %v7449_v43 }
 0x51d   :  { %9476 = vst [vmem:[#allocation42_spill] sm:$0xff] %v7420_v27  ;;  %v9490_v27 = vld [vmem:[#allocation53_spill] sm:$0xff] }
 0x51e   :  { %v3077_v59 = vmul.f32 %v7325_v15, %v9490_v27 }
 0x51f   :  { %3297 = vadd.xlane.f32.xlu2 %v3296_v19  ;;  %v1151_v19 = vpop.permute.xlu1 %1150 }
 0x520   :  { %3294 = vadd.xlane.f32.xlu1 %v3293_v4  ;;  %v2261_v4 = vpack.c.b16 %v2159_v58, %v2158_v24  ;;  %vm1393_vm13 = vcmp.eq.s32.totalorder %v5872_v45, %v1151_v19  ;;  %v9483_v24 = vld [vmem:[#allocation20_spill] sm:$0xff]  ;;  %v1584_v19 = vsel %vm1392_vm14, 1.0, %v9338_v38  ;;  %vm4223_vm14 = vcmask 392512  }
 0x521   :  { %v3070_v61 = vmul.f32 %v7449_v43, %v9483_v24  ;;  %v1585_v58 = vsel %vm1393_vm13, 1.0, %v9338_v38  ;;  %v3074_v24 = vmul.f32 %v7299_v52, %v9486_v7  ;;  %v3320_v7 = vsel %vm3238_vm12, %v3073_v37, 0.0 }
 0x522   :  { %vm4219_vm13 = vcmask 326912  }
 0x524   :  { %v2968_v57 = vpop.f32.mrf.mxu3 }
 0x525   :  { %v3207_v28 = vmul.f32 %v7434_v48, %v2968_v57  ;;  %v3071_v57 = vmul.f32 %v7267_v8, %v9481_v3  ;;  %v1776_v3 = vpack.c.bf16 %v1584_v19, %v1584_v19 }
 0x527   :  { %3306 = vadd.xlane.f32.xlu2 %v3305_v18  ;;  %v3722_v17 = vsel %vm3238_vm12, %v3207_v28, 0.0  ;;  %v3314_v18 = vsel %vm3238_vm12, %v3071_v57, 0.0 }
 0x528   :  { %3303 = vadd.xlane.f32.xlu1 %v3302_v13  ;;  %3723 = vadd.xlane.f32.xlu0 %v3722_v17  ;;  %v1777_v13 = vpack.c.bf16 %v1585_v58, %v1585_v58  ;;  %v3311_v17 = vsel %vm3238_vm12, %v3070_v61, 0.0  ;;  %v2160_v58 = vunpack.c.l.b16 %v1776_v3  ;;  %v3323_v61 = vsel %vm3238_vm12, %v3074_v24, 0.0  ;;  %v7486_v3 = vld [vmem:[%s9258_s1 + $0x70] sm:$0xff] }
 0x529   :  { %5378 = vmatmul.msk.bf16.gmra.mxu3 %vm2268_vm2, %v2261_v4  ;;  %v7459_v4 = vpop.xlane.xlu0 %3273  ;;  %v9492_v24 = vld [vmem:[#allocation6_spill] sm:$0xff] }
 0x52a   :  { %9485 = vst [vmem:[#allocation49_spill] sm:$0xff] %v7459_v4  ;;  %v2161_v57 = vunpack.c.l.b16 %v1777_v13  ;;  %v9491_v13 = vld [vmem:[#allocation37_spill] sm:$0xff] }
 0x52b   :  { %vm1395_vm0 = vcmp.eq.s32.totalorder %v5872_v45, %v9491_v13 }
 0x52c   :  { %v7455_v28 = vpop.f32.mrf.mxu3  ;;  %v2262_v19 = vpack.c.b16 %v2161_v57, %v2160_v58  ;;  %v3076_v57 = vmul.f32 %v7486_v3, %v9492_v24 }
 0x52d   :  { %9484 = vst [vmem:[#allocation50_spill] sm:$0xff] %v7455_v28 }
 0x52f   :  { %3315 = vadd.xlane.f32.xlu2 %v3314_v18  ;;  %v1157_v18 = vpop.permute.xlu2 %1156 }
 0x530   :  { %3312 = vadd.xlane.f32.xlu1 %v3311_v17  ;;  %vm1394_vm15 = vcmp.eq.s32.totalorder %v5872_v45, %v1157_v18  ;;  %v1587_v18 = vsel %vm1395_vm0, 1.0, %v9338_v38  ;;  %vm4231_vm0 = vcmask 523712  }
 0x531   :  { %v7474_v17 = vpop.xlane.xlu0 %3282  ;;  %v1586_v37 = vsel %vm1394_vm15, 1.0, %v9338_v38  ;;  %v1779_v13 = vpack.c.bf16 %v1587_v18, %v1587_v18  ;;  %vm4227_vm15 = vcmask 458112  }
 0x532   :  { %9489 = vst [vmem:[#allocation20_spill] sm:$0xff] %v7474_v17 }
 0x533   :  { %v2163_v51 = vunpack.c.l.b16 %v1779_v13 }
 0x534   :  { %v7471_v28 = vpop.f32.mrf.mxu3 }
 0x535   :  { %9488 = vst [vmem:[#allocation10_spill] sm:$0xff] %v7471_v28  ;;  %v9494_v28 = vld [vmem:[#allocation28_spill] sm:$0xff] }
 0x536   :  { %v3080_v12 = vmul.f32 %v7339_v62, %v9494_v28  ;;  %v9498_v28 = vld [vmem:[#allocation60_spill] sm:$0xff] }
 0x537   :  { %3324 = vadd.xlane.f32.xlu2 %v3323_v61  ;;  %v3332_v61 = vsel %vm3238_vm12, %v3077_v59, 0.0  ;;  %v1175_v24 = vpop.permute.xlu2 %1174  ;;  %v1169_v59 = vpop.permute.xlu1 %1168  ;;  %v3083_v55 = vmul.f32 %v7358_v0, %v9498_v28  ;;  %v9503_v28 = vld [vmem:[#allocation63_spill] sm:$0xff] }
 0x538   :  { %3321 = vadd.xlane.f32.xlu1 %v3320_v7  ;;  %v3329_v7 = vsel %vm3238_vm12, %v3076_v57, 0.0  ;;  %v3341_v60 = vsel %vm3238_vm12, %v3080_v12, 0.0  ;;  %v3338_v57 = vsel %vm3238_vm12, %v3079_v11, 0.0  ;;  %vm1396_vm1 = vcmp.eq.s32.totalorder %v5872_v45, %v1169_v59 }
 0x539   :  { %5379 = vmatmul.msk.bf16.gmra.mxu3 %vm2268_vm2, %v2262_v19  ;;  %v7495_v27 = vpop.xlane.xlu0 %3291  ;;  %v1778_v19 = vpack.c.bf16 %v1586_v37, %v1586_v37  ;;  %vm1397_vm3 = vcmp.eq.s32.totalorder %v5872_v45, %v1175_v24  ;;  %v1588_v12 = vsel %vm1396_vm1, 1.0, %v9338_v38  ;;  %v3350_v11 = vsel %vm3238_vm12, %v3083_v55, 0.0 }
 0x53a   :  { %9493 = vst [vmem:[#allocation22_spill] sm:$0xff] %v7495_v27  ;;  %v1780_v13 = vpack.c.bf16 %v1588_v12, %v1588_v12  ;;  %vm9317_vm1 = vcmask 589312  }
 0x53b   :  { %v2162_v2 = vunpack.c.l.b16 %v1778_v19  ;;  %v9499_v19 = vld [vmem:[#allocation59_spill] sm:$0xff] }
 0x53c   :  { %v7491_v58 = vpop.f32.mrf.mxu3 }
 0x53f   :  { %3333 = vadd.xlane.f32.xlu2 %v3332_v61  ;;  %v2263_v61 = vpack.c.b16 %v2163_v51, %v2162_v2  ;;  %v1187_v18 = vpop.permute.xlu2 %1186 }
 0x540   :  { %3330 = vadd.xlane.f32.xlu1 %v3329_v7  ;;  %v3082_v7 = vmul.f32 %v7055_v5, %v9499_v19  ;;  %v3085_v19 = vmul.f32 %v7086_v36, %v9503_v28  ;;  %vm1399_vm5 = vcmp.eq.s32.totalorder %v5872_v45, %v1187_v18 }
 0x541   :  { %v7505_v37 = vpop.xlane.xlu0 %3300 }
 0x542   :  { %9497 = vst [vmem:[#allocation53_spill] sm:$0xff] %v7505_v37  ;;  %v3347_v59 = vsel %vm3238_vm12, %v3082_v7, 0.0 }
 0x544   :  { %v7502_v30 = vpop.f32.mrf.mxu3 }
 0x545   :  { %9496 = vst [vmem:[#allocation52_spill] sm:$0xff] %v7502_v30  ;;  %v1181_v30 = vpop.permute.xlu1 %1180 }
 0x546   :  { %vm1398_vm4 = vcmp.eq.s32.totalorder %v5872_v45, %v1181_v30 }
 0x547   :  { %3342 = vadd.xlane.f32.xlu2 %v3341_v60  ;;  %v1589_v60 = vsel %vm1397_vm3, 1.0, %v9338_v38  ;;  %v7525_v24 = vpop.permute.xlu2 %1204  ;;  %vm9316_vm3 = vcmask 654912  }
 0x548   :  { %3339 = vadd.xlane.f32.xlu1 %v3338_v57  ;;  %v9502_v57 = vld [vmem:[#allocation64_spill] sm:$0xff]  ;;  %vm1402_vm9 = vcmp.eq.s32.totalorder %v5872_v45, %v7525_v24  ;;  %v3104_v24 = vmul.f32 %v7124_v23, %v9529_v25  ;;  %v9534_v25 = vld [vmem:[#allocation25_spill] sm:$0xff] }
 0x549   :  { %5380 = vmatmul.msk.bf16.gmra.mxu3 %vm2268_vm2, %v2263_v61  ;;  %v7520_v2 = vpop.xlane.xlu0 %3309  ;;  %v1781_v61 = vpack.c.bf16 %v1589_v60, %v1589_v60  ;;  %v3086_v5 = vmul.f32 %v7449_v43, %v9502_v57  ;;  %v3356_v60 = vsel %vm3238_vm12, %v3085_v19, 0.0  ;;  %v9507_v57 = vld [vmem:[#allocation66_spill] sm:$0xff]  ;;  %v1591_v19 = vsel %vm1399_vm5, 1.0, %v9338_v38 }
 0x54a   :  { %9501 = vst [vmem:[#allocation6_spill] sm:$0xff] %v7520_v2  ;;  %vm9311_vm5 = vcmask 786112  }
 0x54b   :  { %v2165_v55 = vunpack.c.l.b16 %v1781_v61  ;;  %v3359_v12 = vsel %vm3238_vm12, %v3086_v5, 0.0  ;;  %v3088_v61 = vmul.f32 %v7124_v23, %v9507_v57  ;;  %v3107_v23 = vmul.f32 %v7158_v40, %v9534_v25 }
 0x54c   :  { %v7516_v51 = vpop.f32.mrf.mxu3 }
 0x54d   :  { %9500 = vst [vmem:[#allocation37_spill] sm:$0xff] %v7516_v51  ;;  %v2164_v51 = vunpack.c.l.b16 %v1780_v13  ;;  %v1199_v5 = vpop.permute.xlu1 %1198 }
 0x54e   :  { %vm1401_vm6 = vcmp.eq.s32.totalorder %v5872_v45, %v1199_v5  ;;  %v1592_v5 = vsel %vm1400_vm7, 1.0, %v9338_v38  ;;  %vm4255_vm7 = vcmask 917312  }
 0x54f   :  { %3351 = vadd.xlane.f32.xlu2 %v3350_v11  ;;  %v2264_v7 = vpack.c.b16 %v2165_v55, %v2164_v51  ;;  %v1590_v51 = vsel %vm1398_vm4, 1.0, %v9338_v38  ;;  %vm9312_vm4 = vcmask 720512  }
 0x550   :  { %3348 = vadd.xlane.f32.xlu1 %v3347_v59  ;;  %v9506_v59 = vld [vmem:[#allocation68_spill] sm:$0xff] }
 0x551   :  { %v7532_v11 = vpop.xlane.xlu0 %3318  ;;  %v3089_v36 = vmul.f32 %v7467_v16, %v9506_v59  ;;  %v9510_v59 = vld [vmem:[#allocation70_spill] sm:$0xff] }
 0x552   :  { %9505 = vst [vmem:[#allocation56_spill] sm:$0xff] %v7532_v11  ;;  %v3092_v18 = vmul.f32 %v7486_v3, %v9510_v59  ;;  %v9516_v59 = vld [vmem:[#allocation38_spill] sm:$0xff] }
 0x553   :  { %v3368_v30 = vsel %vm3238_vm12, %v3089_v36, 0.0 }
 0x554   :  { %v7529_v56 = vpop.f32.mrf.mxu3 }
 0x555   :  { %9504 = vst [vmem:[#allocation28_spill] sm:$0xff] %v7529_v56  ;;  %v9512_v56 = vld [vmem:[#allocation69_spill] sm:$0xff]  ;;  %v1211_v44 = vpop.permute.xlu1 %1210 }
 0x556   :  { %vm1403_vm8 = vcmp.eq.s32.totalorder %v5872_v45, %v1211_v44 }
 0x557   :  { %3360 = vadd.xlane.f32.xlu2 %v3359_v12  ;;  %v1782_v12 = vpack.c.bf16 %v1590_v51, %v1590_v51  ;;  %v3377_v51 = vsel %vm3238_vm12, %v3092_v18, 0.0 }
 0x558   :  { %3357 = vadd.xlane.f32.xlu1 %v3356_v60  ;;  %v1783_v60 = vpack.c.bf16 %v1591_v19, %v1591_v19 }
 0x559   :  { %5381 = vmatmul.msk.bf16.gmra.mxu3 %vm2268_vm2, %v2264_v7  ;;  %v7549_v55 = vpop.xlane.xlu0 %3327  ;;  %v3365_v7 = vsel %vm3238_vm12, %v3088_v61, 0.0  ;;  %v2166_v46 = vunpack.c.l.b16 %v1782_v12 }
 0x55a   :  { %v7539_v13 = vpop.xlane.xlu2 %3240  ;;  %9509 = vst [vmem:[#allocation59_spill] sm:$0xff] %v7549_v55  ;;  %v2167_v36 = vunpack.c.l.b16 %v1783_v60  ;;  %v3094_v60 = vmul.f32 %v7185_v9, %v9516_v59  ;;  %v9519_v59 = vld [vmem:[#allocation41_spill] sm:$0xff] }
 0x55c   :  { %v7545_v28 = vpop.f32.mrf.mxu3  ;;  %v2265_v61 = vpack.c.b16 %v2167_v36, %v2166_v46 }
 0x55d   :  { %9508 = vst [vmem:[#allocation60_spill] sm:$0xff] %v7545_v28  ;;  %v3091_v28 = vmul.f32 %v7158_v40, %v9512_v56 }
 0x55f   :  { %3369 = vadd.xlane.f32.xlu2 %v3368_v30  ;;  %v3374_v19 = vsel %vm3238_vm12, %v3091_v28, 0.0  ;;  %v1593_v28 = vsel %vm1401_vm6, 1.0, %v9338_v38  ;;  %vm9310_vm6 = vcmask 851712  }
 0x560   :  { %3366 = vadd.xlane.f32.xlu1 %v3365_v7  ;;  %v9514_v7 = vld [vmem:[#allocation39_spill] sm:$0xff] }
 0x561   :  { %v7561_v30 = vpop.xlane.xlu0 %3336  ;;  %v3095_v56 = vmul.f32 %v7434_v48, %v9514_v7  ;;  %v1784_v7 = vpack.c.bf16 %v1592_v5, %v1592_v5 }
 0x562   :  { %v7554_v57 = vpop.xlane.xlu2 %3249 }
 0x563   :  { %9511 = vst [vmem:[#allocation64_spill] sm:$0xff] %v7554_v57  ;;  %v3386_v36 = vsel %vm3238_vm12, %v3095_v56, 0.0  ;;  %v3097_v56 = vmul.f32 %v7209_v26, %v9521_v50  ;;  %v7608_v50 = vld [vmem:[%s9258_s1 + $0x38] sm:$0xff] }
 0x564   :  { %v7558_v49 = vpop.f32.mrf.mxu3 }
 0x565   :  { %9513 = vst [vmem:[#allocation63_spill] sm:$0xff] %v7558_v49  ;;  %v3392_v29 = vsel %vm3238_vm12, %v3097_v56, 0.0  ;;  %v1594_v56 = vsel %vm1402_vm9, 1.0, %v9338_v38  ;;  %vm4263_vm9 = vcmask 1048512  }
 0x567   :  { %3378 = vadd.xlane.f32.xlu2 %v3377_v51 }
 0x568   :  { %3375 = vadd.xlane.f32.xlu1 %v3374_v19  ;;  %v3383_v19 = vsel %vm3238_vm12, %v3094_v60, 0.0  ;;  %v2168_v60 = vunpack.c.l.b16 %v1784_v7 }
 0x569   :  { %5382 = vmatmul.msk.bf16.gmra.mxu3 %vm2268_vm2, %v2265_v61  ;;  %v7581_v51 = vpop.xlane.xlu0 %3345  ;;  %v1785_v61 = vpack.c.bf16 %v1593_v28, %v1593_v28 }
 0x56a   :  { %v7568_v12 = vpop.xlane.xlu2 %3252 }
 0x56b   :  { %9515 = vst [vmem:[#allocation68_spill] sm:$0xff] %v7568_v12  ;;  %v7574_v46 = vpop.xlane.xlu1 %3246  ;;  %v2169_v53 = vunpack.c.l.b16 %v1785_v61  ;;  %v9524_v61 = vld [vmem:[#allocation45_spill] sm:$0xff]  ;;  %v7724_v12 = vadd.s32 4294967264, %v5872_v45 }
 0x56c   :  { %9517 = vst [vmem:[#allocation66_spill] sm:$0xff] %v7574_v46  ;;  %v7577_v18 = vpop.f32.mrf.mxu3  ;;  %v3101_v7 = vmul.f32 %v7608_v50, %v9524_v61 }
 0x56d   :  { %9518 = vst [vmem:[#allocation70_spill] sm:$0xff] %v7577_v18  ;;  %v3098_v18 = vmul.f32 %v7587_v1, %v9519_v59  ;;  %v2266_v42 = vpack.c.b16 %v2169_v53, %v2168_v60  ;;  %v9526_v59 = vld [vmem:[#allocation44_spill] sm:$0xff] }
 0x56e   :  { %v3100_v53 = vmul.f32 %v7238_v10, %v9526_v59  ;;  %v3404_v60 = vsel %vm3238_vm12, %v3101_v7, 0.0  ;;  %v1786_v59 = vpack.c.bf16 %v1594_v56, %v1594_v56  ;;  %v9536_v56 = vld [vmem:[#allocation26_spill] sm:$0xff] }
 0x56f   :  { %3387 = vadd.xlane.f32.xlu2 %v3386_v36  ;;  %v3395_v5 = vsel %vm3238_vm12, %v3098_v18, 0.0 }
 0x570   :  { %3384 = vadd.xlane.f32.xlu1 %v3383_v19 }
 0x571   :  { %v7600_v19 = vpop.xlane.xlu0 %3354 }
 0x572   :  { %v7591_v49 = vpop.xlane.xlu2 %3261 }
 0x573   :  { %9520 = vst [vmem:[#allocation69_spill] sm:$0xff] %v7591_v49  ;;  %v7595_v28 = vpop.xlane.xlu1 %3258 }
 0x574   :  { %9522 = vst [vmem:[#allocation39_spill] sm:$0xff] %v7595_v28  ;;  %v7597_v36 = vpop.f32.mrf.mxu3  ;;  %v2170_v28 = vunpack.c.l.b16 %v1786_v59 }
 0x575   :  { %9523 = vst [vmem:[#allocation38_spill] sm:$0xff] %v7597_v36  ;;  %v3401_v36 = vsel %vm3238_vm12, %v3100_v53, 0.0 }
 0x577   :  { %3396 = vadd.xlane.f32.xlu2 %v3395_v5 }
 0x578   :  { %3393 = vadd.xlane.f32.xlu1 %v3392_v29 }
 0x579   :  { %5383 = vmatmul.msk.bf16.gmra.mxu3 %vm2268_vm2, %v2266_v42  ;;  %v1595_v42 = vsel %vm1403_vm8, 1.0, %v9338_v38  ;;  %v7625_v5 = vpop.xlane.xlu0 %3363  ;;  %vm4259_vm8 = vcmask 982912  }
 0x57a   :  { %v7612_v18 = vpop.xlane.xlu2 %3270  ;;  %v1787_v61 = vpack.c.bf16 %v1595_v42, %v1595_v42  ;;  %v3413_v42 = vsel %vm3238_vm12, %v3104_v24, 0.0 }
 0x57b   :  { %9525 = vst [vmem:[#allocation41_spill] sm:$0xff] %v7612_v18  ;;  %v7618_v29 = vpop.xlane.xlu1 %3267 }
 0x57c   :  { %9527 = vst [vmem:[#allocation40_spill] sm:$0xff] %v7618_v29  ;;  %v7621_v44 = vpop.f32.mrf.mxu3  ;;  %v9531_v29 = vld [vmem:[#allocation48_spill] sm:$0xff]  ;;  %v2171_v49 = vunpack.c.l.b16 %v1787_v61  ;;  %v3106_v61 = vmul.f32 %v7299_v52, %v9536_v56 }
 0x57d   :  { %9528 = vst [vmem:[#allocation45_spill] sm:$0xff] %v7621_v44  ;;  %v3103_v44 = vmul.f32 %v7267_v8, %v9531_v29 }
 0x57f   :  { %3405 = vadd.xlane.f32.xlu2 %v3404_v60  ;;  %v3410_v53 = vsel %vm3238_vm12, %v3103_v44, 0.0  ;;  %v3419_v44 = vsel %vm3238_vm12, %v3106_v61, 0.0 }
 0x580   :  { %3402 = vadd.xlane.f32.xlu1 %v3401_v36  ;;  %v2267_v36 = vpack.c.b16 %v2171_v49, %v2170_v28  ;;  %v3422_v49 = vsel %vm3238_vm12, %v3107_v23, 0.0 }
 0x581   :  { %v7639_v60 = vpop.xlane.xlu0 %3372 }
 0x582   :  { %v7630_v18 = vpop.xlane.xlu2 %3279 }
 0x583   :  { %9530 = vst [vmem:[#allocation44_spill] sm:$0xff] %v7630_v18  ;;  %v7634_v38 = vpop.xlane.xlu1 %3276 }
 0x584   :  { %9532 = vst [vmem:[#allocation24_spill] sm:$0xff] %v7634_v38  ;;  %v7636_v7 = vpop.f32.mrf.mxu3  ;;  %v3825_v38 = vsub.f32 0.0, %v7424_v32 }
 0x585   :  { %9533 = vst [vmem:[#allocation48_spill] sm:$0xff] %v7636_v7 }
 0x587   :  { %3414 = vadd.xlane.f32.xlu2 %v3413_v42  ;;  %v9539_v42 = vld [vmem:[#allocation27_spill] sm:$0xff] }
 0x588   :  { %3411 = vadd.xlane.f32.xlu1 %v3410_v53  ;;  %v3110_v40 = vmul.f32 %v7185_v9, %v9539_v42  ;;  %v9541_v53 = vld [vmem:[#allocation51_spill] sm:$0xff] }
 0x589   :  { %5384 = vmatmul.msk.bf16.gmra.mxu3 %vm2268_vm2, %v2267_v36  ;;  %v7654_v28 = vpop.xlane.xlu0 %3381  ;;  %v3109_v25 = vmul.f32 %v7325_v15, %v9541_v53  ;;  %vm4207_vm2 = vcmask 130112  }
 0x58a   :  { %v7645_v29 = vpop.xlane.xlu2 %3288  ;;  %v3431_v23 = vsel %vm3238_vm12, %v3110_v40, 0.0 }
 0x58b   :  { %9535 = vst [vmem:[#allocation25_spill] sm:$0xff] %v7645_v29  ;;  %v7649_v59 = vpop.xlane.xlu1 %3285 }
 0x58c   :  { %9537 = vst [vmem:[#allocation26_spill] sm:$0xff] %v7649_v59  ;;  %v7651_v24 = vpop.f32.mrf.mxu3 }
 0x58d   :  { %9538 = vst [vmem:[#allocation96_spill] sm:$0xff] %v7651_v24  ;;  %v9546_v24 = vld [vmem:[#allocation29_spill] sm:$0xff] }
 0x58e   :  { %v3112_v53 = vmul.f32 %v7339_v62, %v9546_v24 }
 0x58f   :  { %3423 = vadd.xlane.f32.xlu2 %v3422_v49  ;;  %v3428_v49 = vsel %vm3238_vm12, %v3109_v25, 0.0 }
 0x590   :  { %3420 = vadd.xlane.f32.xlu1 %v3419_v44  ;;  %v9544_v44 = vld [vmem:[#allocation32_spill] sm:$0xff]  ;;  %v3437_v25 = vsel %vm3238_vm12, %v3112_v53, 0.0 }
 0x591   :  { %v7669_v61 = vpop.xlane.xlu0 %3390  ;;  %v3113_v9 = vmul.f32 %v7209_v26, %v9544_v44  ;;  %v7688_v26 = vadd.s32 4294967256, %v5872_v45  ;;  %v9549_v44 = vld [vmem:[#allocation55_spill] sm:$0xff] }
 0x592   :  { %v7659_v36 = vpop.xlane.xlu2 %3297  ;;  %v3116_v24 = vmul.f32 %v7238_v10, %v9549_v44 }
 0x593   :  { %9540 = vst [vmem:[#allocation27_spill] sm:$0xff] %v7659_v36  ;;  %v7663_v56 = vpop.xlane.xlu1 %3294  ;;  %v3440_v40 = vsel %vm3238_vm12, %v3113_v9, 0.0  ;;  %v7718_v36 = vadd.s32 4294967184, %v5872_v45  ;;  %v7729_v57 = vperm.slane %v3825_v38, %v7688_v26 }
 0x594   :  { %9542 = vst [vmem:[#allocation51_spill] sm:$0xff] %v7663_v56  ;;  %v7665_v7 = vpop.f32.mrf.mxu3  ;;  %v3834_v56 = vsub.f32 0.0, %v7474_v17  ;;  %v3449_v29 = vsel %vm3238_vm12, %v3116_v24, 0.0 }
 0x595   :  { %9543 = vst [vmem:[#allocation97_spill] sm:$0xff] %v7665_v7 }
 0x596   :  { %9554 = vst [vmem:[#allocation100_spill] sm:$0xff] %v7729_v57 }
 0x597   :  { %3432 = vadd.xlane.f32.xlu2 %v3431_v23  ;;  %v3821_v23 = vsub.f32 0.0, %v7367_v14  ;;  %v9571_v14 = vld [vmem:[#allocation71_spill] sm:$0xff] }
 0x598   :  { %3429 = vadd.xlane.f32.xlu1 %v3428_v49  ;;  %v7685_v49 = vadd.s32 4294967288, %v5872_v45  ;;  %v3128_v46 = vmul.f32 %v7339_v62, %v9571_v14  ;;  %v3852_v62 = vsub.f32 0.0, %v7561_v30  ;;  %v9574_v14 = vld [vmem:[#allocation8_spill] sm:$0xff] }
 0x59a   :  { %v7673_v42 = vpop.xlane.xlu2 %3306  ;;  %v7708_v44 = vperm.slane %v3821_v23, %v7685_v49  ;;  %v3837_v23 = vsub.f32 0.0, %v7495_v27 }
 0x59b   :  { %9545 = vst [vmem:[#allocation32_spill] sm:$0xff] %v7673_v42  ;;  %v7677_v59 = vpop.xlane.xlu1 %3303  ;;  %v7704_v42 = vadd.s32 4294967232, %v5872_v45 }
 0x59c   :  { %9547 = vst [vmem:[#allocation29_spill] sm:$0xff] %v7677_v59  ;;  %v7679_v18 = vpop.f32.mrf.mxu3  ;;  %v3828_v59 = vsub.f32 0.0, %v7438_v33  ;;  %v9570_v33 = vld [vmem:[#allocation7_spill] sm:$0xff] }
 0x59d   :  { %9548 = vst [vmem:[#allocation98_spill] sm:$0xff] %v7679_v18  ;;  %v9551_v18 = vld [vmem:[#allocation54_spill] sm:$0xff] }
 0x59e   :  { %v3115_v9 = vmul.f32 %v7358_v0, %v9551_v18  ;;  %9553 = vst [vmem:[#allocation99_spill] sm:$0xff] %v7708_v44  ;;  %v7711_v18 = vadd.s32 4294967208, %v5872_v45  ;;  %v7734_v32 = vperm.slane %v3828_v59, %v7704_v42  ;;  %v9559_v59 = vld [vmem:[#allocation58_spill] sm:$0xff] }
 0x59f   :  { %3441 = vadd.xlane.f32.xlu2 %v3440_v40  ;;  %v7696_v40 = vpop.xlane.xlu0 %3399 }
 0x5a0   :  { %3438 = vadd.xlane.f32.xlu1 %v3437_v25  ;;  %v3446_v44 = vsel %vm3238_vm12, %v3115_v9, 0.0  ;;  %9555 = vst [vmem:[#allocation101_spill] sm:$0xff] %v7734_v32  ;;  %v3840_v9 = vsub.f32 0.0, %v7505_v37  ;;  %v7747_v25 = vperm.slane %v3834_v56, %v7718_v36  ;;  %v3210_v56 = vmul.f32 %v7587_v1, %v7491_v58  ;;  %v9567_v32 = vld [vmem:[#allocation65_spill] sm:$0xff] }
 0x5a1   :  { %v3846_v58 = vsub.f32 0.0, %v7532_v11  ;;  %v3134_v11 = vmul.f32 %v7449_v43, %v6880_v35  ;;  %v7871_v35 = vld [vmem:[%s9258_s1 + $0x18] sm:$0xff] }
 0x5a2   :  { %v7692_v7 = vpop.xlane.xlu2 %3315  ;;  %9583 = vst [vmem:[#allocation105_spill] sm:$0xff] %v7871_v35 }
 0x5a3   :  { %9550 = vst [vmem:[#allocation55_spill] sm:$0xff] %v7692_v7  ;;  %v7698_v53 = vpop.xlane.xlu1 %3312  ;;  %v3831_v7 = vsub.f32 0.0, %v7459_v4 }
 0x5a4   :  { %9552 = vst [vmem:[#allocation54_spill] sm:$0xff] %v7698_v53  ;;  %v3008_v10 = vpop.f32.mrf.mxu3 }
 0x5a5   :  { %v3223_v53 = vmul.f32 %v7434_v48, %v3008_v10 }
 0x5a7   :  { %3450 = vadd.xlane.f32.xlu2 %v3449_v29  ;;  %v3770_v10 = vsel %vm3238_vm12, %v3223_v53, 0.0  ;;  %v7739_v29 = vperm.slane %v3831_v7, %v7711_v18  ;;  %v9557_v53 = vld [vmem:[#allocation57_spill] sm:$0xff]  ;;  %v7773_v7 = vadd.s32 4294967216, %v5872_v45  ;;  %v7783_v37 = vpop.xlane.xlu0 %3408 }
 0x5a8   :  { %3447 = vadd.xlane.f32.xlu1 %v3446_v44  ;;  %3771 = vadd.xlane.f32.xlu0 %v3770_v10  ;;  %v3118_v38 = vmul.f32 %v7449_v43, %v9557_v53  ;;  %9558 = vst [vmem:[#allocation57_spill] sm:$0xff] %v7747_v25  ;;  %v3119_v44 = vmul.f32 %v7267_v8, %v9559_v59  ;;  %v7752_v10 = vadd.s32 4294967240, %v5872_v45  ;;  %v3843_v59 = vsub.f32 0.0, %v7520_v2  ;;  %v9563_v25 = vld [vmem:[#allocation61_spill] sm:$0xff] }
 0x5a9   :  { %9556 = vst [vmem:[#allocation102_spill] sm:$0xff] %v7739_v29  ;;  %v7759_v29 = vperm.slane %v3837_v23, %v7685_v49  ;;  %v3121_v17 = vmul.f32 %v7467_v16, %v9563_v25  ;;  %v7778_v53 = vperm.slane %v3840_v9, %v7724_v12  ;;  %v3137_v2 = vmul.f32 %v7467_v16, %v6922_v20  ;;  %v7912_v16 = vld [vmem:[%s9258_s1 + $0x30] sm:$0xff] }
 0x5aa   :  { %v7754_v24 = vpop.xlane.xlu2 %3324  ;;  %v3455_v25 = vsel %vm3238_vm12, %v3118_v38, 0.0  ;;  %v3458_v9 = vsel %vm3238_vm12, %v3119_v44, 0.0  ;;  %v3731_v38 = vsel %vm3238_vm12, %v3210_v56, 0.0  ;;  %v3130_v56 = vmul.f32 %v7587_v1, %v9574_v14  ;;  %v9579_v14 = vld [vmem:[#allocation72_spill] sm:$0xff]  ;;  %9589 = vst [vmem:[#allocation107_spill] sm:$0xff] %v7912_v16 }
 0x5ab   :  { %9560 = vst [vmem:[#allocation58_spill] sm:$0xff] %v7754_v24  ;;  %v7765_v57 = vpop.xlane.xlu1 %3321  ;;  %v9564_v24 = vld [vmem:[#allocation62_spill] sm:$0xff]  ;;  %v3464_v44 = vsel %vm3238_vm12, %v3121_v17, 0.0  ;;  %v7899_v43 = vsel %vm3238_vm12, %v3134_v11, 0.0  ;;  %v7917_v11 = vadd.s32 4294967224, %v5872_v45 }
 0x5ac   :  { %9561 = vst [vmem:[#allocation103_spill] sm:$0xff] %v7759_v29  ;;  %v3122_v4 = vmul.f32 %v7299_v52, %v9564_v24  ;;  %v7775_v23 = vpop.f32.mrf.mxu3  ;;  %v9568_v29 = vld [vmem:[#allocation67_spill] sm:$0xff]  ;;  %v7801_v24 = vperm.slane %v3843_v59, %v7752_v10 }
 0x5ad   :  { %9562 = vst [vmem:[#allocation104_spill] sm:$0xff] %v7765_v57  ;;  %v3124_v57 = vmul.f32 %v7486_v3, %v9567_v32  ;;  %v3125_v27 = vmul.f32 %v7325_v15, %v9568_v29  ;;  %v3127_v32 = vmul.f32 %v7434_v48, %v9570_v33  ;;  %v7808_v33 = vperm.slane %v3846_v58, %v7773_v7 }
 0x5ae   :  { %9565 = vst [vmem:[#allocation61_spill] sm:$0xff] %v7775_v23  ;;  %v7791_v23 = vadd.s32 4294967192, %v5872_v45  ;;  %v3467_v29 = vsel %vm3238_vm12, %v3122_v4, 0.0  ;;  %v7821_v4 = vadd.s32 4294967272, %v5872_v45 }
 0x5af   :  { %9566 = vst [vmem:[#allocation62_spill] sm:$0xff] %v7778_v53  ;;  %v3849_v53 = vsub.f32 0.0, %v7549_v55  ;;  %3459 = vadd.xlane.f32.xlu2 %v3458_v9  ;;  %v7814_v59 = vsel %vm3238_vm12, %v3124_v57, 0.0  ;;  %v7826_v58 = vsel %vm3238_vm12, %v3125_v27, 0.0  ;;  %v7834_v57 = vld [vmem:[%s9258_s1] sm:$0xff]  ;;  %v7841_v55 = vsel %vm3238_vm12, %v3128_v46, 0.0 }
 0x5b0   :  { %9569 = vst [vmem:[#allocation65_spill] sm:$0xff] %v7791_v23  ;;  %3456 = vadd.xlane.f32.xlu1 %v3455_v25  ;;  %3732 = vadd.xlane.f32.xlu0 %v3731_v38  ;;  %v9575_v25 = vld [vmem:[#allocation73_spill] sm:$0xff]  ;;  %v3142_v9 = vmul.f32 %v7834_v57, %v9579_v14  ;;  %v3855_v27 = vsub.f32 0.0, %v7581_v51 }
 0x5b1   :  { %9572 = vst [vmem:[#allocation67_spill] sm:$0xff] %v7801_v24  ;;  %v3131_v38 = vmul.f32 %v7358_v0, %v9575_v25  ;;  %v7829_v15 = vperm.slane %v3849_v53, %v7791_v23  ;;  %v3133_v53 = vmul.f32 %v7608_v50, %v6859_v34 }
 0x5b2   :  { %9573 = vst [vmem:[#allocation7_spill] sm:$0xff] %v7808_v33  ;;  %v7823_v17 = vpop.xlane.xlu2 %3333 }
 0x5b3   :  { %9576 = vst [vmem:[#allocation71_spill] sm:$0xff] %v7823_v17  ;;  %v7838_v25 = vpop.xlane.xlu1 %3330  ;;  %v7844_v17 = vsel %vm3238_vm12, %v3127_v32, 0.0  ;;  %v7861_v32 = vadd.s32 4294967248, %v5872_v45  ;;  %v7877_v46 = vsel %vm3238_vm12, %v3131_v38, 0.0  ;;  %v7893_v38 = vsel %vm3238_vm12, %v3142_v9, 0.0 }
 0x5b4   :  { %9577 = vst [vmem:[#allocation8_spill] sm:$0xff] %v7829_v15  ;;  %v9581_v15 = vld [vmem:[#allocation74_spill] sm:$0xff]  ;;  %v7853_v14 = vpop.f32.mrf.mxu3 }
 0x5b5   :  { %9578 = vst [vmem:[#allocation73_spill] sm:$0xff] %v7834_v57  ;;  %v3143_v33 = vmul.f32 %v7434_v48, %v9581_v15  ;;  %v7858_v57 = vperm.slane %v3852_v62, %v5872_v45  ;;  %v9584_v48 = vld [vmem:[#allocation75_spill] sm:$0xff]  ;;  %v3858_v62 = vsub.f32 0.0, %v7600_v19 }
 0x5b6   :  { %9580 = vst [vmem:[#allocation72_spill] sm:$0xff] %v7838_v25  ;;  %v7864_v25 = vsel %vm3238_vm12, %v3130_v56, 0.0  ;;  %v3145_v15 = vmul.f32 %v7871_v35, %v9584_v48  ;;  %v7882_v56 = vld [vmem:[%s9258_s1 + $0x50] sm:$0xff]  ;;  %v7890_v48 = vpop.xlane.xlu0 %3417  ;;  %v7896_v35 = vperm.slane %v3855_v27, %v7821_v4 }
 0x5b7   :  { %9582 = vst [vmem:[#allocation74_spill] sm:$0xff] %v7853_v14  ;;  %v3136_v34 = vmul.f32 %v7882_v56, %v6908_v63  ;;  %v9585_v14 = vld [vmem:[#allocation9_spill] sm:$0xff]  ;;  %3468 = vadd.xlane.f32.xlu2 %v3467_v29  ;;  %v7902_v63 = vsel %vm3238_vm12, %v3133_v53, 0.0  ;;  %v3148_v29 = vmul.f32 %v7912_v16, %v6901_v39  ;;  %v7921_v9 = vperm.slane %v3858_v62, %v7861_v32 }
 0x5b8   :  { %v3146_v24 = vmul.f32 %v7587_v1, %v9585_v14  ;;  %9586 = vst [vmem:[#allocation75_spill] sm:$0xff] %v7893_v38  ;;  %3465 = vadd.xlane.f32.xlu1 %v3464_v44  ;;  %v7905_v14 = vsel %vm3238_vm12, %v3143_v33, 0.0  ;;  %v3861_v44 = vsub.f32 0.0, %v7625_v5  ;;  %v7926_v33 = vld [vmem:[%s9258_s1 + $0x68] sm:$0xff]  ;;  %v3149_v53 = vmul.f32 %v7608_v50, %v6911_v47 }
 0x5b9   :  { %9587 = vst [vmem:[#allocation9_spill] sm:$0xff] %v7902_v63  ;;  %v3139_v27 = vmul.f32 %v7926_v33, %v6951_v21  ;;  %v7933_v20 = vsel %vm3238_vm12, %v3145_v15, 0.0  ;;  %v3140_v38 = vmul.f32 %v7486_v3, %v6961_v41  ;;  %v7941_v23 = vsel %vm3238_vm12, %v3136_v34, 0.0 }
 0x5ba   :  { %9588 = vst [vmem:[#allocation106_spill] sm:$0xff] %v7905_v14  ;;  %v3343_v39 = vpop.xlane.xlu2 %3342  ;;  %v7938_v14 = vsel %vm3238_vm12, %v3137_v2, 0.0  ;;  %v7944_v63 = vsel %vm3238_vm12, %v3146_v24, 0.0  ;;  %v3151_v47 = vmul.f32 %v7267_v8, %v6933_v6  ;;  %v7949_v21 = vadd.s32 4294967200, %v5872_v45 }
 0x5bb   :  { %9590 = vst [vmem:[#allocation108_spill] sm:$0xff] %v7926_v33  ;;  %v3340_v62 = vpop.xlane.xlu1 %3339  ;;  %v3864_v15 = vsub.f32 0.0, %v7639_v60  ;;  %v7955_v2 = vperm.slane %v3861_v44, %v7917_v11  ;;  %v7959_v24 = vsel %vm3238_vm12, %v3148_v29, 0.0  ;;  %v7962_v6 = vadd.s32 4294967176, %v5872_v45 }
 0x5bc   :  { %9591 = vst [vmem:[#allocation109_spill] sm:$0xff] %v7933_v20  ;;  %v3853_v20 = vsub.f32 0.0, %v3340_v62  ;;  %v3016_v41 = vpop.f32.mrf.mxu3  ;;  %v4297_v8 = vperm.slane %v3340_v62, %v7685_v49  ;;  %v3867_v3 = vsub.f32 0.0, %v7654_v28  ;;  %v7973_v44 = vadd.s32 4294967280, %v5872_v45 }
 0x5bd   :  { %9592 = vst [vmem:[#allocation110_spill] sm:$0xff] %v7941_v23  ;;  %v3226_v34 = vmul.f32 %v7587_v1, %v3016_v41  ;;  %v7969_v23 = vsel %vm3238_vm12, %v3149_v53, 0.0  ;;  %v7978_v29 = vsel %vm3238_vm12, %v3140_v38, 0.0  ;;  %v7988_v41 = vsel %vm3238_vm12, %v3151_v47, 0.0 }
 0x5be   :  { %9593 = vst [vmem:[#allocation111_spill] sm:$0xff] %v7944_v63  ;;  %v7966_v63 = vsel %vm3238_vm12, %v3139_v27, 0.0  ;;  %v7983_v27 = vperm.slane %v3864_v15, %v7949_v21  ;;  %v4880_v53 = vperm.slane %v3853_v20, %v7685_v49  ;;  %v7996_v38 = vmul.f32 %v7299_v52, %v6967_v54 }
 0x5bf   :  { %9594 = vst [vmem:[#allocation112_spill] sm:$0xff] %v7959_v24  ;;  %3477 = vadd.xlane.f32.xlu2 %v7826_v58  ;;  %v3779_v1 = vsel %vm3238_vm12, %v3226_v34, 0.0  ;;  %v7992_v58 = vmul.f32 %v7882_v56, %v6944_v22  ;;  %v7998_v34 = vpop.xlane.xlu0 %3426  ;;  %v3854_v15 = vsub.f32 0.0, %v3343_v39  ;;  %v3873_v47 = vsub.f32 0.0, %v7696_v40 }
 0x5c0   :  { %3474 = vadd.xlane.f32.xlu1 %v7814_v59  ;;  %3780 = vadd.xlane.f32.xlu0 %v3779_v1  ;;  %9595 = vst [vmem:[#allocation113_spill] sm:$0xff] %v7988_v41  ;;  %v3870_v59 = vsub.f32 0.0, %v7669_v61  ;;  %v9598_v1 = vperm.slane %v7561_v30, %v5872_v45  ;;  %v8009_v54 = vperm.slane %v3867_v3, %v7962_v6 }
 0x5c1   :  { %9596 = vst [vmem:[#allocation114_spill] sm:$0xff] %v7992_v58  ;;  %v8013_v52 = vmul.f32 %v7926_v33, %v6974_v31  ;;  %v3876_v58 = vsub.f32 0.0, %v7783_v37  ;;  %v4881_v30 = vsel %vm4207_vm2, %v4880_v53, %v7858_v57  ;;  %v4882_v3 = vperm.slane %v3854_v15, %v7973_v44 }
 0x5c2   :  { %9597 = vst [vmem:[#allocation115_spill] sm:$0xff] %v7996_v38  ;;  %v4298_v22 = vsel %vm4207_vm2, %v4297_v8, %v9598_v1  ;;  %v3352_v62 = vpop.xlane.xlu2 %3351  ;;  %v4299_v38 = vperm.slane %v3343_v39, %v7973_v44  ;;  %v8026_v20 = vperm.slane %v3870_v59, %v7973_v44  ;;  %v8031_v33 = vperm.slane %v3873_v47, %v7688_v26 }
 0x5c3   :  { %9599 = vst [vmem:[#allocation116_spill] sm:$0xff] %v8013_v52  ;;  %v3349_v41 = vpop.xlane.xlu1 %3348  ;;  %v3879_v57 = vsub.f32 0.0, %v7890_v48  ;;  %v4883_v53 = vsel %vm4211_vm10, %v4882_v3, %v4881_v30  ;;  %v3857_v15 = vsub.f32 0.0, %v3352_v62  ;;  %v9600_v59 = vperm.slane %v7581_v51, %v7821_v4 }
 0x5c4   :  { %v3856_v8 = vsub.f32 0.0, %v3349_v41  ;;  %v3018_v1 = vpop.f32.mrf.mxu3  ;;  %v4300_v24 = vsel %vm4211_vm10, %v4299_v38, %v4298_v22  ;;  %v4303_v31 = vperm.slane %v3349_v41, %v7724_v12  ;;  %v8046_v22 = vperm.slane %v3876_v58, %v7704_v42 }
 0x5c5   :  { %v3227_v52 = vmul.f32 %v7358_v0, %v3018_v1  ;;  %v4302_v47 = vsel %vm4215_vm11, %v9600_v59, %v4300_v24  ;;  %v4305_v24 = vperm.slane %v3352_v62, %v7688_v26  ;;  %v3820_v3 = vsub.f32 0.0, %v7539_v13 }
 0x5c6   :  { %v4886_v38 = vperm.slane %v3856_v8, %v7724_v12  ;;  %v4304_v30 = vsel %vm4219_vm13, %v4303_v31, %v4302_v47  ;;  %v8053_v8 = vperm.slane %v3879_v57, %v7711_v18  ;;  %v4888_v59 = vperm.slane %v3857_v15, %v7688_v26 }
 0x5c7   :  { %3486 = vadd.xlane.f32.xlu2 %v7841_v55  ;;  %v3782_v0 = vsel %vm3238_vm12, %v3227_v52, 0.0  ;;  %v3882_v52 = vsub.f32 0.0, %v7998_v34  ;;  %v8060_v1 = vpop.xlane.xlu0 %3435  ;;  %v4306_v47 = vsel %vm4223_vm14, %v4305_v24, %v4304_v30  ;;  %v9601_v55 = vld [vmem:[#allocation66_spill] sm:$0xff]  ;;  %v4817_v30 = vperm.slane %v3820_v3, %v5872_v45 }
 0x5c8   :  { %3483 = vadd.xlane.f32.xlu1 %v7844_v17  ;;  %3783 = vadd.xlane.f32.xlu0 %v3782_v0  ;;  %v4885_v17 = vsel %vm4215_vm11, %v7896_v35, %v4883_v53  ;;  %v4204_v0 = vperm.slane %v7539_v13, %v5872_v45  ;;  %v3822_v41 = vsub.f32 0.0, %v9601_v55  ;;  %v4210_v13 = vperm.slane %v9601_v55, %v7973_v44 }
 0x5c9   :  { %v4887_v31 = vsel %vm4219_vm13, %v4886_v38, %v4885_v17  ;;  %v8070_v53 = vperm.slane %v3882_v52, %v7718_v36  ;;  %v9602_v52 = vperm.slane %v7600_v19, %v7861_v32 }
 0x5ca   :  { %v3361_v58 = vpop.xlane.xlu2 %3360  ;;  %v4889_v38 = vsel %vm4223_vm14, %v4888_v59, %v4887_v31  ;;  %v4820_v3 = vperm.slane %v3822_v41, %v7973_v44  ;;  %v9605_v59 = vld [vmem:[#allocation64_spill] sm:$0xff] }
 0x5cb   :  { %v3358_v57 = vpop.xlane.xlu1 %3357  ;;  %v3860_v24 = vsub.f32 0.0, %v3361_v58  ;;  %v4308_v17 = vsel %vm4227_vm15, %v9602_v52, %v4306_v47  ;;  %v3823_v47 = vsub.f32 0.0, %v9605_v59 }
 0x5cc   :  { %v3859_v62 = vsub.f32 0.0, %v3358_v57  ;;  %v4309_v51 = vperm.slane %v3358_v57, %v7752_v10  ;;  %v3021_v35 = vpop.f32.mrf.mxu3  ;;  %v9603_v57 = vld [vmem:[#allocation33_spill] sm:$0xff] }
 0x5cd   :  { %v3228_v39 = vmul.f32 %v7912_v16, %v3021_v35  ;;  %v9604_v35 = vperm.slane %v9603_v57, %v7685_v49 }
 0x5ce   :  { %v4892_v15 = vperm.slane %v3859_v62, %v7752_v10  ;;  %v4310_v31 = vsel %vm4231_vm0, %v4309_v51, %v4308_v17 }
 0x5cf   :  { %3495 = vadd.xlane.f32.xlu2 %v7877_v46  ;;  %v3785_v55 = vsel %vm3238_vm12, %v3228_v39, 0.0  ;;  %v4208_v16 = vsel %vm4207_vm2, %v9604_v35, %v4204_v0  ;;  %v4311_v46 = vperm.slane %v3361_v58, %v7704_v42  ;;  %v4891_v39 = vsel %vm4227_vm15, %v7921_v9, %v4889_v38  ;;  %v8107_v35 = vpop.xlane.xlu0 %3444 }
 0x5d0   :  { %3492 = vadd.xlane.f32.xlu1 %v7864_v25  ;;  %3786 = vadd.xlane.f32.xlu0 %v3785_v55  ;;  %v4212_v19 = vsel %vm4211_vm10, %v4210_v13, %v4208_v16  ;;  %v4214_v0 = vperm.slane %v9605_v59, %v7821_v4  ;;  %v4893_v51 = vsel %vm4231_vm0, %v4892_v15, %v4891_v39  ;;  %v9606_v25 = vld [vmem:[#allocation99_spill] sm:$0xff]  ;;  %v9607_v13 = vld [vmem:[#allocation68_spill] sm:$0xff] }
 0x5d1   :  { %v4819_v52 = vsel %vm4207_vm2, %v9606_v25, %v4817_v30  ;;  %v4894_v16 = vperm.slane %v3860_v24, %v7704_v42  ;;  %v4312_v41 = vsel %vm9317_vm1, %v4311_v46, %v4310_v31  ;;  %v3824_v9 = vsub.f32 0.0, %v9607_v13 }
 0x5d2   :  { %v3370_v62 = vpop.xlane.xlu2 %3369  ;;  %v4216_v38 = vsel %vm4215_vm11, %v4214_v0, %v4212_v19  ;;  %v4218_v15 = vperm.slane %v9607_v13, %v7724_v12  ;;  %v4821_v30 = vsel %vm4211_vm10, %v4820_v3, %v4819_v52  ;;  %v4822_v46 = vperm.slane %v3823_v47, %v7821_v4 }
 0x5d3   :  { %v3367_v58 = vpop.xlane.xlu1 %3366  ;;  %v4895_v24 = vsel %vm9317_vm1, %v4894_v16, %v4893_v51  ;;  %v3863_v39 = vsub.f32 0.0, %v3370_v62  ;;  %v9608_v19 = vperm.slane %v7625_v5, %v7917_v11  ;;  %v4317_v47 = vperm.slane %v3370_v62, %v7711_v18  ;;  %v9609_v51 = vld [vmem:[#allocation9_spill] sm:$0xff]  ;;  %v9610_v16 = vld [vmem:[#allocation39_spill] sm:$0xff] }
 0x5d4   :  { %v3862_v17 = vsub.f32 0.0, %v3367_v58  ;;  %v4315_v55 = vperm.slane %v3367_v58, %v7773_v7  ;;  %v3023_v57 = vpop.f32.mrf.mxu3  ;;  %v4220_v25 = vsel %vm4219_vm13, %v4218_v15, %v4216_v38  ;;  %v4897_v5 = vsel %vm9316_vm3, %v7955_v2, %v4895_v24  ;;  %v9611_v2 = vld [vmem:[#allocation69_spill] sm:$0xff] }
 0x5d5   :  { %v3229_v31 = vmul.f32 %v7608_v50, %v3023_v57  ;;  %v4314_v59 = vsel %vm9316_vm3, %v9608_v19, %v4312_v41  ;;  %v4823_v50 = vsel %vm4215_vm11, %v4822_v46, %v4821_v30  ;;  %v4824_v52 = vperm.slane %v3824_v9, %v7724_v12  ;;  %v9612_v57 = vld [vmem:[#allocation47_spill] sm:$0xff] }
 0x5d6   :  { %v4898_v0 = vperm.slane %v3862_v17, %v7773_v7  ;;  %v4316_v58 = vsel %vm9312_vm4, %v4315_v55, %v4314_v59  ;;  %v4226_v41 = vperm.slane %v9610_v16, %v7861_v32  ;;  %v3826_v13 = vsub.f32 0.0, %v9610_v16  ;;  %v9614_v59 = vld [vmem:[#allocation65_spill] sm:$0xff] }
 0x5d7   :  { %3504 = vadd.xlane.f32.xlu2 %v7899_v43  ;;  %v3788_v3 = vsel %vm3238_vm12, %v3229_v31, 0.0  ;;  %v4900_v38 = vperm.slane %v3863_v39, %v7711_v18  ;;  %v4318_v62 = vsel %vm9311_vm5, %v4317_v47, %v4316_v58  ;;  %v3827_v55 = vsub.f32 0.0, %v9611_v2  ;;  %v9617_v16 = vld [vmem:[#allocation25_spill] sm:$0xff] }
 0x5d8   :  { %3501 = vadd.xlane.f32.xlu1 %v9609_v51  ;;  %3789 = vadd.xlane.f32.xlu0 %v3788_v3  ;;  %v4899_v43 = vsel %vm9312_vm4, %v4898_v0, %v4897_v5  ;;  %v9613_v15 = vperm.slane %v9612_v57, %v7688_v26  ;;  %v4825_v30 = vsel %vm4219_vm13, %v4824_v52, %v4823_v50  ;;  %v9616_v5 = vld [vmem:[#allocation46_spill] sm:$0xff]  ;;  %v8157_v57 = vpop.xlane.xlu0 %3453 }
 0x5d9   :  { %v4230_v46 = vperm.slane %v9611_v2, %v7752_v10  ;;  %v4901_v19 = vsel %vm9311_vm5, %v4900_v38, %v4899_v43  ;;  %v4828_v52 = vperm.slane %v3826_v13, %v7861_v32  ;;  %v3836_v2 = vsub.f32 0.0, %v9617_v16 }
 0x5da   :  { %v3379_v17 = vpop.xlane.xlu2 %3378  ;;  %v4224_v9 = vsel %vm4223_vm14, %v9613_v15, %v4220_v25  ;;  %v9615_v25 = vperm.slane %v7639_v60, %v7949_v21  ;;  %v4903_v60 = vsel %vm9310_vm6, %v7983_v27, %v4901_v19  ;;  %v3885_v13 = vsub.f32 0.0, %v8060_v1  ;;  %v9618_v15 = vld [vmem:[#allocation51_spill] sm:$0xff]  ;;  %v9621_v19 = vld [vmem:[#allocation100_spill] sm:$0xff] }
 0x5db   :  { %v3866_v24 = vsub.f32 0.0, %v3379_v17  ;;  %v3376_v31 = vpop.xlane.xlu1 %3375  ;;  %v4228_v3 = vsel %vm4227_vm15, %v4226_v41, %v4224_v9  ;;  %v4323_v47 = vperm.slane %v3379_v17, %v7718_v36  ;;  %v3838_v9 = vsub.f32 0.0, %v9618_v15 }
 0x5dc   :  { %v3865_v39 = vsub.f32 0.0, %v3376_v31  ;;  %v4321_v0 = vperm.slane %v3376_v31, %v9614_v59  ;;  %v3026_v58 = vpop.f32.mrf.mxu3  ;;  %v4320_v50 = vsel %vm9310_vm6, %v9615_v25, %v4318_v62  ;;  %v9619_v31 = vperm.slane %v7654_v28, %v7962_v6 }
 0x5dd   :  { %v3230_v51 = vmul.f32 %v9616_v5, %v3026_v58  ;;  %v4906_v41 = vperm.slane %v3866_v24, %v7718_v36  ;;  %v4232_v27 = vsel %vm4231_vm0, %v4230_v46, %v4228_v3  ;;  %v4827_v58 = vsel %vm4223_vm14, %v9621_v19, %v4825_v30  ;;  %v9626_v19 = vld [vmem:[#allocation22_spill] sm:$0xff] }
 0x5de   :  { %v4322_v43 = vsel %vm4255_vm7, %v4321_v0, %v4320_v50  ;;  %v4904_v38 = vperm.slane %v3865_v39, %v9614_v59  ;;  %v9620_v0 = vld [vmem:[#allocation110_spill] sm:$0xff]  ;;  %v4830_v28 = vperm.slane %v3827_v55, %v7752_v10  ;;  %v4829_v25 = vsel %vm4227_vm15, %v4828_v52, %v4827_v58  ;;  %v9622_v55 = vld [vmem:[#allocation36_spill] sm:$0xff] }
 0x5df   :  { %v4324_v17 = vsel %vm4259_vm8, %v4323_v47, %v4322_v43  ;;  %3513 = vadd.xlane.f32.xlu2 %v7938_v14  ;;  %v3791_v62 = vsel %vm3238_vm12, %v3230_v51, 0.0  ;;  %v4359_v14 = vperm.slane %v8060_v1, %v7685_v49  ;;  %v4265_v50 = vperm.slane %v9617_v16, %v5872_v45 }
 0x5e0   :  { %v8171_v39 = vsel %vm4263_vm9, %v9619_v31, %v4324_v17  ;;  %v4905_v24 = vsel %vm4255_vm7, %v4904_v38, %v4903_v60  ;;  %3510 = vadd.xlane.f32.xlu1 %v9620_v0  ;;  %3792 = vadd.xlane.f32.xlu0 %v3791_v62  ;;  %v4848_v43 = vperm.slane %v3836_v2, %v5872_v45  ;;  %v9624_v2 = vld [vmem:[#allocation40_spill] sm:$0xff]  ;;  %v9625_v31 = vld [vmem:[#allocation27_spill] sm:$0xff]  ;;  %v8206_v0 = vld [vmem:[%s9258_s1 + $0x48] sm:$0xff] }
 0x5e1   :  { %v4907_v47 = vsel %vm4259_vm8, %v4906_v41, %v4905_v24  ;;  %v4268_v46 = vperm.slane %v9618_v15, %v7973_v44  ;;  %v9623_v52 = vperm.slane %v9622_v55, %v7704_v42  ;;  %v4851_v16 = vperm.slane %v3838_v9, %v7973_v44  ;;  %v9628_v55 = vld [vmem:[#allocation103_spill] sm:$0xff] }
 0x5e2   :  { %v8187_v5 = vsel %vm4263_vm9, %v8009_v54, %v4907_v47  ;;  %v3388_v51 = vpop.xlane.xlu2 %3387  ;;  %v4238_v62 = vperm.slane %v9624_v2, %v7917_v11  ;;  %v3839_v15 = vsub.f32 0.0, %v9625_v31  ;;  %v3829_v9 = vsub.f32 0.0, %v9624_v2 }
 0x5e3   :  { %v3869_v30 = vsub.f32 0.0, %v3388_v51  ;;  %v4328_v3 = vperm.slane %v3388_v51, %v7685_v49  ;;  %v3385_v38 = vpop.xlane.xlu1 %3384  ;;  %v4236_v41 = vsel %vm9317_vm1, %v9623_v52, %v4232_v27  ;;  %v9627_v58 = vperm.slane %v9626_v19, %v7685_v49 }
 0x5e4   :  { %v3868_v17 = vsub.f32 0.0, %v3385_v38  ;;  %v4327_v54 = vperm.slane %v3385_v38, %v5872_v45  ;;  %v3028_v60 = vpop.f32.mrf.mxu3  ;;  %v9629_v2 = vperm.slane %v7669_v61, %v7973_v44  ;;  %v4240_v61 = vsel %vm9316_vm3, %v4238_v62, %v4236_v41 }
 0x5e5   :  { %v4911_v24 = vperm.slane %v3869_v30, %v7685_v49  ;;  %v3231_v27 = vmul.f32 %v8206_v0, %v3028_v60  ;;  %v4267_v47 = vsel %vm4207_vm2, %v9627_v58, %v4265_v50  ;;  %v4850_v30 = vsel %vm4207_vm2, %v9628_v55, %v4848_v43  ;;  %v9631_v58 = vld [vmem:[#allocation41_spill] sm:$0xff] }
 0x5e6   :  { %v4329_v51 = vsel %vm4207_vm2, %v4328_v3, %v4327_v54  ;;  %v4910_v38 = vperm.slane %v3868_v17, %v5872_v45  ;;  %v4269_v52 = vsel %vm4211_vm10, %v4268_v46, %v4267_v47  ;;  %v4270_v50 = vperm.slane %v9625_v31, %v7821_v4  ;;  %v9630_v17 = vld [vmem:[#allocation29_spill] sm:$0xff]  ;;  %v8234_v46 = vpop.xlane.xlu0 %3462 }
 0x5e7   :  { %3522 = vadd.xlane.f32.xlu2 %v7978_v29  ;;  %v3794_v60 = vsel %vm3238_vm12, %v3231_v27, 0.0  ;;  %v4331_v19 = vsel %vm4211_vm10, %v9629_v2, %v4329_v51  ;;  %v4852_v3 = vsel %vm4211_vm10, %v4851_v16, %v4850_v30  ;;  %v3841_v54 = vsub.f32 0.0, %v9630_v17  ;;  %v9633_v2 = vld [vmem:[#allocation53_spill] sm:$0xff] }
 0x5e8   :  { %v4912_v43 = vsel %vm4207_vm2, %v4911_v24, %v4910_v38  ;;  %3519 = vadd.xlane.f32.xlu1 %v7966_v63  ;;  %3795 = vadd.xlane.f32.xlu0 %v3794_v60  ;;  %v8232_v29 = vperm.slane %v3885_v13, %v7685_v49  ;;  %v4853_v27 = vperm.slane %v3839_v15, %v7821_v4  ;;  %v3830_v47 = vsub.f32 0.0, %v9631_v58  ;;  %v9632_v60 = vld [vmem:[#allocation32_spill] sm:$0xff] }
 0x5e9   :  { %v4914_v31 = vsel %vm4211_vm10, %v8026_v20, %v4912_v43  ;;  %v4831_v16 = vsel %vm4231_vm0, %v4830_v28, %v4829_v25  ;;  %v4242_v63 = vperm.slane %v9631_v58, %v7773_v7  ;;  %v4271_v24 = vsel %vm4215_vm11, %v4270_v50, %v4269_v52 }
 0x5ea   :  { %v3397_v13 = vpop.xlane.xlu2 %3396  ;;  %v4834_v51 = vperm.slane %v3829_v9, %v7917_v11  ;;  %v4854_v38 = vsel %vm4215_vm11, %v4853_v27, %v4852_v3  ;;  %v4274_v41 = vperm.slane %v9630_v17, %v7688_v26  ;;  %v4857_v28 = vperm.slane %v3841_v54, %v7688_v26 }
 0x5eb   :  { %v3872_v62 = vsub.f32 0.0, %v3397_v13  ;;  %v3394_v15 = vpop.xlane.xlu1 %3393  ;;  %v4244_v20 = vsel %vm9312_vm4, %v4242_v63, %v4240_v61  ;;  %v3842_v52 = vsub.f32 0.0, %v9632_v60  ;;  %v9634_v9 = vperm.slane %v9633_v2, %v7724_v12  ;;  %v9635_v61 = vld [vmem:[#allocation62_spill] sm:$0xff] }
 0x5ec   :  { %v3871_v25 = vsub.f32 0.0, %v3394_v15  ;;  %v4332_v55 = vperm.slane %v3394_v15, %v7821_v4  ;;  %v3031_v30 = vpop.f32.mrf.mxu3  ;;  %v4334_v3 = vperm.slane %v3397_v13, %v7724_v12  ;;  %v4276_v43 = vperm.slane %v9632_v60, %v7861_v32  ;;  %v9636_v2 = vld [vmem:[#allocation106_spill] sm:$0xff] }
 0x5ed   :  { %v4273_v50 = vsel %vm4219_vm13, %v9634_v9, %v4271_v24  ;;  %v3232_v17 = vmul.f32 %v7882_v56, %v3031_v30  ;;  %v4856_v54 = vsel %vm4219_vm13, %v9635_v61, %v4854_v38  ;;  %v4917_v15 = vperm.slane %v3872_v62, %v7724_v12  ;;  %v9637_v30 = vld [vmem:[#allocation54_spill] sm:$0xff]  ;;  %v9638_v9 = vld [vmem:[#allocation75_spill] sm:$0xff] }
 0x5ee   :  { %v4333_v27 = vsel %vm4215_vm11, %v4332_v55, %v4331_v19  ;;  %v4915_v58 = vperm.slane %v3871_v25, %v7821_v4  ;;  %v4275_v63 = vsel %vm4223_vm14, %v4274_v41, %v4273_v50  ;;  %v4858_v13 = vsel %vm4223_vm14, %v4857_v28, %v4856_v54  ;;  %v9640_v25 = vld [vmem:[#allocation101_spill] sm:$0xff] }
 0x5ef   :  { %v4335_v24 = vsel %vm4219_vm13, %v4334_v3, %v4333_v27  ;;  %3531 = vadd.xlane.f32.xlu2 %v9636_v2  ;;  %v3797_v56 = vsel %vm3238_vm12, %v3232_v17, 0.0  ;;  %v3844_v60 = vsub.f32 0.0, %v9637_v30  ;;  %v9639_v19 = vperm.slane %v7696_v40, %v7688_v26  ;;  %v8291_v27 = vpop.xlane.xlu0 %3471 }
 0x5f0   :  { %v4916_v38 = vsel %vm4215_vm11, %v4915_v58, %v4914_v31  ;;  %3528 = vadd.xlane.f32.xlu1 %v9638_v9  ;;  %3798 = vadd.xlane.f32.xlu0 %v3797_v56  ;;  %v4836_v62 = vperm.slane %v3830_v47, %v7773_v7  ;;  %v4833_v55 = vsel %vm9317_vm1, %v9640_v25, %v4831_v16  ;;  %v9641_v31 = vld [vmem:[#allocation49_spill] sm:$0xff]  ;;  %v9643_v16 = vld [vmem:[#allocation24_spill] sm:$0xff]  ;;  %v9644_v56 = vld [vmem:[#allocation55_spill] sm:$0xff] }
 0x5f1   :  { %v4337_v41 = vsel %vm4223_vm14, %v9639_v19, %v4335_v24  ;;  %v4859_v50 = vperm.slane %v3842_v52, %v7861_v32  ;;  %v4918_v28 = vsel %vm4219_vm13, %v4917_v15, %v4916_v38  ;;  %v4835_v3 = vsel %vm9316_vm3, %v4834_v51, %v4833_v55  ;;  %v9645_v9 = vld [vmem:[#allocation6_spill] sm:$0xff]  ;;  %v8310_v25 = vld [vmem:[%s9258_s1 + $0x58] sm:$0xff] }
 0x5f2   :  { %v9642_v17 = vperm.slane %v9641_v31, %v7711_v18  ;;  %v4277_v40 = vsel %vm4227_vm15, %v4276_v43, %v4275_v63  ;;  %v3406_v54 = vpop.xlane.xlu2 %3405  ;;  %v4920_v47 = vsel %vm4223_vm14, %v8031_v33, %v4918_v28  ;;  %v3832_v58 = vsub.f32 0.0, %v9643_v16 }
 0x5f3   :  { %v4860_v52 = vsel %vm4227_vm15, %v4859_v50, %v4858_v13  ;;  %v4280_v51 = vperm.slane %v9637_v30, %v7704_v42  ;;  %v3875_v15 = vsub.f32 0.0, %v3406_v54  ;;  %v3403_v24 = vpop.xlane.xlu1 %3402  ;;  %v4863_v43 = vperm.slane %v3844_v60, %v7704_v42  ;;  %v9647_v50 = vld [vmem:[#allocation67_spill] sm:$0xff] }
 0x5f4   :  { %v4248_v61 = vsel %vm9311_vm5, %v9642_v17, %v4244_v20  ;;  %v4250_v20 = vperm.slane %v9643_v16, %v7949_v21  ;;  %v3874_v63 = vsub.f32 0.0, %v3403_v24  ;;  %v4338_v2 = vperm.slane %v3403_v24, %v7861_v32  ;;  %v3033_v33 = vpop.f32.mrf.mxu3  ;;  %v9648_v24 = vld [vmem:[#allocation111_spill] sm:$0xff] }
 0x5f5   :  { %v3845_v38 = vsub.f32 0.0, %v9644_v56  ;;  %v9646_v19 = vperm.slane %v9645_v9, %v7752_v10  ;;  %v4340_v30 = vperm.slane %v3406_v54, %v7752_v10  ;;  %v3233_v60 = vmul.f32 %v8310_v25, %v3033_v33 }
 0x5f6   :  { %v4282_v55 = vperm.slane %v9644_v56, %v7917_v11  ;;  %v4862_v28 = vsel %vm4231_vm0, %v9647_v50, %v4860_v52  ;;  %v4339_v31 = vsel %vm4227_vm15, %v4338_v2, %v4337_v41  ;;  %v4921_v17 = vperm.slane %v3874_v63, %v7861_v32  ;;  %v9649_v56 = vld [vmem:[#allocation104_spill] sm:$0xff]  ;;  %v9650_v50 = vld [vmem:[#allocation109_spill] sm:$0xff] }
 0x5f7   :  { %v4279_v13 = vsel %vm4231_vm0, %v9646_v19, %v4277_v40  ;;  %v4923_v54 = vperm.slane %v3875_v15, %v7752_v10  ;;  %v4341_v16 = vsel %vm4231_vm0, %v4340_v30, %v4339_v31  ;;  %3540 = vadd.xlane.f32.xlu2 %v9648_v24  ;;  %v3800_v33 = vsel %vm3238_vm12, %v3233_v60, 0.0 }
 0x5f8   :  { %v4281_v40 = vsel %vm9317_vm1, %v4280_v51, %v4279_v13  ;;  %v4864_v9 = vsel %vm9317_vm1, %v4863_v43, %v4862_v28  ;;  %v3847_v19 = vsub.f32 0.0, %v9649_v56  ;;  %v4922_v52 = vsel %vm4227_vm15, %v4921_v17, %v4920_v47  ;;  %3537 = vadd.xlane.f32.xlu1 %v9650_v50  ;;  %3801 = vadd.xlane.f32.xlu0 %v3800_v33  ;;  %v9652_v13 = vld [vmem:[#allocation44_spill] sm:$0xff] }
 0x5f9   :  { %v9651_v41 = vperm.slane %v7783_v37, %v7704_v42  ;;  %v4837_v15 = vsel %vm9312_vm4, %v4836_v62, %v4835_v3  ;;  %v4252_v63 = vsel %vm9310_vm6, %v4250_v20, %v4248_v61  ;;  %v4865_v2 = vperm.slane %v3845_v38, %v7917_v11 }
 0x5fa   :  { %v4924_v43 = vsel %vm4231_vm0, %v4923_v54, %v4922_v52  ;;  %v3833_v30 = vsub.f32 0.0, %v9652_v13  ;;  %v4254_v47 = vperm.slane %v9652_v13, %v9614_v59  ;;  %v4283_v60 = vsel %vm9316_vm3, %v4282_v55, %v4281_v40  ;;  %v3415_v28 = vpop.xlane.xlu2 %3414  ;;  %v8360_v52 = vld [vmem:[%s9258_s1 + $0x60] sm:$0xff] }
 0x5fb   :  { %v4343_v51 = vsel %vm9317_vm1, %v9651_v41, %v4341_v16  ;;  %v4926_v37 = vsel %vm9317_vm1, %v8046_v22, %v4924_v43  ;;  %v4840_v31 = vperm.slane %v3832_v58, %v7949_v21  ;;  %v4866_v62 = vsel %vm9316_vm3, %v4865_v2, %v4864_v9  ;;  %v3412_v20 = vpop.xlane.xlu1 %3411  ;;  %v8349_v16 = vpop.xlane.xlu0 %3480  ;;  %v9653_v22 = vld [vmem:[#allocation58_spill] sm:$0xff]  ;;  %v9654_v58 = vld [vmem:[#allocation56_spill] sm:$0xff]  ;;  %v9656_v41 = vld [vmem:[#allocation7_spill] sm:$0xff] }
 0x5fc   :  { %v4286_v3 = vperm.slane %v9649_v56, %v7711_v18  ;;  %v3878_v61 = vsub.f32 0.0, %v3415_v28  ;;  %v4256_v38 = vsel %vm4255_vm7, %v4254_v47, %v4252_v63  ;;  %v4869_v17 = vperm.slane %v3847_v19, %v7711_v18  ;;  %v3036_v40 = vpop.f32.mrf.mxu3 }
 0x5fd   :  { %v3877_v54 = vsub.f32 0.0, %v3412_v20  ;;  %v4344_v55 = vperm.slane %v3412_v20, %v7917_v11  ;;  %v3848_v24 = vsub.f32 0.0, %v9653_v22  ;;  %v9655_v33 = vperm.slane %v9654_v58, %v7773_v7  ;;  %v9661_v58 = vld [vmem:[#allocation72_spill] sm:$0xff] }
 0x5fe   :  { %v4346_v56 = vperm.slane %v3415_v28, %v7773_v7  ;;  %v3234_v19 = vmul.f32 %v8360_v52, %v3036_v40  ;;  %v4288_v50 = vperm.slane %v9653_v22, %v7949_v21  ;;  %v4868_v63 = vsel %vm9312_vm4, %v9656_v41, %v4866_v62  ;;  %v9657_v22 = vld [vmem:[#allocation112_spill] sm:$0xff] }
 0x5ff   :  { %v4285_v9 = vsel %vm9312_vm4, %v9655_v33, %v4283_v60  ;;  %v4345_v2 = vsel %vm9316_vm3, %v4344_v55, %v4343_v51  ;;  %v4927_v43 = vperm.slane %v3877_v54, %v7917_v11  ;;  %v4929_v47 = vperm.slane %v3878_v61, %v7773_v7  ;;  %3549 = vadd.xlane.f32.xlu2 %v7969_v23  ;;  %v9660_v54 = vld [vmem:[#allocation102_spill] sm:$0xff]  ;;  %v9662_v41 = vld [vmem:[#allocation20_spill] sm:$0xff] }
 0x600   :  { %v4287_v13 = vsel %vm9311_vm5, %v4286_v3, %v4285_v9  ;;  %v4347_v60 = vsel %vm9312_vm4, %v4346_v56, %v4345_v2  ;;  %v3803_v28 = vsel %vm3238_vm12, %v3234_v19, 0.0  ;;  %v4870_v20 = vsel %vm9311_vm5, %v4869_v17, %v4868_v63  ;;  %3546 = vadd.xlane.f32.xlu1 %v9657_v22  ;;  %v9659_v3 = vld [vmem:[#allocation114_spill] sm:$0xff] }
 0x601   :  { %v4928_v40 = vsel %vm9316_vm3, %v4927_v43, %v4926_v37  ;;  %3804 = vadd.xlane.f32.xlu0 %v3803_v28  ;;  %v9658_v51 = vperm.slane %v7890_v48, %v7711_v18  ;;  %v3557_v61 = vsel %vm3238_vm12, %v9659_v3, 0.0  ;;  %v4839_v23 = vsel %vm9311_vm5, %v9660_v54, %v4837_v15  ;;  %v9665_v28 = vld [vmem:[#allocation59_spill] sm:$0xff] }
 0x602   :  { %v4871_v55 = vperm.slane %v3848_v24, %v7949_v21  ;;  %v3850_v17 = vsub.f32 0.0, %v9661_v58  ;;  %v4930_v37 = vsel %vm9312_vm4, %v4929_v47, %v4928_v40  ;;  %v4842_v33 = vperm.slane %v3833_v30, %v9614_v59  ;;  %v3424_v56 = vpop.xlane.xlu2 %3423  ;;  %v9664_v47 = vld [vmem:[#allocation26_spill] sm:$0xff]  ;;  %v9668_v54 = vld [vmem:[#allocation71_spill] sm:$0xff] }
 0x603   :  { %v4349_v62 = vsel %vm9311_vm5, %v9658_v51, %v4347_v60  ;;  %v4841_v9 = vsel %vm9310_vm6, %v4840_v31, %v4839_v23  ;;  %v4289_v48 = vsel %vm9310_vm6, %v4288_v50, %v4287_v13  ;;  %v4932_v19 = vsel %vm9311_vm5, %v8053_v8, %v4930_v37  ;;  %v3421_v30 = vpop.xlane.xlu1 %3420  ;;  %v9667_v51 = vld [vmem:[#allocation108_spill] sm:$0xff] }
 0x604   :  { %v9663_v63 = vperm.slane %v9662_v41, %v7718_v36  ;;  %v4872_v24 = vsel %vm9310_vm6, %v4871_v55, %v4870_v20  ;;  %v4292_v2 = vperm.slane %v9661_v58, %v7718_v36  ;;  %v3881_v43 = vsub.f32 0.0, %v3424_v56  ;;  %v3038_v60 = vpop.f32.mrf.mxu3  ;;  %v9669_v55 = vld [vmem:[#allocation8_spill] sm:$0xff] }
 0x605   :  { %v3835_v31 = vsub.f32 0.0, %v9664_v47  ;;  %v4262_v50 = vperm.slane %v9664_v47, %v7962_v6  ;;  %v3880_v13 = vsub.f32 0.0, %v3421_v30  ;;  %v4350_v8 = vperm.slane %v3421_v30, %v7949_v21 }
 0x606   :  { %v4260_v15 = vsel %vm4259_vm8, %v9663_v63, %v4256_v38  ;;  %v9666_v40 = vperm.slane %v9665_v28, %v9614_v59  ;;  %v4875_v20 = vperm.slane %v3850_v17, %v7718_v36  ;;  %v4352_v22 = vperm.slane %v3424_v56, %v9614_v59  ;;  %v8416_v63 = vpop.xlane.xlu0 %3489 }
 0x607   :  { %v3235_v3 = vmul.f32 %v9667_v51, %v3038_v60  ;;  %v3851_v23 = vsub.f32 0.0, %v9668_v54  ;;  %v4874_v58 = vsel %vm4255_vm7, %v9669_v55, %v4872_v24  ;;  %v4351_v37 = vsel %vm9310_vm6, %v4350_v8, %v4349_v62  ;;  %3558 = vadd.xlane.f32.xlu2 %v3557_v61  ;;  %v9670_v60 = vld [vmem:[#allocation113_spill] sm:$0xff] }
 0x608   :  { %v4291_v38 = vsel %vm4255_vm7, %v9666_v40, %v4289_v48  ;;  %v4933_v41 = vperm.slane %v3880_v13, %v7949_v21  ;;  %v4935_v48 = vperm.slane %v3881_v43, %v9614_v59  ;;  %v4353_v17 = vsel %vm4255_vm7, %v4352_v22, %v4351_v37  ;;  %3555 = vadd.xlane.f32.xlu1 %v9670_v60  ;;  %v9672_v13 = vld [vmem:[#allocation116_spill] sm:$0xff]  ;;  %v9673_v55 = vld [vmem:[#allocation57_spill] sm:$0xff] }
 0x609   :  { %v4293_v30 = vsel %vm4259_vm8, %v4292_v2, %v4291_v38  ;;  %v3806_v56 = vsel %vm3238_vm12, %v3235_v3, 0.0  ;;  %v4294_v47 = vperm.slane %v9668_v54, %v7962_v6  ;;  %v9671_v62 = vperm.slane %v7998_v34, %v7718_v36 }
 0x60a   :  { %v4934_v24 = vsel %vm9310_vm6, %v4933_v41, %v4932_v19  ;;  %3807 = vadd.xlane.f32.xlu0 %v3806_v56  ;;  %v3566_v43 = vsel %vm3238_vm12, %v9672_v13, 0.0  ;;  %v4843_v61 = vsel %vm4255_vm7, %v4842_v33, %v4841_v9  ;;  %v4846_v8 = vperm.slane %v3835_v31, %v7962_v6  ;;  %v3433_v22 = vpop.xlane.xlu2 %3432 }
 0x60b   :  { %v4355_v2 = vsel %vm4259_vm8, %v9671_v62, %v4353_v17  ;;  %v4876_v28 = vsel %vm4259_vm8, %v4875_v20, %v4874_v58  ;;  %v4936_v40 = vsel %vm4255_vm7, %v4935_v48, %v4934_v24  ;;  %v4877_v19 = vperm.slane %v3851_v23, %v7962_v6  ;;  %v3430_v9 = vpop.xlane.xlu1 %3429 }
 0x60c   :  { %vm9315_vm6 = vcmask 1041409   ;;  %v4295_v38 = vsel %vm4263_vm9, %v4294_v47, %v4293_v30  ;;  %v4938_v34 = vsel %vm4259_vm8, %v8070_v53, %v4936_v40  ;;  %v4264_v51 = vsel %vm4263_vm9, %v4262_v50, %v4260_v15  ;;  %v8444_v23 = vpop.f32.mrf.mxu3 }
 0x60d   :  { %v3884_v3 = vsub.f32 0.0, %v3433_v22  ;;  %v4358_v33 = vperm.slane %v3433_v22, %v5872_v45  ;;  %vm9314_vm5 = vcmask 1042434   ;;  %v4878_v31 = vsel %vm4263_vm9, %v4877_v19, %v4876_v28 }
 0x60e   :  { %vm9313_vm4 = vcmask 1043459   ;;  %v3883_v20 = vsub.f32 0.0, %v3430_v9  ;;  %v4356_v54 = vperm.slane %v3430_v9, %v7962_v6  ;;  %v4845_v58 = vsel %vm4259_vm8, %v9673_v55, %v4843_v61 }
 0x60f   :  { %v4607_v53 = vsel %vm9315_vm6, %v4295_v38, %v4264_v51  ;;  %v4360_v15 = vsel %vm4207_vm2, %v4359_v14, %v4358_v33  ;;  %v4941_v50 = vperm.slane %v3884_v3, %v5872_v45  ;;  %v4847_v37 = vsel %vm4263_vm9, %v4846_v8, %v4845_v58  ;;  %3567 = vadd.xlane.f32.xlu2 %v3566_v43  ;;  %v9674_v14 = vld [vmem:[#allocation115_spill] sm:$0xff]  ;;  %v9677_v8 = vld [vmem:[#allocation12_spill] sm:$0xff] }
 0x610   :  { %v4357_v41 = vsel %vm4263_vm9, %v4356_v54, %v4355_v2  ;;  %v4609_v30 = vsel %vm9314_vm5, %v8171_v39, %v4607_v53  ;;  %v4939_v48 = vperm.slane %v3883_v20, %v7962_v6  ;;  %v5189_v17 = vsel %vm9315_vm6, %v4878_v31, %v4847_v37  ;;  %v8470_v39 = vpop.xlane.xlu0 %3498  ;;  %v9675_v2 = vld [vmem:[#allocation11_spill] sm:$0xff] }
 0x611   :  { %v4943_v56 = vsel %vm4207_vm2, %v8232_v29, %v4941_v50  ;;  %v8463_v1 = vsel %vm9313_vm4, %v4357_v41, %v4609_v30  ;;  %v3563_v47 = vsel %vm3238_vm12, %v9674_v14, 0.0  ;;  %v5190_v60 = vsel %vm9314_vm5, %v8187_v5, %v5189_v17  ;;  %v9676_v29 = vld [vmem:[#allocation73_spill] sm:$0xff]  ;;  %v8480_v43 = vld [vmem:[%s9258_s1 + $0x78] sm:$0xff] }
 0x612   :  { %v4940_v24 = vsel %vm4263_vm9, %v4939_v48, %v4938_v34  ;;  %3564 = vadd.xlane.f32.xlu1 %v3563_v47  ;;  %v3158_v13 = vmul.f32 %v9676_v29, %v9675_v2  ;;  %v3442_v61 = vpop.xlane.xlu2 %3441  ;;  %v3157_v28 = vmul.f32 %v8480_v43, %v9677_v8  ;;  %v3888_v19 = vsub.f32 0.0, %v8107_v35  ;;  %v9678_v41 = vld [vmem:[#allocation15_spill] sm:$0xff]  ;;  %v9679_v30 = vld [vmem:[#allocation105_spill] sm:$0xff] }
 0x613   :  { %v8473_v62 = vsel %vm9313_vm4, %v4940_v24, %v5190_v60  ;;  %v3887_v40 = vsub.f32 0.0, %v3442_v61  ;;  %v3439_v5 = vpop.xlane.xlu1 %3438  ;;  %v4363_v51 = vperm.slane %v3442_v61, %v7821_v4  ;;  %v4365_v33 = vperm.slane %v8107_v35, %v7724_v12  ;;  %v8507_v47 = vld [vmem:[%s9258_s1 + $0x10] sm:$0xff]  ;;  %v9680_v24 = vld [vmem:[#allocation13_spill] sm:$0xff] }
 0x614   :  { %v3886_v38 = vsub.f32 0.0, %v3439_v5  ;;  %v4361_v22 = vperm.slane %v3439_v5, %v7973_v44  ;;  %v3043_v34 = vpop.f32.mrf.mxu3  ;;  %v3575_v20 = vsel %vm3238_vm12, %v3158_v13, 0.0  ;;  %v3572_v58 = vsel %vm3238_vm12, %v3157_v28, 0.0 }
 0x615   :  { %v3237_v3 = vmul.f32 %v8480_v43, %v3043_v34  ;;  %v4946_v54 = vperm.slane %v3887_v40, %v7821_v4  ;;  %v4948_v50 = vperm.slane %v3888_v19, %v7724_v12  ;;  %v3161_v48 = vmul.f32 %v9679_v30, %v9678_v41 }
 0x616   :  { %v4362_v9 = vsel %vm4211_vm10, %v4361_v22, %v4360_v15  ;;  %v4944_v31 = vperm.slane %v3886_v38, %v7973_v44  ;;  %v3891_v13 = vsub.f32 0.0, %v8157_v57  ;;  %v4371_v40 = vperm.slane %v8157_v57, %v7752_v10 }
 0x617   :  { %v4364_v55 = vsel %vm4215_vm11, %v4363_v51, %v4362_v9  ;;  %3576 = vadd.xlane.f32.xlu2 %v3575_v20  ;;  %v3812_v53 = vsel %vm3238_vm12, %v3237_v3, 0.0  ;;  %v3584_v38 = vsel %vm3238_vm12, %v3161_v48, 0.0  ;;  %v9682_v20 = vld [vmem:[#allocation107_spill] sm:$0xff]  ;;  %v3894_v41 = vsub.f32 0.0, %v8234_v46 }
 0x618   :  { %v4945_v37 = vsel %vm4211_vm10, %v4944_v31, %v4943_v56  ;;  %3813 = vadd.xlane.f32.xlu0 %v3812_v53  ;;  %v4366_v35 = vsel %vm4219_vm13, %v4365_v33, %v4364_v55  ;;  %v3160_v56 = vmul.f32 %v8507_v47, %v9680_v24  ;;  %v8511_v60 = vpop.xlane.xlu0 %3507  ;;  %v4954_v3 = vperm.slane %v3891_v13, %v7752_v10  ;;  %v9681_v31 = vld [vmem:[#allocation76_spill] sm:$0xff]  ;;  %v8534_v53 = vld [vmem:[%s9258_s1 + $0x28] sm:$0xff] }
 0x619   :  { %v4947_v15 = vsel %vm4215_vm11, %v4946_v54, %v4945_v37  ;;  %v3164_v54 = vmul.f32 %v9682_v20, %v9681_v31  ;;  %v4377_v24 = vperm.slane %v8234_v46, %v7773_v7  ;;  %vm9684_vm4 = vcmask 720512  }
 0x61a   :  { %3573 = vadd.xlane.f32.xlu1 %v3572_v58  ;;  %v3451_v17 = vpop.xlane.xlu2 %3450  ;;  %v4949_v14 = vsel %vm4219_vm13, %v4948_v50, %v4947_v15  ;;  %v3581_v51 = vsel %vm3238_vm12, %v3160_v56, 0.0  ;;  %v9683_v50 = vld [vmem:[#allocation14_spill] sm:$0xff]  ;;  %vm9686_vm5 = vmmov %vm9684_vm4  ;;  %v3897_v31 = vsub.f32 0.0, %v8291_v27 }
 0x61b   :  { %v3890_v2 = vsub.f32 0.0, %v3451_v17  ;;  %v3448_v29 = vpop.xlane.xlu1 %3447  ;;  %v4369_v28 = vperm.slane %v3451_v17, %v7861_v32  ;;  %v3163_v37 = vmul.f32 %v8534_v53, %v9683_v50 }
 0x61c   :  { %v3889_v61 = vsub.f32 0.0, %v3448_v29  ;;  %v4367_v8 = vperm.slane %v3448_v29, %v7688_v26  ;;  %v3593_v29 = vsel %vm3238_vm12, %v3164_v54, 0.0 }
 0x61d   :  { %v4952_v22 = vperm.slane %v3890_v2, %v7861_v32 }
 0x61e   :  { %v4368_v5 = vsel %vm4223_vm14, %v4367_v8, %v4366_v35  ;;  %v4950_v19 = vperm.slane %v3889_v61, %v7688_v26  ;;  %v3590_v8 = vsel %vm3238_vm12, %v3163_v37, 0.0 }
 0x61f   :  { %v4370_v34 = vsel %vm4227_vm15, %v4369_v28, %v4368_v5  ;;  %3585 = vadd.xlane.f32.xlu2 %v3584_v38  ;;  %v4960_v28 = vperm.slane %v3894_v41, %v7773_v7 }
 0x620   :  { %v4951_v33 = vsel %vm4223_vm14, %v4950_v19, %v4949_v14  ;;  %v4372_v57 = vsel %vm4231_vm0, %v4371_v40, %v4370_v34  ;;  %v8540_v17 = vpop.xlane.xlu0 %3516  ;;  %v9685_v19 = vld [vmem:[#allocation18_spill] sm:$0xff] }
 0x621   :  { %v4953_v9 = vsel %vm4227_vm15, %v4952_v22, %v4951_v33  ;;  %v3167_v38 = vmul.f32 %v8206_v0, %v9685_v19 }
 0x622   :  { %3582 = vadd.xlane.f32.xlu1 %v3581_v51  ;;  %v3460_v55 = vpop.xlane.xlu2 %3459  ;;  %v4955_v58 = vsel %vm4231_vm0, %v4954_v3, %v4953_v9  ;;  %v8561_v51 = vld [vmem:[%s9258_s1 + $0x40] sm:$0xff] }
 0x623   :  { %v3893_v35 = vsub.f32 0.0, %v3460_v55  ;;  %v3457_v15 = vpop.xlane.xlu1 %3456  ;;  %v4375_v14 = vperm.slane %v3460_v55, %v7917_v11  ;;  %v9687_v3 = vld [vmem:[#allocation16_spill] sm:$0xff]  ;;  %v4383_v55 = vperm.slane %v8291_v27, %v9614_v59  ;;  %v3602_v37 = vsel %vm3238_vm12, %v3167_v38, 0.0 }
 0x624   :  { %v3892_v30 = vsub.f32 0.0, %v3457_v15  ;;  %v4373_v48 = vperm.slane %v3457_v15, %v7704_v42  ;;  %v3166_v33 = vmul.f32 %v8561_v51, %v9687_v3 }
 0x625   :  { %v4958_v13 = vperm.slane %v3893_v35, %v7917_v11 }
 0x626   :  { %v4374_v56 = vsel %vm9317_vm1, %v4373_v48, %v4372_v57  ;;  %v4956_v2 = vperm.slane %v3892_v30, %v7704_v42  ;;  %v3599_v30 = vsel %vm3238_vm12, %v3166_v33, 0.0  ;;  %v4966_v48 = vperm.slane %v3897_v31, %v9614_v59 }
 0x627   :  { %v4376_v61 = vsel %vm9316_vm3, %v4375_v14, %v4374_v56  ;;  %3594 = vadd.xlane.f32.xlu2 %v3593_v29  ;;  %v9692_v56 = vld [vmem:[#allocation17_spill] sm:$0xff]  ;;  %v3900_v31 = vsub.f32 0.0, %v8349_v16 }
 0x628   :  { %v4957_v40 = vsel %vm9317_vm1, %v4956_v2, %v4955_v58  ;;  %v4378_v46 = vsel %vm9684_vm4, %v4377_v24, %v4376_v61  ;;  %vm9688_vm4 = vcmask 786112   ;;  %v8573_v35 = vpop.xlane.xlu0 %3525  ;;  %v3170_v2 = vmul.f32 %v8360_v52, %v9692_v56  ;;  %v9693_v61 = vld [vmem:[#allocation77_spill] sm:$0xff] }
 0x629   :  { %v4959_v5 = vsel %vm9316_vm3, %v4958_v13, %v4957_v40  ;;  %vm9690_vm6 = vmmov %vm9688_vm4  ;;  %v4394_v56 = vperm.slane %v8416_v63, %v7821_v4 }
 0x62a   :  { %3591 = vadd.xlane.f32.xlu1 %v3590_v8  ;;  %v3469_v22 = vpop.xlane.xlu2 %3468  ;;  %v4961_v34 = vsel %vm9686_vm5, %v4960_v28, %v4959_v5  ;;  %vm9689_vm5 = vcmask 851712   ;;  %v3169_v8 = vmul.f32 %v8310_v25, %v9693_v61  ;;  %v3611_v52 = vsel %vm3238_vm12, %v3170_v2, 0.0 }
 0x62b   :  { %v3896_v57 = vsub.f32 0.0, %v3469_v22  ;;  %v3466_v9 = vpop.xlane.xlu1 %3465  ;;  %v4381_v0 = vperm.slane %v3469_v22, %v7949_v21 }
 0x62c   :  { %v3895_v20 = vsub.f32 0.0, %v3466_v9  ;;  %v4379_v54 = vperm.slane %v3466_v9, %v7711_v18  ;;  %v3608_v33 = vsel %vm3238_vm12, %v3169_v8, 0.0 }
 0x62d   :  { %v4964_v15 = vperm.slane %v3896_v57, %v7949_v21 }
 0x62e   :  { %v4380_v58 = vsel %vm9688_vm4, %v4379_v54, %v4378_v46  ;;  %v4962_v50 = vperm.slane %v3895_v20, %v7711_v18  ;;  %vm9691_vm4 = vmmov %vm9689_vm5 }
 0x62f   :  { %v4382_v41 = vsel %vm9689_vm5, %v4381_v0, %v4380_v58  ;;  %3603 = vadd.xlane.f32.xlu2 %v3602_v37  ;;  %v9694_v0 = vld [vmem:[#allocation78_spill] sm:$0xff]  ;;  %v9695_v37 = vld [vmem:[#allocation19_spill] sm:$0xff]  ;;  %vm9702_vm5 = vcmask 720512  }
 0x630   :  { %v4963_v14 = vsel %vm9690_vm6, %v4962_v50, %v4961_v34  ;;  %v4384_v27 = vsel %vm4255_vm7, %v4383_v55, %v4382_v41  ;;  %vm4612_vm6 = vcmask 1044484   ;;  %v8600_v20 = vpop.xlane.xlu0 %3534  ;;  %v3173_v55 = vmul.f32 %v8480_v43, %v9694_v0 }
 0x631   :  { %v4965_v24 = vsel %vm9691_vm4, %v4964_v15, %v4963_v14  ;;  %v3903_v14 = vsub.f32 0.0, %v8416_v63  ;;  %vm9703_vm4 = vcmask 786112  }
 0x632   :  { %3600 = vadd.xlane.f32.xlu1 %v3599_v30  ;;  %v3478_v29 = vpop.xlane.xlu2 %3477  ;;  %v4967_v13 = vsel %vm4255_vm7, %v4966_v48, %v4965_v24  ;;  %v4389_v48 = vperm.slane %v8349_v16, %v5872_v45 }
 0x633   :  { %v3899_v28 = vsub.f32 0.0, %v3478_v29  ;;  %v3475_v40 = vpop.xlane.xlu1 %3474  ;;  %v4387_v19 = vperm.slane %v3478_v29, %v7962_v6 }
 0x634   :  { %v3898_v46 = vsub.f32 0.0, %v3475_v40  ;;  %v4385_v5 = vperm.slane %v3475_v40, %v7718_v36 }
 0x635   :  { %v4970_v34 = vperm.slane %v3899_v28, %v7962_v6  ;;  %v4977_v28 = vperm.slane %v3903_v14, %v7821_v4 }
 0x636   :  { %v4386_v38 = vsel %vm4259_vm8, %v4385_v5, %v4384_v27  ;;  %v4968_v22 = vperm.slane %v3898_v46, %v7718_v36  ;;  %v4972_v27 = vperm.slane %v3900_v31, %v5872_v45  ;;  %v9696_v5 = vld [vmem:[#allocation21_spill] sm:$0xff] }
 0x637   :  { %v4388_v3 = vsel %vm4263_vm9, %v4387_v19, %v4386_v38  ;;  %3612 = vadd.xlane.f32.xlu2 %v3611_v52  ;;  %v3176_v19 = vmul.f32 %v8507_v47, %v9696_v5 }
 0x638   :  { %v8596_v57 = vsel %vm4612_vm6, %v4388_v3, %v8463_v1  ;;  %v4969_v9 = vsel %vm4259_vm8, %v4968_v22, %v4967_v13  ;;  %v8611_v1 = vld [vmem:[%s9258_s1 + $0x70] sm:$0xff]  ;;  %v3620_v13 = vsel %vm3238_vm12, %v3173_v55, 0.0  ;;  %v8636_v52 = vpop.xlane.xlu0 %3543 }
 0x639   :  { %v4971_v54 = vsel %vm4263_vm9, %v4970_v34, %v4969_v9  ;;  %v3172_v15 = vmul.f32 %v8611_v1, %v9695_v37  ;;  %v8641_v34 = vld [vmem:[%s9258_s1 + $0x8] sm:$0xff]  ;;  %v9697_v3 = vld [vmem:[#allocation79_spill] sm:$0xff]  ;;  %v4400_v37 = vperm.slane %v8470_v39, %v7861_v32 }
 0x63a   :  { %3609 = vadd.xlane.f32.xlu1 %v3608_v33  ;;  %v8606_v58 = vsel %vm4612_vm6, %v4971_v54, %v8473_v62  ;;  %v3487_v50 = vpop.xlane.xlu2 %3486  ;;  %v3175_v33 = vmul.f32 %v8641_v34, %v9697_v3  ;;  %v3906_v54 = vsub.f32 0.0, %v8470_v39  ;;  %vm9704_vm6 = vmmov %vm9702_vm5 }
 0x63b   :  { %v3902_v41 = vsub.f32 0.0, %v3487_v50  ;;  %v3484_v30 = vpop.xlane.xlu1 %3483  ;;  %v4392_v24 = vperm.slane %v3487_v50, %v7973_v44  ;;  %v3617_v8 = vsel %vm3238_vm12, %v3172_v15, 0.0 }
 0x63c   :  { %v3901_v43 = vsub.f32 0.0, %v3484_v30  ;;  %v4390_v62 = vperm.slane %v3484_v30, %v7685_v49  ;;  %v3629_v30 = vsel %vm3238_vm12, %v3176_v19, 0.0 }
 0x63d   :  { %v4975_v16 = vperm.slane %v3902_v41, %v7973_v44 }
 0x63e   :  { %v4391_v2 = vsel %vm4207_vm2, %v4390_v62, %v4389_v48  ;;  %v4973_v29 = vperm.slane %v3901_v43, %v7685_v49  ;;  %v3626_v43 = vsel %vm3238_vm12, %v3175_v33, 0.0  ;;  %v4983_v62 = vperm.slane %v3906_v54, %v7861_v32 }
 0x63f   :  { %v4393_v61 = vsel %vm4211_vm10, %v4392_v24, %v4391_v2  ;;  %3621 = vadd.xlane.f32.xlu2 %v3620_v13 }
 0x640   :  { %v4974_v40 = vsel %vm4207_vm2, %v4973_v29, %v4972_v27  ;;  %v4395_v63 = vsel %vm4215_vm11, %v4394_v56, %v4393_v61  ;;  %v9698_v56 = vld [vmem:[#allocation81_spill] sm:$0xff]  ;;  %v9699_v61 = vld [vmem:[#allocation80_spill] sm:$0xff]  ;;  %v8672_v19 = vpop.xlane.xlu0 %3552 }
 0x641   :  { %v4976_v46 = vsel %vm4211_vm10, %v4975_v16, %v4974_v40  ;;  %v3179_v2 = vmul.f32 %v8534_v53, %v9698_v56  ;;  %v8666_v16 = vld [vmem:[%s9258_s1 + $0x20] sm:$0xff] }
 0x642   :  { %3618 = vadd.xlane.f32.xlu1 %v3617_v8  ;;  %v3496_v38 = vpop.xlane.xlu2 %3495  ;;  %v4978_v22 = vsel %vm4215_vm11, %v4977_v28, %v4976_v46  ;;  %v3178_v8 = vmul.f32 %v8666_v16, %v9699_v61 }
 0x643   :  { %v3905_v9 = vsub.f32 0.0, %v3496_v38  ;;  %v3493_v31 = vpop.xlane.xlu1 %3492  ;;  %v4398_v50 = vperm.slane %v3496_v38, %v7688_v26 }
 0x644   :  { %v3904_v0 = vsub.f32 0.0, %v3493_v31  ;;  %v4396_v55 = vperm.slane %v3493_v31, %v7724_v12 }
 0x645   :  { %v4981_v48 = vperm.slane %v3905_v9, %v7688_v26  ;;  %v3638_v9 = vsel %vm3238_vm12, %v3179_v2, 0.0 }
 0x646   :  { %v4397_v15 = vsel %vm4219_vm13, %v4396_v55, %v4395_v63  ;;  %v4979_v41 = vperm.slane %v3904_v0, %v7724_v12  ;;  %v3909_v63 = vsub.f32 0.0, %v8511_v60  ;;  %v3635_v0 = vsel %vm3238_vm12, %v3178_v8, 0.0 }
 0x647   :  { %v4399_v14 = vsel %vm4223_vm14, %v4398_v50, %v4397_v15  ;;  %3630 = vadd.xlane.f32.xlu2 %v3629_v30  ;;  %v9700_v15 = vld [vmem:[#allocation84_spill] sm:$0xff] }
 0x648   :  { %v4980_v27 = vsel %vm4219_vm13, %v4979_v41, %v4978_v22  ;;  %v4401_v39 = vsel %vm4227_vm15, %v4400_v37, %v4399_v14  ;;  %v4406_v22 = vperm.slane %v8511_v60, %v7917_v11  ;;  %v4989_v55 = vperm.slane %v3909_v63, %v7917_v11  ;;  %v8693_v14 = vld [vmem:[%s9258_s1 + $0x38] sm:$0xff] }
 0x649   :  { %v4982_v24 = vsel %vm4223_vm14, %v4981_v48, %v4980_v27  ;;  %v3182_v41 = vmul.f32 %v8561_v51, %v9700_v15  ;;  %v3915_v15 = vsub.f32 0.0, %v8573_v35 }
 0x64a   :  { %3627 = vadd.xlane.f32.xlu1 %v3626_v43  ;;  %v3505_v29 = vpop.xlane.xlu2 %3504  ;;  %v4984_v13 = vsel %vm4227_vm15, %v4983_v62, %v4982_v24  ;;  %v9701_v43 = vld [vmem:[#allocation82_spill] sm:$0xff]  ;;  %v3912_v24 = vsub.f32 0.0, %v8540_v17 }
 0x64b   :  { %v3908_v28 = vsub.f32 0.0, %v3505_v29  ;;  %v3502_v40 = vpop.xlane.xlu1 %3501  ;;  %v4404_v38 = vperm.slane %v3505_v29, %v7704_v42  ;;  %v3181_v62 = vmul.f32 %v8693_v14, %v9701_v43 }
 0x64c   :  { %v3907_v46 = vsub.f32 0.0, %v3502_v40  ;;  %v4402_v5 = vperm.slane %v3502_v40, %v7752_v10  ;;  %v8705_v40 = vpop.xlane.xlu0 %3561 }
 0x64d   :  { %v4987_v31 = vperm.slane %v3908_v28, %v7704_v42  ;;  %v3647_v28 = vsel %vm3238_vm12, %v3182_v41, 0.0 }
 0x64e   :  { %v4403_v3 = vsel %vm4231_vm0, %v4402_v5, %v4401_v39  ;;  %v4985_v33 = vperm.slane %v3907_v46, %v7752_v10  ;;  %v3644_v5 = vsel %vm3238_vm12, %v3181_v62, 0.0 }
 0x64f   :  { %v4405_v54 = vsel %vm9317_vm1, %v4404_v38, %v4403_v3  ;;  %3639 = vadd.xlane.f32.xlu2 %v3638_v9  ;;  %v4995_v38 = vperm.slane %v3912_v24, %v7949_v21 }
 0x650   :  { %v4986_v50 = vsel %vm4231_vm0, %v4985_v33, %v4984_v13  ;;  %v4407_v60 = vsel %vm9316_vm3, %v4406_v22, %v4405_v54  ;;  %v4412_v13 = vperm.slane %v8540_v17, %v7949_v21  ;;  %v9707_v33 = vld [vmem:[#allocation88_spill] sm:$0xff] }
 0x651   :  { %v4988_v37 = vsel %vm9317_vm1, %v4987_v31, %v4986_v50  ;;  %v3185_v9 = vmul.f32 %v8310_v25, %v9707_v33  ;;  %v4418_v25 = vperm.slane %v8573_v35, %v7962_v6 }
 0x652   :  { %3636 = vadd.xlane.f32.xlu1 %v3635_v0  ;;  %v3514_v30 = vpop.xlane.xlu2 %3513  ;;  %v4990_v48 = vsel %vm9316_vm3, %v4989_v55, %v4988_v37  ;;  %vm9705_vm3 = vcmask 851712   ;;  %v8720_v0 = vld [vmem:[%s9258_s1 + $0x50] sm:$0xff] }
 0x653   :  { %v3911_v27 = vsub.f32 0.0, %v3514_v30  ;;  %v3511_v39 = vpop.xlane.xlu1 %3510  ;;  %v4410_v29 = vperm.slane %v3514_v30, %v7711_v18  ;;  %vm9708_vm1 = vmmov %vm9705_vm3  ;;  %v9709_v55 = vld [vmem:[#allocation86_spill] sm:$0xff] }
 0x654   :  { %v3910_v56 = vsub.f32 0.0, %v3511_v39  ;;  %v4408_v2 = vperm.slane %v3511_v39, %v7773_v7  ;;  %v3184_v50 = vmul.f32 %v8720_v0, %v9709_v55 }
 0x655   :  { %v4993_v63 = vperm.slane %v3911_v27, %v7711_v18  ;;  %v3656_v27 = vsel %vm3238_vm12, %v3185_v9, 0.0 }
 0x656   :  { %v4409_v61 = vsel %vm9702_vm5, %v4408_v2, %v4407_v60  ;;  %v4991_v8 = vperm.slane %v3910_v56, %v7773_v7  ;;  %vm9706_vm5 = vmmov %vm9703_vm4  ;;  %v3653_v56 = vsel %vm3238_vm12, %v3184_v50, 0.0  ;;  %v5001_v2 = vperm.slane %v3915_v15, %v7962_v6 }
 0x657   :  { %v4411_v46 = vsel %vm9703_vm4, %v4410_v29, %v4409_v61  ;;  %3648 = vadd.xlane.f32.xlu2 %v3647_v28  ;;  %v3918_v28 = vsub.f32 0.0, %v8600_v20  ;;  %v4423_v50 = vperm.slane %v8600_v20, %v7973_v44 }
 0x658   :  { %v4992_v22 = vsel %vm9704_vm6, %v4991_v8, %v4990_v48  ;;  %v4413_v17 = vsel %vm9705_vm3, %v4412_v13, %v4411_v46  ;;  %v8738_v13 = vpop.xlane.xlu0 %3570  ;;  %vm9716_vm3 = vcmask 589312   ;;  %vm9720_vm6 = vcmask 654912  }
 0x659   :  { %v4994_v3 = vsel %vm9706_vm5, %v4993_v63, %v4992_v22  ;;  %v9710_v63 = vld [vmem:[#allocation91_spill] sm:$0xff]  ;;  %v8752_v22 = vld [vmem:[%s9258_s1 + $0x68] sm:$0xff]  ;;  %vm9718_vm4 = vmmov %vm9716_vm3  ;;  %vm9721_vm5 = vcmask 720512  }
 0x65a   :  { %3645 = vadd.xlane.f32.xlu1 %v3644_v5  ;;  %v3523_v31 = vpop.xlane.xlu2 %3522  ;;  %v4996_v54 = vsel %vm9708_vm1, %v4995_v38, %v4994_v3  ;;  %vm4614_vm1 = vcmask 1045509   ;;  %v3188_v46 = vmul.f32 %v8611_v1, %v9710_v63 }
 0x65b   :  { %v3914_v60 = vsub.f32 0.0, %v3523_v31  ;;  %v3520_v37 = vpop.xlane.xlu1 %3519  ;;  %v4416_v48 = vperm.slane %v3523_v31, %v7718_v36 }
 0x65c   :  { %v3913_v41 = vsub.f32 0.0, %v3520_v37  ;;  %v4414_v30 = vperm.slane %v3520_v37, %v9614_v59 }
 0x65d   :  { %v4999_v39 = vperm.slane %v3914_v60, %v7718_v36 }
 0x65e   :  { %v4415_v43 = vsel %vm4255_vm7, %v4414_v30, %v4413_v17  ;;  %v4997_v62 = vperm.slane %v3913_v41, %v9614_v59  ;;  %v9711_v17 = vld [vmem:[#allocation89_spill] sm:$0xff]  ;;  %v3665_v41 = vsel %vm3238_vm12, %v3188_v46, 0.0  ;;  %v5006_v30 = vperm.slane %v3918_v28, %v7973_v44 }
 0x65f   :  { %v4417_v24 = vsel %vm4259_vm8, %v4416_v48, %v4415_v43  ;;  %3657 = vadd.xlane.f32.xlu2 %v3656_v27  ;;  %v3187_v3 = vmul.f32 %v8752_v22, %v9711_v17  ;;  %v9712_v43 = vld [vmem:[#allocation83_spill] sm:$0xff]  ;;  %v4429_v46 = vperm.slane %v8636_v52, %v7688_v26 }
 0x660   :  { %v4419_v35 = vsel %vm4263_vm9, %v4418_v25, %v4417_v24  ;;  %v4998_v29 = vsel %vm4255_vm7, %v4997_v62, %v4996_v54  ;;  %v3191_v62 = vmul.f32 %v8641_v34, %v9712_v43  ;;  %v8780_v24 = vld [vmem:[%s9258_s1] sm:$0xff] }
 0x661   :  { %v5000_v61 = vsel %vm4259_vm8, %v4999_v39, %v4998_v29  ;;  %v8743_v8 = vsel %vm4614_vm1, %v4419_v35, %v8596_v57  ;;  %v8775_v39 = vpop.xlane.xlu0 %3579 }
 0x662   :  { %3654 = vadd.xlane.f32.xlu1 %v3653_v56  ;;  %v5002_v5 = vsel %vm4263_vm9, %v5001_v2, %v5000_v61  ;;  %v3532_v38 = vpop.xlane.xlu2 %3531  ;;  %v9713_v56 = vld [vmem:[#allocation23_spill] sm:$0xff]  ;;  %v3921_v61 = vsub.f32 0.0, %v8636_v52  ;;  %v3674_v17 = vsel %vm3238_vm12, %v3191_v62, 0.0 }
 0x663   :  { %v3917_v33 = vsub.f32 0.0, %v3532_v38  ;;  %v4421_v57 = vperm.slane %v3532_v38, %v7685_v49  ;;  %v3529_v9 = vpop.xlane.xlu1 %3528  ;;  %v8759_v31 = vsel %vm4614_vm1, %v5002_v5, %v8606_v58  ;;  %v3662_v58 = vsel %vm3238_vm12, %v3187_v3, 0.0  ;;  %vm9722_vm1 = vmmov %vm9720_vm6 }
 0x664   :  { %v3916_v54 = vsub.f32 0.0, %v3529_v9  ;;  %v4420_v55 = vperm.slane %v3529_v9, %v5872_v45  ;;  %v3190_v2 = vmul.f32 %v8780_v24, %v9713_v56  ;;  %v5012_v9 = vperm.slane %v3921_v61, %v7688_v26 }
 0x665   :  { %v5004_v60 = vperm.slane %v3917_v33, %v7685_v49  ;;  %v4435_v56 = vperm.slane %v8672_v19, %v7704_v42 }
 0x666   :  { %v4422_v37 = vsel %vm4207_vm2, %v4421_v57, %v4420_v55  ;;  %v5003_v15 = vperm.slane %v3916_v54, %v5872_v45  ;;  %v3671_v57 = vsel %vm3238_vm12, %v3190_v2, 0.0 }
 0x667   :  { %3666 = vadd.xlane.f32.xlu2 %v3665_v41  ;;  %v4424_v25 = vsel %vm4211_vm10, %v4423_v50, %v4422_v37  ;;  %v9714_v50 = vld [vmem:[#allocation87_spill] sm:$0xff] }
 0x668   :  { %v5005_v48 = vsel %vm4207_vm2, %v5004_v60, %v5003_v15  ;;  %v3194_v60 = vmul.f32 %v8666_v16, %v9714_v50  ;;  %v8805_v41 = vld [vmem:[%s9258_s1 + $0x18] sm:$0xff]  ;;  %v3927_v50 = vsub.f32 0.0, %v8705_v40 }
 0x669   :  { %v5007_v20 = vsel %vm4211_vm10, %v5006_v30, %v5005_v48  ;;  %v9715_v30 = vld [vmem:[#allocation85_spill] sm:$0xff] }
 0x66a   :  { %3663 = vadd.xlane.f32.xlu1 %v3662_v58  ;;  %v3541_v27 = vpop.xlane.xlu2 %3540  ;;  %v3193_v58 = vmul.f32 %v8805_v41, %v9715_v30 }
 0x66b   :  { %v3920_v35 = vsub.f32 0.0, %v3541_v27  ;;  %v3538_v29 = vpop.xlane.xlu1 %3537  ;;  %v4427_v34 = vperm.slane %v3541_v27, %v7724_v12  ;;  %v8811_v27 = vpop.xlane.xlu0 %3588 }
 0x66c   :  { %v3919_v28 = vsub.f32 0.0, %v3538_v29  ;;  %v4425_v63 = vperm.slane %v3538_v29, %v7821_v4  ;;  %v3683_v29 = vsel %vm3238_vm12, %v3194_v60, 0.0 }
 0x66d   :  { %v5010_v3 = vperm.slane %v3920_v35, %v7724_v12 }
 0x66e   :  { %v4426_v5 = vsel %vm4215_vm11, %v4425_v63, %v4424_v25  ;;  %v5008_v38 = vperm.slane %v3919_v28, %v7821_v4  ;;  %v3680_v63 = vsel %vm3238_vm12, %v3193_v58, 0.0  ;;  %v4441_v58 = vperm.slane %v8705_v40, %v7711_v18 }
 0x66f   :  { %v4428_v33 = vsel %vm4219_vm13, %v4427_v34, %v4426_v5  ;;  %3675 = vadd.xlane.f32.xlu2 %v3674_v17 }
 0x670   :  { %v5009_v54 = vsel %vm4215_vm11, %v5008_v38, %v5007_v20  ;;  %v4430_v52 = vsel %vm4223_vm14, %v4429_v46, %v4428_v33  ;;  %v3924_v20 = vsub.f32 0.0, %v8672_v19  ;;  %v9717_v38 = vld [vmem:[#allocation42_spill] sm:$0xff] }
 0x671   :  { %v5011_v55 = vsel %vm4219_vm13, %v5010_v3, %v5009_v54  ;;  %v3206_v17 = vmul.f32 %v8780_v24, %v9717_v38  ;;  %v3930_v38 = vsub.f32 0.0, %v8738_v13 }
 0x672   :  { %3672 = vadd.xlane.f32.xlu1 %v3671_v57  ;;  %v3550_v37 = vpop.xlane.xlu2 %3549  ;;  %v5013_v15 = vsel %vm4223_vm14, %v5012_v9, %v5011_v55  ;;  %v5018_v34 = vperm.slane %v3924_v20, %v7704_v42  ;;  %v8832_v57 = vld [vmem:[%s9258_s1 + $0x30] sm:$0xff] }
 0x673   :  { %v3923_v25 = vsub.f32 0.0, %v3550_v37  ;;  %v3547_v48 = vpop.xlane.xlu1 %3546  ;;  %v4433_v16 = vperm.slane %v3550_v37, %v7752_v10  ;;  %v9719_v9 = vld [vmem:[#allocation31_spill] sm:$0xff]  ;;  %v3719_v20 = vsel %vm3238_vm12, %v3206_v17, 0.0 }
 0x674   :  { %v3922_v43 = vsub.f32 0.0, %v3547_v48  ;;  %v4431_v62 = vperm.slane %v3547_v48, %v7861_v32  ;;  %v3196_v54 = vmul.f32 %v8832_v57, %v9719_v9 }
 0x675   :  { %v5016_v61 = vperm.slane %v3923_v25, %v7752_v10 }
 0x676   :  { %v4432_v2 = vsel %vm4227_vm15, %v4431_v62, %v4430_v52  ;;  %v5014_v35 = vperm.slane %v3922_v43, %v7861_v32 }
 0x677   :  { %v4434_v28 = vsel %vm4231_vm0, %v4433_v16, %v4432_v2  ;;  %3684 = vadd.xlane.f32.xlu2 %v3683_v29  ;;  %v3689_v16 = vsel %vm3238_vm12, %v3196_v54, 0.0  ;;  %v9725_v29 = vld [vmem:[#allocation98_spill] sm:$0xff] }
 0x678   :  { %v5015_v46 = vsel %vm4227_vm15, %v5014_v35, %v5013_v15  ;;  %v4436_v19 = vsel %vm9716_vm3, %v4435_v56, %v4434_v28  ;;  %v8838_v15 = vpop.xlane.xlu0 %3597  ;;  %v5024_v56 = vperm.slane %v3927_v50, %v7711_v18  ;;  %vm9723_vm3 = vcmask 786112  }
 0x679   :  { %v5017_v5 = vsel %vm4231_vm0, %v5016_v61, %v5015_v46  ;;  %v3222_v61 = vmul.f32 %v8780_v24, %v9725_v29  ;;  %v4447_v24 = vperm.slane %v8738_v13, %v7718_v36 }
 0x67a   :  { %3681 = vadd.xlane.f32.xlu1 %v3680_v63  ;;  %v3559_v3 = vpop.xlane.xlu2 %3558  ;;  %v5019_v33 = vsel %vm9718_vm4, %v5018_v34, %v5017_v5  ;;  %vm9724_vm4 = vmmov %vm9721_vm5  ;;  %v9727_v34 = vld [vmem:[#allocation50_spill] sm:$0xff] }
 0x67b   :  { %v3926_v52 = vsub.f32 0.0, %v3559_v3  ;;  %v3556_v55 = vpop.xlane.xlu1 %3555  ;;  %v4439_v30 = vperm.slane %v3559_v3, %v7773_v7  ;;  %v3208_v46 = vmul.f32 %v8507_v47, %v9727_v34 }
 0x67c   :  { %v3925_v60 = vsub.f32 0.0, %v3556_v55  ;;  %v4437_v37 = vperm.slane %v3556_v55, %v7917_v11  ;;  %v3767_v55 = vsel %vm3238_vm12, %v3222_v61, 0.0 }
 0x67d   :  { %v5022_v43 = vperm.slane %v3926_v52, %v7773_v7 }
 0x67e   :  { %v4438_v25 = vsel %vm9720_vm6, %v4437_v37, %v4436_v19  ;;  %v5020_v48 = vperm.slane %v3925_v60, %v7917_v11  ;;  %vm9726_vm6 = vmmov %vm9723_vm3  ;;  %v3725_v37 = vsel %vm3238_vm12, %v3208_v46, 0.0 }
 0x67f   :  { %v4440_v62 = vsel %vm9721_vm5, %v4439_v30, %v4438_v25  ;;  %3720 = vadd.xlane.f32.xlu2 %v3719_v20  ;;  %vm9728_vm5 = vcmask 851712   ;;  %v5030_v30 = vperm.slane %v3930_v38, %v7718_v36  ;;  %v3933_v25 = vsub.f32 0.0, %v8775_v39  ;;  %v9730_v20 = vld [vmem:[#allocation61_spill] sm:$0xff] }
 0x680   :  { %v5021_v2 = vsel %vm9722_vm1, %v5020_v48, %v5019_v33  ;;  %v4442_v40 = vsel %vm9723_vm3, %v4441_v58, %v4440_v62  ;;  %v8860_v33 = vpop.xlane.xlu0 %3606  ;;  %vm9729_vm1 = vmmov %vm9728_vm5  ;;  %vm4616_vm3 = vcmask 1046534  }
 0x681   :  { %v5023_v35 = vsel %vm9724_vm4, %v5022_v43, %v5021_v2  ;;  %v3224_v43 = vmul.f32 %v8507_v47, %v9730_v20  ;;  %v9731_v2 = vld [vmem:[#allocation10_spill] sm:$0xff]  ;;  %v5035_v34 = vperm.slane %v3933_v25, %v7685_v49  ;;  %vm9738_vm4 = vcmask 589312  }
 0x682   :  { %3690 = vadd.xlane.f32.xlu1 %v3689_v16  ;;  %v3568_v28 = vpop.xlane.xlu2 %3567  ;;  %v5025_v63 = vsel %vm9726_vm6, %v5024_v56, %v5023_v35  ;;  %v4452_v56 = vperm.slane %v8775_v39, %v7685_v49  ;;  %vm9739_vm6 = vcmask 654912  }
 0x683   :  { %v3929_v19 = vsub.f32 0.0, %v3568_v28  ;;  %v4445_v9 = vperm.slane %v3568_v28, %v9614_v59  ;;  %v3773_v38 = vsel %vm3238_vm12, %v3224_v43, 0.0 }
 0x685   :  { %v3565_v5 = vpop.xlane.xlu1 %3564  ;;  %v5028_v50 = vperm.slane %v3929_v19, %v9614_v59 }
 0x686   :  { %v3928_v17 = vsub.f32 0.0, %v3565_v5  ;;  %v4443_v3 = vperm.slane %v3565_v5, %v7949_v21 }
 0x687   :  { %3768 = vadd.xlane.f32.xlu2 %v3767_v55 }
 0x688   :  { %v4444_v54 = vsel %vm9728_vm5, %v4443_v3, %v4442_v40  ;;  %v5026_v52 = vperm.slane %v3928_v17, %v7949_v21  ;;  %v3209_v40 = vmul.f32 %v8805_v41, %v9731_v2  ;;  %v8886_v47 = vpop.xlane.xlu0 %3615  ;;  %vm9740_vm5 = vmmov %vm9738_vm4 }
 0x689   :  { %v4446_v60 = vsel %vm4255_vm7, %v4445_v9, %v4444_v54 }
 0x68a   :  { %v5027_v58 = vsel %vm9729_vm1, %v5026_v52, %v5025_v63  ;;  %3726 = vadd.xlane.f32.xlu1 %v3725_v37  ;;  %v4448_v13 = vsel %vm4259_vm8, %v4447_v24, %v4446_v60  ;;  %v3577_v62 = vpop.xlane.xlu2 %3576  ;;  %v3728_v9 = vsel %vm3238_vm12, %v3209_v40, 0.0  ;;  %v9732_v52 = vld [vmem:[#allocation52_spill] sm:$0xff]  ;;  %v9733_v60 = vld [vmem:[#allocation74_spill] sm:$0xff]  ;;  %vm9741_vm1 = vcmask 720512  }
 0x68b   :  { %v5029_v48 = vsel %vm4255_vm7, %v5028_v50, %v5027_v58  ;;  %v3932_v35 = vsub.f32 0.0, %v3577_v62  ;;  %v4451_v29 = vperm.slane %v3577_v62, %v5872_v45  ;;  %v3211_v55 = vmul.f32 %v8534_v53, %v9732_v52 }
 0x68c   :  { %v5031_v16 = vsel %vm4259_vm8, %v5030_v30, %v5029_v48  ;;  %v3225_v37 = vmul.f32 %v8805_v41, %v9733_v60  ;;  %v3936_v58 = vsub.f32 0.0, %v8811_v27 }
 0x68d   :  { %v3574_v61 = vpop.xlane.xlu1 %3573  ;;  %v4453_v46 = vsel %vm4207_vm2, %v4452_v56, %v4451_v29  ;;  %v5034_v19 = vperm.slane %v3932_v35, %v5872_v45  ;;  %v3734_v41 = vsel %vm3238_vm12, %v3211_v55, 0.0  ;;  %v9734_v29 = vld [vmem:[#allocation37_spill] sm:$0xff] }
 0x68e   :  { %v3931_v28 = vsub.f32 0.0, %v3574_v61  ;;  %v4449_v63 = vperm.slane %v3574_v61, %v7962_v6  ;;  %v3776_v56 = vsel %vm3238_vm12, %v3225_v37, 0.0  ;;  %v5041_v2 = vperm.slane %v3936_v58, %v7724_v12 }
 0x68f   :  { %v5036_v17 = vsel %vm4207_vm2, %v5035_v34, %v5034_v19  ;;  %3774 = vadd.xlane.f32.xlu2 %v3773_v38  ;;  %v3212_v61 = vmul.f32 %v8832_v57, %v9734_v29  ;;  %v9735_v34 = vld [vmem:[#allocation90_spill] sm:$0xff]  ;;  %v4464_v57 = vperm.slane %v8838_v15, %v7752_v10 }
 0x690   :  { %v4450_v39 = vsel %vm4263_vm9, %v4449_v63, %v4448_v13  ;;  %v5032_v5 = vperm.slane %v3931_v28, %v7962_v6  ;;  %v8910_v48 = vpop.xlane.xlu0 %3624 }
 0x691   :  { %v8896_v3 = vsel %vm4616_vm3, %v4450_v39, %v8743_v8 }
 0x692   :  { %v5033_v24 = vsel %vm4263_vm9, %v5032_v5, %v5031_v16  ;;  %3729 = vadd.xlane.f32.xlu1 %v3728_v9  ;;  %v3586_v50 = vpop.xlane.xlu2 %3585  ;;  %v3939_v5 = vsub.f32 0.0, %v8838_v15 }
 0x693   :  { %v8902_v54 = vsel %vm4616_vm3, %v5033_v24, %v8759_v31  ;;  %v3935_v30 = vsub.f32 0.0, %v3586_v50  ;;  %v4456_v20 = vperm.slane %v3586_v50, %v7821_v4  ;;  %v4458_v31 = vperm.slane %v8811_v27, %v7724_v12  ;;  %vm9742_vm3 = vmmov %vm9739_vm6 }
 0x694   :  { %v3737_v50 = vsel %vm3238_vm12, %v3212_v61, 0.0 }
 0x695   :  { %v3583_v8 = vpop.xlane.xlu1 %3582  ;;  %v5039_v62 = vperm.slane %v3935_v30, %v7821_v4 }
 0x696   :  { %v3934_v13 = vsub.f32 0.0, %v3583_v8  ;;  %v4454_v25 = vperm.slane %v3583_v8, %v7973_v44  ;;  %v5047_v8 = vperm.slane %v3939_v5, %v7752_v10 }
 0x697   :  { %3735 = vadd.xlane.f32.xlu2 %v3734_v41 }
 0x698   :  { %v4455_v53 = vsel %vm4211_vm10, %v4454_v25, %v4453_v46  ;;  %v5037_v43 = vperm.slane %v3934_v13, %v7973_v44  ;;  %v3197_v46 = vmul.f32 %v8693_v14, %v9735_v34  ;;  %v8932_v9 = vpop.xlane.xlu0 %3633  ;;  %v9736_v25 = vld [vmem:[#allocation28_spill] sm:$0xff] }
 0x699   :  { %v4457_v16 = vsel %vm4215_vm11, %v4456_v20, %v4455_v53  ;;  %v3213_v20 = vmul.f32 %v8693_v14, %v9736_v25  ;;  %v4470_v14 = vperm.slane %v8860_v33, %v7773_v7 }
 0x69a   :  { %v5038_v40 = vsel %vm4211_vm10, %v5037_v43, %v5036_v17  ;;  %3777 = vadd.xlane.f32.xlu1 %v3776_v56  ;;  %v4459_v27 = vsel %vm4219_vm13, %v4458_v31, %v4457_v16  ;;  %v3595_v28 = vpop.xlane.xlu2 %3594  ;;  %v3692_v30 = vsel %vm3238_vm12, %v3197_v46, 0.0  ;;  %v9737_v43 = vld [vmem:[#allocation92_spill] sm:$0xff]  ;;  %v3942_v56 = vsub.f32 0.0, %v8860_v33 }
 0x69b   :  { %v5040_v35 = vsel %vm4215_vm11, %v5039_v62, %v5038_v40  ;;  %v3938_v19 = vsub.f32 0.0, %v3595_v28  ;;  %v4462_v24 = vperm.slane %v3595_v28, %v7861_v32  ;;  %v3198_v41 = vmul.f32 %v8561_v51, %v9737_v43 }
 0x69c   :  { %v5042_v63 = vsel %vm4219_vm13, %v5041_v2, %v5040_v35  ;;  %v3740_v28 = vsel %vm3238_vm12, %v3213_v20, 0.0 }
 0x69d   :  { %v3592_v39 = vpop.xlane.xlu1 %3591  ;;  %v5045_v60 = vperm.slane %v3938_v19, %v7861_v32  ;;  %v3695_v46 = vsel %vm3238_vm12, %v3198_v41, 0.0  ;;  %v5053_v19 = vperm.slane %v3942_v56, %v7773_v7 }
 0x69e   :  { %v3937_v38 = vsub.f32 0.0, %v3592_v39  ;;  %v4460_v17 = vperm.slane %v3592_v39, %v7688_v26 }
 0x69f   :  { %3738 = vadd.xlane.f32.xlu2 %v3737_v50 }
 0x6a0   :  { %v4461_v52 = vsel %vm4223_vm14, %v4460_v17, %v4459_v27  ;;  %v5043_v55 = vperm.slane %v3937_v38, %v7688_v26  ;;  %v8954_v27 = vpop.xlane.xlu0 %3642  ;;  %v9743_v38 = vld [vmem:[#allocation60_spill] sm:$0xff] }
 0x6a1   :  { %v4463_v37 = vsel %vm4227_vm15, %v4462_v24, %v4461_v52  ;;  %v3214_v17 = vmul.f32 %v8561_v51, %v9743_v38  ;;  %v5627_v52 = vld [vmem:[%s9258_s1 + $0x48] sm:$0xff] }
 0x6a2   :  { %v5044_v58 = vsel %vm4223_vm14, %v5043_v55, %v5042_v63  ;;  %3693 = vadd.xlane.f32.xlu1 %v3692_v30  ;;  %v4465_v15 = vsel %vm4231_vm0, %v4464_v57, %v4463_v37  ;;  %v3604_v31 = vpop.xlane.xlu2 %3603  ;;  %v9745_v55 = vld [vmem:[#allocation30_spill] sm:$0xff]  ;;  %v3945_v30 = vsub.f32 0.0, %v8886_v47 }
 0x6a3   :  { %v5046_v13 = vsel %vm4227_vm15, %v5045_v60, %v5044_v58  ;;  %v3941_v62 = vsub.f32 0.0, %v3604_v31  ;;  %v4468_v35 = vperm.slane %v3604_v31, %v7917_v11  ;;  %v3199_v50 = vmul.f32 %v5627_v52, %v9745_v55 }
 0x6a4   :  { %v5048_v53 = vsel %vm4231_vm0, %v5047_v8, %v5046_v13  ;;  %v4476_v13 = vperm.slane %v8886_v47, %v9614_v59  ;;  %v3743_v31 = vsel %vm3238_vm12, %v3214_v17, 0.0 }
 0x6a5   :  { %v3601_v16 = vpop.xlane.xlu1 %3600  ;;  %v5051_v63 = vperm.slane %v3941_v62, %v7917_v11  ;;  %v3698_v41 = vsel %vm3238_vm12, %v3199_v50, 0.0  ;;  %v5059_v62 = vperm.slane %v3945_v30, %v9614_v59  ;;  %v9753_v30 = vld [vmem:[#allocation70_spill] sm:$0xff] }
 0x6a6   :  { %v3940_v2 = vsub.f32 0.0, %v3601_v16  ;;  %v4466_v40 = vperm.slane %v3601_v16, %v7704_v42 }
 0x6a7   :  { %3741 = vadd.xlane.f32.xlu2 %v3740_v28 }
 0x6a8   :  { %v4467_v29 = vsel %vm9738_vm4, %v4466_v40, %v4465_v15  ;;  %v5049_v61 = vperm.slane %v3940_v2, %v7704_v42  ;;  %vm9744_vm4 = vmmov %vm9741_vm1  ;;  %v8978_v15 = vpop.xlane.xlu0 %3651  ;;  %v9750_v2 = vld [vmem:[#allocation63_spill] sm:$0xff] }
 0x6a9   :  { %v4469_v34 = vsel %vm9739_vm6, %v4468_v35, %v4467_v29  ;;  %vm9746_vm6 = vcmask 786112   ;;  %v3215_v40 = vmul.f32 %v5627_v52, %v9750_v2  ;;  %v9751_v29 = vld [vmem:[#allocation34_spill] sm:$0xff]  ;;  %v9752_v52 = vld [vmem:[#allocation5_spill] sm:$0xff] }
 0x6aa   :  { %v5050_v39 = vsel %vm9740_vm5, %v5049_v61, %v5048_v53  ;;  %3696 = vadd.xlane.f32.xlu1 %v3695_v46  ;;  %v4471_v33 = vsel %vm9741_vm1, %v4470_v14, %v4469_v34  ;;  %v3613_v24 = vpop.xlane.xlu2 %3612  ;;  %vm9747_vm5 = vcmask 851712   ;;  %vm9748_vm1 = vmmov %vm9746_vm6  ;;  %v3200_v61 = vmul.f32 %v8720_v0, %v9751_v29 }
 0x6ab   :  { %v5052_v5 = vsel %vm9742_vm3, %v5051_v63, %v5050_v39  ;;  %v3944_v60 = vsub.f32 0.0, %v3613_v24  ;;  %v4474_v51 = vperm.slane %v3613_v24, %v7949_v21  ;;  %vm9749_vm3 = vmmov %vm9747_vm5  ;;  %v3746_v38 = vsel %vm3238_vm12, %v3215_v40, 0.0  ;;  %v9755_v40 = vld [vmem:[#allocation38_spill] sm:$0xff] }
 0x6ac   :  { %v5054_v57 = vsel %vm9744_vm4, %v5053_v19, %v5052_v5  ;;  %vm4618_vm4 = vcmask 1047559  }
 0x6ad   :  { %v3610_v37 = vpop.xlane.xlu1 %3609  ;;  %v5057_v53 = vperm.slane %v3944_v60, %v7949_v21 }
 0x6ae   :  { %v3943_v8 = vsub.f32 0.0, %v3610_v37  ;;  %v4472_v58 = vperm.slane %v3610_v37, %v7711_v18  ;;  %v3948_v37 = vsub.f32 0.0, %v8910_v48 }
 0x6af   :  { %3744 = vadd.xlane.f32.xlu2 %v3743_v31 }
 0x6b0   :  { %v4473_v25 = vsel %vm9746_vm6, %v4472_v58, %v4471_v33  ;;  %v5055_v20 = vperm.slane %v3943_v8, %v7711_v18  ;;  %v8998_v19 = vpop.xlane.xlu0 %3660  ;;  %vm3818_vm6 = vcmp.lt.s32.totalorder %v9752_v52, 2  ;;  %v3216_v8 = vmul.f32 %v8720_v0, %v9753_v30 }
 0x6b1   :  { %v4475_v43 = vsel %vm9747_vm5, %v4474_v51, %v4473_v25  ;;  %v9754_v25 = vld [vmem:[#allocation35_spill] sm:$0xff]  ;;  %v5065_v0 = vperm.slane %v3948_v37, %v5872_v45  ;;  %vm9759_vm5 = vcmask 589312  }
 0x6b2   :  { %v5056_v16 = vsel %vm9748_vm1, %v5055_v20, %v5054_v57  ;;  %3699 = vadd.xlane.f32.xlu1 %v3698_v41  ;;  %v4477_v47 = vsel %vm4255_vm7, %v4476_v13, %v4475_v43  ;;  %v3622_v35 = vpop.xlane.xlu2 %3621  ;;  %v3701_v57 = vsel %vm3238_vm12, %v3200_v61, 0.0  ;;  %v5628_v13 = vld [vmem:[%s9258_s1 + $0x58] sm:$0xff]  ;;  %v3951_v43 = vsub.f32 0.0, %v8932_v9  ;;  %v5629_v61 = vld [vmem:[%s9258_s1 + $0x60] sm:$0xff] }
 0x6b3   :  { %v5058_v56 = vsel %vm9749_vm3, %v5057_v53, %v5056_v16  ;;  %v3947_v28 = vsub.f32 0.0, %v3622_v35  ;;  %v4480_v39 = vperm.slane %v3622_v35, %v7962_v6  ;;  %v3201_v20 = vmul.f32 %v5628_v13, %v9754_v25 }
 0x6b4   :  { %v5060_v14 = vsel %vm4255_vm7, %v5059_v62, %v5058_v56  ;;  %v3749_v62 = vsel %vm3238_vm12, %v3216_v8, 0.0  ;;  %v5070_v56 = vperm.slane %v3951_v43, %v7821_v4  ;;  %v3217_v35 = vmul.f32 %v5628_v13, %v9755_v40  ;;  %v9758_v8 = vld [vmem:[#allocation94_spill] sm:$0xff] }
 0x6b5   :  { %v3619_v63 = vpop.xlane.xlu1 %3618  ;;  %v5063_v17 = vperm.slane %v3947_v28, %v7962_v6  ;;  %v9756_v28 = vld [vmem:[#allocation93_spill] sm:$0xff]  ;;  %v3957_v25 = vsub.f32 0.0, %v8978_v15  ;;  %v9760_v15 = vld [vmem:[#allocation48_spill] sm:$0xff]  ;;  %vm9761_vm1 = vcmask 654912   ;;  %vm9763_vm3 = vcmask 720512  }
 0x6b6   :  { %v3946_v34 = vsub.f32 0.0, %v3619_v63  ;;  %v4478_v46 = vperm.slane %v3619_v63, %v7718_v36  ;;  %v3202_v63 = vmul.f32 %v5629_v61, %v9756_v28 }
 0x6b7   :  { %3747 = vadd.xlane.f32.xlu2 %v3746_v38  ;;  %v3752_v38 = vsel %vm3238_vm12, %v3217_v35, 0.0 }
 0x6b8   :  { %v4479_v33 = vsel %vm4259_vm8, %v4478_v46, %v4477_v47  ;;  %v5061_v5 = vperm.slane %v3946_v34, %v7718_v36  ;;  %v9022_v48 = vpop.xlane.xlu0 %3669  ;;  %v3704_v47 = vsel %vm3238_vm12, %v3201_v20, 0.0 }
 0x6b9   :  { %v4481_v24 = vsel %vm4263_vm9, %v4480_v39, %v4479_v33  ;;  %v3954_v39 = vsub.f32 0.0, %v8954_v27  ;;  %v9757_v27 = vld [vmem:[#allocation45_spill] sm:$0xff] }
 0x6ba   :  { %v4619_v55 = vsel %vm4618_vm4, %v4481_v24, %v8896_v3  ;;  %v5062_v50 = vsel %vm4259_vm8, %v5061_v5, %v5060_v14  ;;  %3702 = vadd.xlane.f32.xlu1 %v3701_v57  ;;  %v3631_v51 = vpop.xlane.xlu2 %3630  ;;  %v3707_v57 = vsel %vm3238_vm12, %v3202_v63, 0.0 }
 0x6bb   :  { %v5064_v60 = vsel %vm4263_vm9, %v5063_v17, %v5062_v50  ;;  %v3950_v31 = vsub.f32 0.0, %v3631_v51  ;;  %v5076_v52 = vperm.slane %v3954_v39, %v7861_v32 }
 0x6bc   :  { %v5195_v58 = vsel %vm4618_vm4, %v5064_v60, %v8902_v54  ;;  %v3218_v60 = vmul.f32 %v5629_v61, %v9757_v27  ;;  %vm9764_vm4 = vcmask 786112  }
 0x6bd   :  { %v9019_v3 = vsel %vm3818_vm6, %v4619_v55, %v5195_v58  ;;  %v3628_v53 = vpop.xlane.xlu1 %3627  ;;  %v5068_v16 = vperm.slane %v3950_v31, %v7973_v44  ;;  %v3203_v58 = vmul.f32 %v8752_v22, %v9758_v8  ;;  %vm9766_vm6 = vcmask 851712  }
 0x6be   :  { %v3949_v41 = vsub.f32 0.0, %v3628_v53  ;;  %v3755_v53 = vsel %vm3238_vm12, %v3218_v60, 0.0 }
 0x6bf   :  { %3750 = vadd.xlane.f32.xlu2 %v3749_v62 }
 0x6c0   :  { %v5066_v54 = vperm.slane %v3949_v41, %v7685_v49  ;;  %v9041_v17 = vpop.xlane.xlu0 %3678  ;;  %v3710_v41 = vsel %vm3238_vm12, %v3203_v58, 0.0 }
 0x6c2   :  { %v5067_v2 = vsel %vm4207_vm2, %v5066_v54, %v5065_v0  ;;  %3705 = vadd.xlane.f32.xlu1 %v3704_v47  ;;  %v3640_v14 = vpop.xlane.xlu2 %3639  ;;  %v5082_v0 = vperm.slane %v3957_v25, %v7917_v11  ;;  %v3219_v47 = vmul.f32 %v8752_v22, %v9760_v15 }
 0x6c3   :  { %v5069_v9 = vsel %vm4211_vm10, %v5068_v16, %v5067_v2  ;;  %v3953_v34 = vsub.f32 0.0, %v3640_v14 }
 0x6c4   :  { %v5071_v29 = vsel %vm4215_vm11, %v5070_v56, %v5069_v9  ;;  %v9762_v9 = vld [vmem:[#allocation95_spill] sm:$0xff]  ;;  %v3758_v63 = vsel %vm3238_vm12, %v3219_v47, 0.0 }
 0x6c5   :  { %v3637_v46 = vpop.xlane.xlu1 %3636  ;;  %v5074_v24 = vperm.slane %v3953_v34, %v7688_v26  ;;  %v3204_v40 = vmul.f32 %v8611_v1, %v9762_v9 }
 0x6c6   :  { %v3952_v33 = vsub.f32 0.0, %v3637_v46 }
 0x6c7   :  { %3753 = vadd.xlane.f32.xlu2 %v3752_v38  ;;  %v3713_v22 = vsel %vm3238_vm12, %v3204_v40, 0.0 }
 0x6c8   :  { %v5072_v5 = vperm.slane %v3952_v33, %v7724_v12  ;;  %v9059_v62 = vpop.xlane.xlu0 %3687 }
 0x6ca   :  { %v5073_v55 = vsel %vm4219_vm13, %v5072_v5, %v5071_v29  ;;  %3708 = vadd.xlane.f32.xlu1 %v3707_v57  ;;  %v3649_v37 = vpop.xlane.xlu2 %3648  ;;  %v3960_v29 = vsub.f32 0.0, %v8998_v19  ;;  %v9765_v19 = vld [vmem:[#allocation96_spill] sm:$0xff] }
 0x6cb   :  { %v5075_v50 = vsel %vm4223_vm14, %v5074_v24, %v5073_v55  ;;  %v3956_v51 = vsub.f32 0.0, %v3649_v37  ;;  %v3220_v38 = vmul.f32 %v8611_v1, %v9765_v19  ;;  %v9767_v55 = vld [vmem:[#allocation43_spill] sm:$0xff]  ;;  %v3963_v37 = vsub.f32 0.0, %v9022_v48 }
 0x6cc   :  { %v5077_v30 = vsel %vm4227_vm15, %v5076_v52, %v5075_v50  ;;  %v5088_v46 = vperm.slane %v3960_v29, %v7949_v21  ;;  %v5630_v52 = vld [vmem:[%s9258_s1 + $0x78] sm:$0xff]  ;;  %v3236_v48 = vmul.f32 %v8611_v1, %v8444_v23  ;;  %s5658_s1 = smov [#allocation2]  }
 0x6cd   :  { %v3646_v13 = vpop.xlane.xlu1 %3645  ;;  %v5080_v43 = vperm.slane %v3956_v51, %v7704_v42  ;;  %v3205_v50 = vmul.f32 %v5630_v52, %v9767_v55  ;;  %v3761_v58 = vsel %vm3238_vm12, %v3220_v38, 0.0  ;;  %v5094_v25 = vperm.slane %v3963_v37, %v7962_v6  ;;  %s5278_s15 = sshll.u32 %s5658_s1, 4  ;;  %s5279_s15 = int_to_ptr.vmem [resolvable:$true] %s5278_s15 }
 0x6ce   :  { %v3955_v20 = vsub.f32 0.0, %v3646_v13  ;;  %v3809_v40 = vsel %vm3238_vm12, %v3236_v48, 0.0 }
 0x6cf   :  { %3756 = vadd.xlane.f32.xlu2 %v3755_v53  ;;  %v3716_v13 = vsel %vm3238_vm12, %v3205_v50, 0.0 }
 0x6d0   :  { %v5078_v31 = vperm.slane %v3955_v20, %v7752_v10  ;;  %v9074_v33 = vpop.xlane.xlu0 %3723 }
 0x6d2   :  { %v5079_v54 = vsel %vm4231_vm0, %v5078_v31, %v5077_v30  ;;  %3711 = vadd.xlane.f32.xlu1 %v3710_v41  ;;  %v3658_v56 = vpop.xlane.xlu2 %3657 }
 0x6d3   :  { %v5081_v16 = vsel %vm9759_vm5, %v5080_v43, %v5079_v54  ;;  %v3959_v35 = vsub.f32 0.0, %v3658_v56  ;;  %v9768_v54 = vld [vmem:[#allocation97_spill] sm:$0xff] }
 0x6d4   :  { %v5083_v2 = vsel %vm9761_vm1, %v5082_v0, %v5081_v16  ;;  %v3966_v0 = vsub.f32 0.0, %v9041_v17  ;;  %v3221_v16 = vmul.f32 %v5630_v52, %v9768_v54 }
 0x6d5   :  { %v3655_v14 = vpop.xlane.xlu1 %3654  ;;  %v5086_v34 = vperm.slane %v3959_v35, %v7711_v18 }
 0x6d6   :  { %v3958_v61 = vsub.f32 0.0, %v3655_v14  ;;  %v5099_v35 = vperm.slane %v3966_v0, %v7973_v44  ;;  %v3764_v23 = vsel %vm3238_vm12, %v3221_v16, 0.0  ;;  %vm9769_vm12 = vmmov %vm9759_vm5 }
 0x6d7   :  { %3759 = vadd.xlane.f32.xlu2 %v3758_v63  ;;  %v3969_v63 = vsub.f32 0.0, %v9059_v62 }
 0x6d8   :  { %v5084_v28 = vperm.slane %v3958_v61, %v7773_v7  ;;  %v3772_v31 = vpop.xlane.xlu0 %3771 }
 0x6d9   :  { %v3997_v37 = vsub.f32 0.0, %v3772_v31 }
 0x6da   :  { %v5085_v39 = vsel %vm9763_vm3, %v5084_v28, %v5083_v2  ;;  %3714 = vadd.xlane.f32.xlu1 %v3713_v22  ;;  %v3667_v24 = vpop.xlane.xlu2 %3666 }
 0x6db   :  { %v5087_v5 = vsel %vm9764_vm4, %v5086_v34, %v5085_v39  ;;  %v3962_v27 = vsub.f32 0.0, %v3667_v24  ;;  %v5105_v39 = vperm.slane %v3969_v63, %v7688_v26 }
 0x6dc   :  { %v5089_v57 = vsel %vm9766_vm6, %v5088_v46, %v5087_v5 }
 0x6dd   :  { %v3664_v60 = vpop.xlane.xlu1 %3663  ;;  %v5092_v51 = vperm.slane %v3962_v27, %v7718_v36 }
 0x6de   :  { %v3961_v30 = vsub.f32 0.0, %v3664_v60  ;;  %v3981_v60 = vsub.f32 0.0, %v9074_v33 }
 0x6df   :  { %3762 = vadd.xlane.f32.xlu2 %v3761_v58 }
 0x6e0   :  { %v5090_v8 = vperm.slane %v3961_v30, %v9614_v59  ;;  %v3733_v29 = vpop.xlane.xlu0 %3732 }
 0x6e1   :  { %v3984_v16 = vsub.f32 0.0, %v3733_v29 }
 0x6e2   :  { %v5091_v20 = vsel %vm4255_vm7, %v5090_v8, %v5089_v57  ;;  %3717 = vadd.xlane.f32.xlu1 %v3716_v13  ;;  %v3676_v43 = vpop.xlane.xlu2 %3675 }
 0x6e3   :  { %v5093_v53 = vsel %vm4259_vm8, %v5092_v51, %v5091_v20  ;;  %v3965_v15 = vsub.f32 0.0, %v3676_v43  ;;  %v5159_v20 = vperm.slane %v3997_v37, %v7685_v49 }
 0x6e4   :  { %v9095_v41 = vsel %vm4263_vm9, %v5094_v25, %v5093_v53  ;;  %v5128_v25 = vperm.slane %v3981_v60, %v7685_v49 }
 0x6e5   :  { %v3673_v47 = vpop.xlane.xlu1 %3672  ;;  %v5097_v2 = vperm.slane %v3965_v15, %v7685_v49 }
 0x6e6   :  { %v3964_v56 = vsub.f32 0.0, %v3673_v47 }
 0x6e7   :  { %3810 = vadd.xlane.f32.xlu2 %v3809_v40 }
 0x6e8   :  { %v5096_v9 = vperm.slane %v3964_v56, %v5872_v45  ;;  %v3781_v57 = vpop.xlane.xlu0 %3780 }
 0x6ea   :  { %v5098_v1 = vsel %vm4207_vm2, %v5097_v2, %v5096_v9  ;;  %3765 = vadd.xlane.f32.xlu1 %v3764_v23  ;;  %v3685_v14 = vpop.xlane.xlu2 %3684  ;;  %v5134_v9 = vperm.slane %v3984_v16, %v7724_v12 }
 0x6eb   :  { %v5100_v17 = vsel %vm4211_vm10, %v5099_v35, %v5098_v1  ;;  %v3968_v61 = vsub.f32 0.0, %v3685_v14 }
 0x6ed   :  { %v3682_v28 = vpop.xlane.xlu1 %3681  ;;  %v5103_v46 = vperm.slane %v3968_v61, %v7724_v12 }
 0x6ee   :  { %v3967_v34 = vsub.f32 0.0, %v3682_v28 }
 0x6f0   :  { %v5101_v22 = vperm.slane %v3967_v34, %v7821_v4  ;;  %v3784_v53 = vpop.xlane.xlu0 %3783 }
 0x6f2   :  { %v5102_v5 = vsel %vm4215_vm11, %v5101_v22, %v5100_v17  ;;  %v3721_v38 = vpop.xlane.xlu2 %3720  ;;  %v4000_v17 = vsub.f32 0.0, %v3781_v57 }
 0x6f3   :  { %v5104_v19 = vsel %vm4219_vm13, %v5103_v46, %v5102_v5  ;;  %v3980_v62 = vsub.f32 0.0, %v3721_v38 }
 0x6f4   :  { %v5106_v24 = vsel %vm4223_vm14, %v5105_v39, %v5104_v19  ;;  %v5165_v63 = vperm.slane %v4000_v17, %v7724_v12 }
 0x6f5   :  { %v3691_v52 = vpop.xlane.xlu1 %3690  ;;  %v5127_v8 = vperm.slane %v3980_v62, %v5872_v45 }
 0x6f6   :  { %v3970_v55 = vsub.f32 0.0, %v3691_v52 }
 0x6f7   :  { %v5129_v0 = vsel %vm4207_vm2, %v5128_v25, %v5127_v8 }
 0x6f8   :  { %v5107_v50 = vperm.slane %v3970_v55, %v7861_v32 }
 0x6fa   :  { %v9115_v27 = vsel %vm4227_vm15, %v5107_v50, %v5106_v24  ;;  %v3769_v30 = vpop.xlane.xlu2 %3768 }
 0x6fb   :  { %v3996_v58 = vsub.f32 0.0, %v3769_v30 }
 0x6fd   :  { %v3727_v51 = vpop.xlane.xlu1 %3726  ;;  %v5158_v48 = vperm.slane %v3996_v58, %v5872_v45  ;;  %v3787_v45 = vpop.xlane.xlu0 %3786 }
 0x6fe   :  { %v3982_v13 = vsub.f32 0.0, %v3727_v51  ;;  %v5205_v51 = vand.u32 2147483647, %v9019_v3 }
 0x6ff   :  { %v5160_v33 = vsel %vm4207_vm2, %v5159_v20, %v5158_v48  ;;  %v4002_v48 = vsub.f32 0.0, %v3787_v45  ;;  %vm9770_vm2 = vmmov %vm9759_vm5 }
 0x700   :  { %v5130_v43 = vperm.slane %v3982_v13, %v7973_v44  ;;  %v4001_v13 = vsub.f32 0.0, %v3784_v53  ;;  %v5207_v25 = vsub.f32 0.0, %v5205_v51  ;;  %vm9775_vm5 = vmmov %vm9766_vm6 }
 0x702   :  { %v5131_v31 = vsel %vm4211_vm10, %v5130_v43, %v5129_v0  ;;  %v3775_v54 = vpop.xlane.xlu2 %3774 }
 0x703   :  { %v3998_v15 = vsub.f32 0.0, %v3775_v54 }
 0x705   :  { %v3730_v47 = vpop.xlane.xlu1 %3729  ;;  %v5161_v2 = vperm.slane %v3998_v15, %v7973_v44  ;;  %v3790_v46 = vpop.xlane.xlu0 %3789  ;;  %v5169_v15 = vperm.slane %v4002_v48, %v7861_v32 }
 0x706   :  { %v3983_v56 = vsub.f32 0.0, %v3730_v47  ;;  %v4003_v54 = vsub.f32 0.0, %v3790_v46 }
 0x707   :  { %v5162_v40 = vsel %vm4211_vm10, %v5161_v2, %v5160_v33  ;;  %v5167_v33 = vperm.slane %v4001_v13, %v7688_v26  ;;  %vm9771_vm10 = vmmov %vm9761_vm1 }
 0x708   :  { %v5132_v49 = vperm.slane %v3983_v56, %v7821_v4  ;;  %v5171_v45 = vperm.slane %v4003_v54, %v7752_v10  ;;  %vm9780_vm6 = vmmov %vm9771_vm10 }
 0x70a   :  { %v5133_v35 = vsel %vm4215_vm11, %v5132_v49, %v5131_v31  ;;  %v3736_v1 = vpop.xlane.xlu2 %3735  ;;  %v5209_v31 = vmul.f32 1.442695, %v5207_v25 }
 0x70b   :  { %v5135_v23 = vsel %vm4219_vm13, %v5134_v9, %v5133_v35  ;;  %v3985_v14 = vsub.f32 0.0, %v3736_v1 }
 0x70c   :  { %5571 = vpow2.f32 %v5209_v31 }
 0x70d   :  { %v3778_v29 = vpop.xlane.xlu1 %3777  ;;  %v5136_v28 = vperm.slane %v3985_v14, %v7688_v26  ;;  %v3793_v24 = vpop.xlane.xlu0 %3792 }
 0x70e   :  { %v3999_v61 = vsub.f32 0.0, %v3778_v29  ;;  %v4004_v47 = vsub.f32 0.0, %v3793_v24 }
 0x70f   :  { %v9136_v34 = vsel %vm4223_vm14, %v5136_v28, %v5135_v23 }
 0x710   :  { %v5163_v44 = vperm.slane %v3999_v61, %v7821_v4  ;;  %v5173_v17 = vperm.slane %v4004_v47, %v7704_v42 }
 0x712   :  { %v5164_v22 = vsel %vm4215_vm11, %v5163_v44, %v5162_v40  ;;  %v9140_v5 = vpop.xlane.xlu2 %3738  ;;  %vm9772_vm11 = vmmov %vm9761_vm1 }
 0x713   :  { %v5166_v39 = vsel %vm4219_vm13, %v5165_v63, %v5164_v22  ;;  %vm9773_vm13 = vmmov %vm9763_vm3 }
 0x714   :  { %v5168_v16 = vsel %vm4223_vm14, %v5167_v33, %v5166_v39  ;;  %v9172_v39 = vpop.eup %5571  ;;  %vm9774_vm14 = vmmov %vm9764_vm4 }
 0x715   :  { %v3694_v19 = vpop.xlane.xlu1 %3693  ;;  %v3796_v55 = vpop.xlane.xlu0 %3795  ;;  %v5170_v49 = vsel %vm4227_vm15, %v5169_v15, %v5168_v16  ;;  %vm9776_vm1 = vmmov %vm9763_vm3 }
 0x716   :  { %v3971_v56 = vsub.f32 0.0, %v3694_v19  ;;  %v4005_v2 = vsub.f32 0.0, %v3796_v55  ;;  %v5172_v14 = vsel %vm4231_vm0, %v5171_v45, %v5170_v49  ;;  %vm9777_vm3 = vmmov %vm9764_vm4 }
 0x717   :  { %v5174_v55 = vsel %vm9769_vm12, %v5173_v17, %v5172_v14  ;;  %vm9778_vm4 = vmmov %vm9770_vm2 }
 0x718   :  { %v5109_v29 = vperm.slane %v3971_v56, %v7752_v10  ;;  %v5175_v28 = vperm.slane %v4005_v2, %v7917_v11  ;;  %vm9782_vm12 = vmmov %vm9775_vm5 }
 0x71a   :  { %v9142_v38 = vpop.xlane.xlu2 %3741 }
 0x71b   :  { %v3987_v51 = vsub.f32 0.0, %v9142_v38  ;;  %v5176_v38 = vsel %vm9772_vm11, %v5175_v28, %v5174_v55  ;;  %vm9784_vm11 = vmmov %vm9775_vm5 }
 0x71d   :  { %v3697_v57 = vpop.xlane.xlu1 %3696  ;;  %v3799_v62 = vpop.xlane.xlu0 %3798  ;;  %v5140_v56 = vperm.slane %v3987_v51, %v7752_v10 }
 0x71e   :  { %v4006_v53 = vsub.f32 0.0, %v3799_v62  ;;  %v3972_v9 = vsub.f32 0.0, %v3697_v57 }
 0x720   :  { %v5177_v44 = vperm.slane %v4006_v53, %v7773_v7  ;;  %v5111_v22 = vperm.slane %v3972_v9, %v7704_v42 }
 0x722   :  { %v9144_v52 = vpop.xlane.xlu2 %3744  ;;  %v5178_v45 = vsel %vm9776_vm1, %v5177_v44, %v5176_v38 }
 0x723   :  { %v3988_v48 = vsub.f32 0.0, %v9144_v52 }
 0x725   :  { %v3700_v4 = vpop.xlane.xlu1 %3699  ;;  %v3802_v30 = vpop.xlane.xlu0 %3801  ;;  %v5142_v49 = vperm.slane %v3988_v48, %v7704_v42 }
 0x726   :  { %v4007_v40 = vsub.f32 0.0, %v3802_v30  ;;  %v3973_v35 = vsub.f32 0.0, %v3700_v4 }
 0x728   :  { %v5179_v19 = vperm.slane %v4007_v40, %v7711_v18  ;;  %v5113_v57 = vperm.slane %v3973_v35, %v7917_v11 }
 0x72a   :  { %v9146_v12 = vpop.xlane.xlu2 %3747 }
 0x72b   :  { %v3989_v33 = vsub.f32 0.0, %v9146_v12 }
 0x72d   :  { %v3703_v50 = vpop.xlane.xlu1 %3702  ;;  %v9155_v43 = vpop.xlane.xlu0 %3804 }
 0x72e   :  { %v3974_v26 = vsub.f32 0.0, %v3703_v50  ;;  %v4008_v24 = vsub.f32 0.0, %v9155_v43  ;;  %v3986_v50 = vsub.f32 0.0, %v9140_v5  ;;  %v9189_v5 = vadd.f32 1.0, %v9172_v39 }
 0x730   :  { %v5115_v62 = vperm.slane %v3974_v26, %v7773_v7  ;;  %v5138_v54 = vperm.slane %v3986_v50, %v7861_v32 }
 0x732   :  { %v9148_v60 = vpop.xlane.xlu2 %3750 }
 0x733   :  { %v3990_v52 = vsub.f32 0.0, %v9148_v60  ;;  %v5144_v60 = vperm.slane %v3989_v33, %v7917_v11 }
 0x735   :  { %v3706_v37 = vpop.xlane.xlu1 %3705  ;;  %v9169_v63 = vpop.xlane.xlu0 %3807  ;;  %v5146_v42 = vperm.slane %v3990_v52, %v7773_v7 }
 0x736   :  { %v3975_v61 = vsub.f32 0.0, %v3706_v37  ;;  %v4009_v30 = vsub.f32 0.0, %v9169_v63 }
 0x738   :  { %v5117_v13 = vperm.slane %v3975_v61, %v7711_v18 }
 0x73a   :  { %v9150_v8 = vpop.xlane.xlu2 %3753 }
 0x73b   :  { %v3991_v12 = vsub.f32 0.0, %v9150_v8  ;;  %v5139_v8 = vsel %vm4227_vm15, %v5138_v54, %v9136_v34  ;;  %vm9779_vm15 = vcmask 1041409  }
 0x73d   :  { %v3709_v58 = vpop.xlane.xlu1 %3708  ;;  %v3814_v26 = vpop.xlane.xlu0 %3813  ;;  %v5148_v14 = vperm.slane %v3991_v12, %v7711_v18  ;;  %v5385_v18 = vadd.f32 -1.0, %v9189_v5 }
 0x73e   :  { %v3976_v46 = vsub.f32 0.0, %v3709_v58  ;;  %v5110_v58 = vsel %vm4231_vm0, %v5109_v29, %v9115_v27  ;;  %v5180_v29 = vsel %vm9777_vm3, %v5179_v19, %v5178_v45  ;;  %v4011_v34 = vsub.f32 0.0, %v3814_v26 }
 0x73f   :  { %v5112_v25 = vsel %vm9770_vm2, %v5111_v22, %v5110_v58  ;;  %vm9783_vm2 = vmmov %vm9777_vm3 }
 0x740   :  { %v5119_v43 = vperm.slane %v3976_v46, %v7949_v21 }
 0x742   :  { %v9153_v20 = vpop.xlane.xlu2 %3756 }
 0x743   :  { %v3992_v32 = vsub.f32 0.0, %v9153_v20  ;;  %v5141_v20 = vsel %vm4231_vm0, %v5140_v56, %v5139_v8  ;;  %vm9781_vm0 = vmmov %vm9776_vm1 }
 0x744   :  { %v5143_v61 = vsel %vm9778_vm4, %v5142_v49, %v5141_v20 }
 0x745   :  { %v3712_v0 = vpop.xlane.xlu1 %3711  ;;  %v5150_v28 = vperm.slane %v3992_v32, %v7949_v21  ;;  %v5145_v44 = vsel %vm9780_vm6, %v5144_v60, %v5143_v61 }
 0x746   :  { %v3977_v4 = vsub.f32 0.0, %v3712_v0  ;;  %v5114_v0 = vsel %vm9771_vm10, %v5113_v57, %v5112_v25  ;;  %v5147_v46 = vsel %vm9781_vm0, %v5146_v42, %v5145_v44  ;;  %vm5215_vm10 = vcmp.eq.f32.partialorder %v9189_v5, 1.0 }
 0x747   :  { %v5116_v16 = vsel %vm9773_vm13, %v5115_v62, %v5114_v0  ;;  %vm9785_vm13 = vcmask 1042434   ;;  %vm5261_vm0 = vcmask 1043456  }
 0x748   :  { %v5121_v31 = vperm.slane %v3977_v4, %v9614_v59  ;;  %v5118_v2 = vsel %vm9774_vm14, %v5117_v13, %v5116_v16  ;;  %vm9786_vm14 = vcmask 1043459  }
 0x749   :  { %v5120_v9 = vsel %vm9775_vm5, %v5119_v43, %v5118_v2 }
 0x74a   :  { %v9162_v23 = vpop.xlane.xlu2 %3759  ;;  %v5122_v40 = vsel %vm4255_vm7, %v5121_v31, %v5120_v9 }
 0x74b   :  { %v3993_v35 = vsub.f32 0.0, %v9162_v23  ;;  %v5181_v23 = vperm.slane %v4008_v24, %v7949_v21  ;;  %v5183_v21 = vperm.slane %v4009_v30, %v9614_v59  ;;  %v5219_v30 = vsel %vm5215_vm10, 1.0, %v5385_v18 }
 0x74c   :  { %5573 = vrcp.f32 %v5219_v30  ;;  %v5236_v12 = vand.u32 2147483648, %v5219_v30 }
 0x74d   :  { %v3715_v1 = vpop.xlane.xlu1 %3714  ;;  %v5152_v63 = vperm.slane %v3993_v35, %v9614_v59  ;;  %v5182_v57 = vsel %vm9782_vm12, %v5181_v23, %v5180_v29 }
 0x74e   :  { %v3978_v37 = vsub.f32 0.0, %v3715_v1  ;;  %v5184_v51 = vsel %vm4255_vm7, %v5183_v21, %v5182_v57  ;;  %v5237_v45 = vor.u32 1.1754944e-38, %v5236_v12 }
 0x750   :  { %v5123_v15 = vperm.slane %v3978_v37, %v7718_v36  ;;  %v5187_v37 = vperm.slane %v4011_v34, %v7962_v6 }
 0x752   :  { %v3763_v27 = vpop.xlane.xlu2 %3762  ;;  %v5124_v1 = vsel %vm4259_vm8, %v5123_v15, %v5122_v40 }
 0x753   :  { %v3994_v17 = vsub.f32 0.0, %v3763_v27 }
 0x755   :  { %v3718_v47 = vpop.xlane.xlu1 %3717  ;;  %v5154_v19 = vperm.slane %v3994_v17, %v7718_v36 }
 0x756   :  { %v3979_v53 = vsub.f32 0.0, %v3718_v47 }
 0x758   :  { %v5125_v10 = vperm.slane %v3979_v53, %v7962_v6  ;;  %v5234_v53 = vand.u32 2147483647, %v5219_v30 }
 0x75a   :  { %v5126_v11 = vsel %vm4263_vm9, %v5125_v10, %v5124_v1  ;;  %v3811_v22 = vpop.xlane.xlu2 %3810  ;;  %vm5235_vm1 = vcmp.eq.f32.partialorder %v5234_v53, 8.507059e+37 }
 0x75b   :  { %v5196_v7 = vsel %vm9779_vm15, %v5126_v11, %v9095_v41  ;;  %v4010_v24 = vsub.f32 0.0, %v3811_v22  ;;  %v5149_v41 = vsel %vm9783_vm2, %v5148_v14, %v5147_v46 }
 0x75c   :  { %v5151_v50 = vsel %vm9784_vm11, %v5150_v28, %v5149_v41 }
 0x75d   :  { %v3766_v4 = vpop.xlane.xlu1 %3765  ;;  %v5185_v62 = vperm.slane %v4010_v24, %v7718_v36  ;;  %v5153_v58 = vsel %vm4255_vm7, %v5152_v63, %v5151_v50  ;;  %v5203_v63 = vmin.f32 %v9019_v3, 0.0 }
 0x75e   :  { %v3995_v55 = vsub.f32 0.0, %v3766_v4  ;;  %v5155_v25 = vsel %vm4259_vm8, %v5154_v19, %v5153_v58 }
 0x75f   :  { %v5186_v59 = vsel %vm4259_vm8, %v5185_v62, %v5184_v51 }
 0x760   :  { %v5156_v13 = vperm.slane %v3995_v55, %v7962_v6  ;;  %v5188_v48 = vsel %vm4263_vm9, %v5187_v37, %v5186_v59  ;;  %v5574_v6 = vpop.eup %5573 }
 0x761   :  { %v5226_v38 = vmul.f32 %v5574_v6, %v5219_v30  ;;  %vm5231_vm8 = vweird.f32 %v5574_v6 }
 0x762   :  { %v5157_v43 = vsel %vm4263_vm9, %v5156_v13, %v5155_v25  ;;  %vm5230_vm9 = vweird.f32 %v5219_v30 }
 0x763   :  { %v5197_v36 = vsel %vm9785_vm13, %v5157_v43, %v5196_v7  ;;  %v5227_v16 = vsub.f32 1.0, %v5226_v38  ;;  %vm5232_vm5 = vmor %vm5230_vm9, %vm5231_vm8 }
 0x764   :  { %v5198_v0 = vsel %vm9786_vm14, %v5188_v48, %v5197_v36 }
 0x765   :  { %v5206_v33 = vand.u32 2147483647, %v5198_v0  ;;  %v5228_v47 = vmul.f32 %v5574_v6, %v5227_v16  ;;  %v5204_v34 = vmin.f32 %v5198_v0, 0.0 }
 0x767   :  { %v5208_v31 = vsub.f32 0.0, %v5206_v33  ;;  %v5229_v2 = vadd.f32 %v5574_v6, %v5228_v47 }
 0x769   :  { %v5211_v27 = vmul.f32 1.442695, %v5208_v31  ;;  %v5233_v9 = vsel %vm5232_vm5, %v5574_v6, %v5229_v2 }
 0x76a   :  { %v5238_v40 = vsel %vm5235_vm1, %v5237_v45, %v5233_v9 }
 0x76b   :  { %5575 = vpow2.f32 %v5211_v27  ;;  %v5239_v42 = vmul.f32 %v9172_v39, %v5238_v40 }
 0x771   :  { %v5576_v54 = vpop.eup %5575 }
 0x772   :  { %v5214_v52 = vadd.f32 1.0, %v5576_v54 }
 0x774   :  { %vm5216_vm7 = vcmp.eq.f32.partialorder %v5214_v52, 1.0  ;;  %v5386_v15 = vadd.f32 -1.0, %v5214_v52 }
 0x776   :  { %v5220_v56 = vsel %vm5216_vm7, 1.0, %v5386_v15 }
 0x777   :  { %5577 = vrcp.f32 %v5220_v56  ;;  %v5251_v35 = vand.u32 2147483648, %v5220_v56  ;;  %v5249_v8 = vand.u32 2147483647, %v5220_v56  ;;  %vm5245_vm4 = vweird.f32 %v5220_v56 }
 0x778   :  { %5579 = vlog2.f32 %v9189_v5 }
 0x779   :  { %5581 = vlog2.f32 %v5214_v52  ;;  %v5252_v20 = vor.u32 1.1754944e-38, %v5251_v35  ;;  %vm5250_vm6 = vcmp.eq.f32.partialorder %v5249_v8, 8.507059e+37 }
 0x77d   :  { %v5578_v49 = vpop.eup %5577 }
 0x77e   :  { %v5241_v32 = vmul.f32 %v5578_v49, %v5220_v56  ;;  %v5580_v10 = vpop.eup %5579  ;;  %vm5246_vm3 = vweird.f32 %v5578_v49 }
 0x77f   :  { %v5582_v17 = vpop.eup %5581  ;;  %vm5247_vm15 = vmor %vm5245_vm4, %vm5246_vm3  ;;  %v5222_v14 = vmul.f32 0.6931472, %v5580_v10 }
 0x780   :  { %v5242_v60 = vsub.f32 1.0, %v5241_v32  ;;  %v5224_v61 = vmul.f32 0.6931472, %v5582_v17 }
 0x781   :  { %v5255_v23 = vmul.f32 %v5239_v42, %v5222_v14 }
 0x782   :  { %v5243_v26 = vmul.f32 %v5578_v49, %v5242_v60 }
 0x783   :  { %v5257_v44 = vsel %vm5215_vm10, %v9172_v39, %v5255_v23 }
 0x784   :  { %v5244_v1 = vadd.f32 %v5578_v49, %v5243_v26  ;;  %v5259_v46 = vsub.f32 %v5203_v63, %v5257_v44 }
 0x786   :  { %v5248_v11 = vsel %vm5247_vm15, %v5578_v49, %v5244_v1 }
 0x787   :  { %v5253_v29 = vsel %vm5250_vm6, %v5252_v20, %v5248_v11 }
 0x788   :  { %v5254_v28 = vmul.f32 %v5576_v54, %v5253_v29 }
 0x78a   :  { %v5256_v7 = vmul.f32 %v5254_v28, %v5224_v61 }
 0x78c   :  { %v5258_v22 = vsel %vm5216_vm7, %v5576_v54, %v5256_v7 }
 0x78d   :  { %v5260_v18 = vsub.f32 %v5204_v34, %v5258_v22 }
 0x78f   :  { %v5262_v19 = vsel %vm5261_vm0, %v5260_v18, 0.0 }
 0x790   :  { %v5263_v24 = vadd.f32 %v5262_v19, %v5259_v46 }
 0x792   :  { %v5264_v57 = vrot.slane %v5263_v24, 4 }
 0x794   :  { %v5265_v4 = vadd.f32 %v5264_v57, %v5263_v24 }
 0x796   :  { %v5266_v21 = vrot.slane %v5265_v4, 2 }
 0x798   :  { %v5267_v41 = vadd.f32 %v5266_v21, %v5265_v4 }
 0x79a   :  { %v5268_v55 = vrot.slane %v5267_v41, 1 }
 0x79c   :  { %v5269_v50 = vadd.f32 %v5268_v55, %v5267_v41 }
 0x79e   :  { %v5270_v3 = vsub.f32 0.0, %v5269_v50 }
 0x7a0   :  { %v5271_v39 = vmul.f32 0.5, %v5270_v3 }
 0x7a2   :  { %5272 = vst [vmem:[#allocation2] sm:$0x1] %v5271_v39 }
 0x7a3   :  { %5283 = dma.vmem_to_hbm [thread:$0]  %s5279_s15, 16, %s5281_s17, [#allocation3]  }
 0x7a4   :  { %5655 = dma.done.wait [#allocation3], 16  }
 0x7a5   :  { %5656 = vsyncadd [#allocation3], 4294967280 }
 0x7a6   :  { %5288 = vsyncpa [#allocation3], 1 }

</bundles_post_ra>
